<compile_context>
chip_gen: v7x
topology: tpu7x:2x2x1
jax: 0.10.0
libtpu: 0.0.40
codegen_flags: <defaults>
</compile_context>

<pallas_src>
import functools
import math

import jax
import jax.numpy as jnp
import numpy as np
from jax.experimental import pallas as pl
from jax.experimental.pallas import tpu as pltpu


def _self_attn_kernel(x_ref, pos_ref, wqkv_ref, bqkv_ref, wout_ref, bout_ref,
                      gamma_ref, beta_ref, o_ref, *, num_heads):
    """One block of `Bb` batch elements per grid step.

    x_ref    : (Bb, E, S)  channel-major input block (free reshape of NCHW)
    pos_ref  : (S, E)      positional embedding (shared)
    wqkv_ref : (E, 3E)     packed, pre-transposed in-projection weight (q|k|v)
    bqkv_ref : (1, 3E)     packed in-projection bias
    wout_ref : (E, E)      pre-transposed out-projection weight
    bout_ref : (1, E)      out-projection bias
    gamma_ref/beta_ref: (1, E) LayerNorm affine params
    o_ref    : (Bb, E, S)  channel-major output block (lane width S)
    """
    Bb, E, S = x_ref.shape
    hd = E // num_heads
    G = Bb * num_heads
    scale = 1.0 / math.sqrt(hd)
    inv_e = 1.0 / E

    # channel-major -> sequence-major working copy (tiny in-kernel transpose
    # replaces a full-HBM-pass XLA transpose in the wrapper).  Residual path
    # includes the positional embedding (torch mutates x_flat in place).
    x_se = jnp.transpose(x_ref[...], (0, 2, 1)) + pos_ref[...]          # (Bb, S, E)
    x2 = x_se.reshape(Bb * S, E)

    # fused q|k|v projection on the whole (Bb*S, E) slab, single 2-D MXU dot.
    qkv = jnp.dot(x2, wqkv_ref[...],
                  preferred_element_type=jnp.float32) + bqkv_ref[...]   # (Bb*S, 3E)

    # Head split: one minor-dim transpose + tile-aligned reshapes (no per-head
    # lane-slice / concat loop).  Head h of q/k/v ends up as group g = b*nh+h.
    qkv_es = jnp.transpose(qkv.reshape(Bb, S, 3 * E), (0, 2, 1))        # (Bb, 3E, S)
    q = jnp.transpose(qkv_es[:, 0 * E:1 * E].reshape(G, hd, S), (0, 2, 1))  # (G, S, hd)
    k = jnp.transpose(qkv_es[:, 1 * E:2 * E].reshape(G, hd, S), (0, 2, 1))
    v = jnp.transpose(qkv_es[:, 2 * E:3 * E].reshape(G, hd, S), (0, 2, 1))

    # batched-head attention: one MXU stream per contraction.
    s = jnp.einsum('gqd,gkd->gqk', q, k,
                   preferred_element_type=jnp.float32) * scale          # (G, S, S)
    m = jnp.max(s, axis=-1, keepdims=True)
    p = jnp.exp(s - m)
    inv = pl.reciprocal(jnp.sum(p, axis=-1, keepdims=True), approx=True)  # EUP slot
    ctx = jnp.einsum('gqk,gkd->gqd', p * inv, v,
                     preferred_element_type=jnp.float32)                 # (G, S, hd)

    # heads back onto the embedding axis: (G,S,hd) -> (Bb,E,S) -> (Bb*S, E)
    ctx_es = jnp.transpose(ctx, (0, 2, 1)).reshape(Bb, E, S)
    ctx2 = jnp.transpose(ctx_es, (0, 2, 1)).reshape(Bb * S, E)

    # output projection (weight pre-transposed in the wrapper)
    attn_out = jnp.dot(ctx2, wout_ref[...],
                       preferred_element_type=jnp.float32) + bout_ref[...]

    # residual + LayerNorm over E (eps = 1e-5, torch default), fused one-pass stats.
    y = attn_out + x2
    s1 = jnp.sum(y, axis=-1, keepdims=True)
    s2 = jnp.sum(y * y, axis=-1, keepdims=True)
    mean = s1 * inv_e
    var = s2 * inv_e - mean * mean
    y = (y - mean) * jax.lax.rsqrt(var + 1e-5)
    y = y * gamma_ref[...] + beta_ref[...]

    # store channel-major: wrapper's NCHW view is a free reshape, and the store
    # lane width is S (=64) instead of E (=32).
    o_ref[...] = jnp.transpose(y.reshape(Bb, S, E), (0, 2, 1))


def _tensorcores_per_device():
    """2 for chips that expose two TensorCores per device (v7x / megacore), else 1."""
    try:
        kind = jax.devices()[0].device_kind.lower()
    except Exception:
        return 1
    if 'v7' in kind or 'v4' in kind or 'v5p' in kind:
        return 2
    return 1


def _max_block_batch(S, E, num_heads, vmem_budget_bytes):
    """Largest Bb whose per-step working set fits the (conservative) VMEM budget."""
    per_b = 4 * (4 * E * S                 # double-buffered in/out blocks
                 + 16 * E * S              # SE/ES activation temporaries
                 + 2 * num_heads * S * S)  # score / prob tiles
    return max(1, vmem_budget_bytes // per_b)


def _pick_block_batch(B, max_bb, num_tc):
    """Largest divisor of B within the VMEM budget; on multi-TC chips keep the
    number of grid steps a multiple of the core count (single step on 1-TC chips)."""
    for bb in range(min(B, max_bb), 0, -1):
        if B % bb:
            continue
        steps = B // bb
        if num_tc > 1 and B >= num_tc and steps % num_tc:
            continue
        return bb
    return 1


def self_attention_forward(x, params, num_heads, block_batch=None,
                           vmem_budget_bytes=8 * 1024 * 1024):
    """x: (B, C, H, W) float32, C == embed_dim. Returns (B, C, H, W)."""
    B, C, H, W = x.shape
    S = H * W
    E = C
    assert E % num_heads == 0, "embed_dim must be divisible by num_heads"
    assert S <= params['pos_embed'].shape[1], "H*W exceeds pos_embed length"

    # channel-major sequence view: a FREE reshape, no XLA transpose.
    x3 = x.reshape(B, C, S).astype(jnp.float32)

    pos = params['pos_embed'][0, :S, :].astype(jnp.float32)           # (S, E)
    # pre-transpose / pack weights once in the wrapper (constant across steps)
    w_qkv = params['in_proj_weight'].T.astype(jnp.float32)            # (E, 3E)
    b_qkv = params['in_proj_bias'].reshape(1, 3 * E).astype(jnp.float32)
    w_out = params['out_proj_weight'].T.astype(jnp.float32)           # (E, E)
    b_out = params['out_proj_bias'].reshape(1, E).astype(jnp.float32)
    gamma = params['ln_weight'].reshape(1, E).astype(jnp.float32)
    beta = params['ln_bias'].reshape(1, E).astype(jnp.float32)

    num_tc = _tensorcores_per_device()
    if block_batch is None:
        block_batch = _pick_block_batch(
            B, _max_block_batch(S, E, num_heads, vmem_budget_bytes), num_tc)
    Bb = block_batch
    assert B % Bb == 0
    grid = (B // Bb,)

    kernel = functools.partial(_self_attn_kernel, num_heads=num_heads)

    out3 = pl.pallas_call(
        kernel,
        out_shape=jax.ShapeDtypeStruct((B, E, S), jnp.float32),
        grid=grid,
        in_specs=[
            pl.BlockSpec((Bb, E, S), lambda b: (b, 0, 0)),      # x (channel-major)
            pl.BlockSpec((S, E), lambda b: (0, 0)),             # pos
            pl.BlockSpec((E, 3 * E), lambda b: (0, 0)),         # w_qkv (pre-T)
            pl.BlockSpec((1, 3 * E), lambda b: (0, 0)),         # b_qkv
            pl.BlockSpec((E, E), lambda b: (0, 0)),             # w_out (pre-T)
            pl.BlockSpec((1, E), lambda b: (0, 0)),             # b_out
            pl.BlockSpec((1, E), lambda b: (0, 0)),             # gamma
            pl.BlockSpec((1, E), lambda b: (0, 0)),             # beta
        ],
        out_specs=pl.BlockSpec((Bb, E, S), lambda b: (b, 0, 0)),
        compiler_params=pltpu.CompilerParams(
            dimension_semantics=("parallel",),
            vmem_limit_bytes=32 * 1024 * 1024,
        ),
    )(x3, pos, w_qkv, b_qkv, w_out, b_out, gamma, beta)

    # (B, E, S) -> NCHW: free reshape (no transpose needed).
    return out3.reshape(B, C, H, W)


def _reference_forward(x, params, num_heads):
    """Pure-JAX reference with identical math, for a sanity check."""
    B, C, H, W = x.shape
    S, E = H * W, C
    hd = E // num_heads
    xs = jnp.transpose(x.reshape(B, C, S), (0, 2, 1)) + params['pos_embed'][:, :S]
    w_in, b_in = params['in_proj_weight'], params['in_proj_bias']
    q = xs @ w_in[:E].T + b_in[:E]
    k = xs @ w_in[E:2 * E].T + b_in[E:2 * E]
    v = xs @ w_in[2 * E:].T + b_in[2 * E:]
    def split(t):
        return t.reshape(B, S, num_heads, hd).transpose(0, 2, 1, 3)
    qh, kh, vh = split(q), split(k), split(v)
    sc = jnp.einsum('bhqd,bhkd->bhqk', qh, kh) / math.sqrt(hd)
    attn = jax.nn.softmax(sc, axis=-1)
    ctx = jnp.einsum('bhqk,bhkd->bhqd', attn, vh).transpose(0, 2, 1, 3).reshape(B, S, E)
    out = ctx @ params['out_proj_weight'].T + params['out_proj_bias']
    y = out + xs
    mean = y.mean(-1, keepdims=True)
    var = ((y - mean) ** 2).mean(-1, keepdims=True)
    y = (y - mean) / jnp.sqrt(var + 1e-5) * params['ln_weight'] + params['ln_bias']
    return jnp.transpose(y, (0, 2, 1)).reshape(B, C, H, W)


if __name__ == "__main__":
    # shapes consistent with the module: pos_embed has 64 positions -> H=W=8
    B, E, H, W = 2, 32, 8, 8
    NUM_HEADS = 4

    key = jax.random.PRNGKey(0)
    k_x, k_pos, k_win, k_bin, k_wout, k_bout = jax.random.split(key, 6)

    params = {
        'pos_embed': jax.random.normal(k_pos, (1, 64, E), jnp.float32),
        'in_proj_weight': 0.1 * jax.random.normal(k_win, (3 * E, E), jnp.float32),
        'in_proj_bias': 0.05 * jax.random.normal(k_bin, (3 * E,), jnp.float32),
        'out_proj_weight': 0.1 * jax.random.normal(k_wout, (E, E), jnp.float32),
        'out_proj_bias': 0.05 * jax.random.normal(k_bout, (E,), jnp.float32),
        'ln_weight': jnp.ones((E,), jnp.float32),
        'ln_bias': jnp.zeros((E,), jnp.float32),
    }

    x = jax.random.normal(k_x, (B, E, H, W), jnp.float32)

    out = self_attention_forward(x, params, NUM_HEADS)
    out = jax.block_until_ready(out)

    ref = jax.block_until_ready(_reference_forward(x, params, NUM_HEADS))
    # tolerance loosened slightly: approx (EUP) reciprocal in the softmax and
    # single-pass LayerNorm variance differ from the two-pass f32 reference.
    np.testing.assert_allclose(np.asarray(out), np.asarray(ref), rtol=1e-2, atol=1e-2)

    print("KERNEL_OK")
</pallas_src>

<mosaic_0001>
module attributes {stable_mosaic.version = 11 : i64} {
  func.func @_self_attn_kernel(%arg0: i32, %arg1: memref<2x32x64xf32, #tpu.memory_space<vmem>>, %arg2: memref<64x32xf32, #tpu.memory_space<vmem>>, %arg3: memref<32x96xf32, #tpu.memory_space<vmem>>, %arg4: memref<1x96xf32, #tpu.memory_space<vmem>>, %arg5: memref<32x32xf32, #tpu.memory_space<vmem>>, %arg6: memref<1x32xf32, #tpu.memory_space<vmem>>, %arg7: memref<1x32xf32, #tpu.memory_space<vmem>>, %arg8: memref<1x32xf32, #tpu.memory_space<vmem>>, %arg9: memref<2x32x64xf32, #tpu.memory_space<vmem>>) attributes {dimension_semantics = [#tpu.dimension_semantics<parallel>], iteration_bounds = array<i64: 1>, scalar_prefetch = 0 : i64, scratch_operands = 0 : i64, tpu.core_type = #tpu.core_type<tc>, window_params = [{transform_indices = @transform_0, window_bounds = array<i64: 2, 32, 64>}, {pipeline_mode = #tpu.pipeline_mode<synchronous>, transform_indices = @transform_1, window_bounds = array<i64: 64, 32>}, {pipeline_mode = #tpu.pipeline_mode<synchronous>, transform_indices = @transform_2, window_bounds = array<i64: 32, 96>}, {pipeline_mode = #tpu.pipeline_mode<synchronous>, transform_indices = @transform_3, window_bounds = array<i64: 1, 96>}, {pipeline_mode = #tpu.pipeline_mode<synchronous>, transform_indices = @transform_4, window_bounds = array<i64: 32, 32>}, {pipeline_mode = #tpu.pipeline_mode<synchronous>, transform_indices = @transform_5, window_bounds = array<i64: 1, 32>}, {pipeline_mode = #tpu.pipeline_mode<synchronous>, transform_indices = @transform_6, window_bounds = array<i64: 1, 32>}, {pipeline_mode = #tpu.pipeline_mode<synchronous>, transform_indices = @transform_7, window_bounds = array<i64: 1, 32>}, {transform_indices = @transform_8, window_bounds = array<i64: 2, 32, 64>}]} {
    %c0 = arith.constant 0 : index
    %c0_0 = arith.constant 0 : index
    %c0_1 = arith.constant 0 : index
    %0 = vector.load %arg1[%c0, %c0_0, %c0_1] : memref<2x32x64xf32, #tpu.memory_space<vmem>>, vector<2x32x64xf32>
    %1 = tpu.transpose %0, [0, 2, 1] : vector<2x32x64xf32> -> vector<2x64x32xf32>
    %c0_2 = arith.constant 0 : index
    %c0_3 = arith.constant 0 : index
    %2 = vector.load %arg2[%c0_2, %c0_3] : memref<64x32xf32, #tpu.memory_space<vmem>>, vector<64x32xf32>
    %3 = vector.shape_cast %2 : vector<64x32xf32> to vector<1x64x32xf32>
    %4 = vector.broadcast %3 : vector<1x64x32xf32> to vector<2x64x32xf32>
    %5 = arith.addf %1, %4 : vector<2x64x32xf32>
    %6 = vector.shape_cast %5 : vector<2x64x32xf32> to vector<128x32xf32>
    %c0_4 = arith.constant 0 : index
    %c0_5 = arith.constant 0 : index
    %7 = vector.load %arg3[%c0_4, %c0_5] : memref<32x96xf32, #tpu.memory_space<vmem>>, vector<32x96xf32>
    %cst = arith.constant dense<0.000000e+00> : vector<128x96xf32>
    %8 = tpu.matmul %6, %7, %cst {dimension_numbers = #tpu.dot_dimension_numbers<[1], [0], [0], [1], [0, 0, 1, 1], [], []>} : vector<128x32xf32>, vector<32x96xf32>, vector<128x96xf32> -> vector<128x96xf32>
    %c0_6 = arith.constant 0 : index
    %c0_7 = arith.constant 0 : index
    %9 = vector.load %arg4[%c0_6, %c0_7] : memref<1x96xf32, #tpu.memory_space<vmem>>, vector<1x96xf32>
    %10 = vector.broadcast %9 : vector<1x96xf32> to vector<128x96xf32>
    %11 = arith.addf %8, %10 : vector<128x96xf32>
    %12 = vector.shape_cast %11 : vector<128x96xf32> to vector<2x64x96xf32>
    %13 = tpu.transpose %12, [0, 2, 1] : vector<2x64x96xf32> -> vector<2x96x64xf32>
    %14 = vector.extract_strided_slice %13 {offsets = [0, 0, 0], sizes = [2, 32, 64], strides = [1, 1, 1]} : vector<2x96x64xf32> to vector<2x32x64xf32>
    %15 = vector.shape_cast %14 : vector<2x32x64xf32> to vector<8x8x64xf32>
    %16 = tpu.transpose %15, [0, 2, 1] : vector<8x8x64xf32> -> vector<8x64x8xf32>
    %17 = vector.extract_strided_slice %13 {offsets = [0, 32, 0], sizes = [2, 32, 64], strides = [1, 1, 1]} : vector<2x96x64xf32> to vector<2x32x64xf32>
    %18 = vector.shape_cast %17 : vector<2x32x64xf32> to vector<8x8x64xf32>
    %19 = tpu.transpose %18, [0, 2, 1] : vector<8x8x64xf32> -> vector<8x64x8xf32>
    %20 = vector.extract_strided_slice %13 {offsets = [0, 64, 0], sizes = [2, 32, 64], strides = [1, 1, 1]} : vector<2x96x64xf32> to vector<2x32x64xf32>
    %21 = vector.shape_cast %20 : vector<2x32x64xf32> to vector<8x8x64xf32>
    %22 = tpu.transpose %21, [0, 2, 1] : vector<8x8x64xf32> -> vector<8x64x8xf32>
    "tpu.trace_start"() <{level = 10 : i32, message = "gqd,gkd->gqk"}> : () -> ()
    %cst_8 = arith.constant dense<0.000000e+00> : vector<8x64x64xf32>
    %23 = tpu.matmul %16, %19, %cst_8 {dimension_numbers = #tpu.dot_dimension_numbers<[2], [2], [1], [1], [0, 0, 0, 1, 1, 1], [0], [0]>} : vector<8x64x8xf32>, vector<8x64x8xf32>, vector<8x64x64xf32> -> vector<8x64x64xf32>
    "tpu.trace_stop"() : () -> ()
    %cst_9 = arith.constant 0.353553385 : f32
    %24 = vector.broadcast %cst_9 : f32 to vector<8x64x64xf32>
    %25 = arith.mulf %23, %24 : vector<8x64x64xf32>
    %cst_10 = arith.constant dense<0xFF800000> : vector<8x64xf32>
    %26 = vector.multi_reduction <maximumf>, %25, %cst_10 [2] : vector<8x64x64xf32> to vector<8x64xf32>
    %27 = vector.shape_cast %26 : vector<8x64xf32> to vector<8x64x1xf32>
    %28 = vector.broadcast %27 : vector<8x64x1xf32> to vector<8x64x64xf32>
    %29 = arith.subf %25, %28 : vector<8x64x64xf32>
    %30 = math.exp %29 : vector<8x64x64xf32>
    %cst_11 = arith.constant dense<0.000000e+00> : vector<8x64xf32>
    %31 = vector.multi_reduction <add>, %30, %cst_11 [2] : vector<8x64x64xf32> to vector<8x64xf32>
    %32 = vector.shape_cast %31 : vector<8x64xf32> to vector<8x64x1xf32>
    %33 = tpu.reciprocal %32 {approx = true} : vector<8x64x1xf32> -> vector<8x64x1xf32>
    %34 = vector.broadcast %33 : vector<8x64x1xf32> to vector<8x64x64xf32>
    %35 = arith.mulf %30, %34 : vector<8x64x64xf32>
    "tpu.trace_start"() <{level = 10 : i32, message = "gqk,gkd->gqd"}> : () -> ()
    %cst_12 = arith.constant dense<0.000000e+00> : vector<8x64x8xf32>
    %36 = tpu.matmul %35, %22, %cst_12 {dimension_numbers = #tpu.dot_dimension_numbers<[2], [1], [1], [2], [0, 0, 0, 1, 1, 2], [0], [0]>} : vector<8x64x64xf32>, vector<8x64x8xf32>, vector<8x64x8xf32> -> vector<8x64x8xf32>
    "tpu.trace_stop"() : () -> ()
    %37 = tpu.transpose %36, [0, 2, 1] : vector<8x64x8xf32> -> vector<8x8x64xf32>
    %38 = vector.shape_cast %37 : vector<8x8x64xf32> to vector<2x32x64xf32>
    %39 = tpu.transpose %38, [0, 2, 1] : vector<2x32x64xf32> -> vector<2x64x32xf32>
    %40 = vector.shape_cast %39 : vector<2x64x32xf32> to vector<128x32xf32>
    %c0_13 = arith.constant 0 : index
    %c0_14 = arith.constant 0 : index
    %41 = vector.load %arg5[%c0_13, %c0_14] : memref<32x32xf32, #tpu.memory_space<vmem>>, vector<32x32xf32>
    %cst_15 = arith.constant dense<0.000000e+00> : vector<128x32xf32>
    %42 = tpu.matmul %40, %41, %cst_15 {dimension_numbers = #tpu.dot_dimension_numbers<[1], [0], [0], [1], [0, 0, 1, 1], [], []>} : vector<128x32xf32>, vector<32x32xf32>, vector<128x32xf32> -> vector<128x32xf32>
    %c0_16 = arith.constant 0 : index
    %c0_17 = arith.constant 0 : index
    %43 = vector.load %arg6[%c0_16, %c0_17] : memref<1x32xf32, #tpu.memory_space<vmem>>, vector<1x32xf32>
    %44 = vector.broadcast %43 : vector<1x32xf32> to vector<128x32xf32>
    %45 = arith.addf %42, %44 : vector<128x32xf32>
    %46 = arith.addf %45, %6 : vector<128x32xf32>
    %cst_18 = arith.constant dense<0.000000e+00> : vector<128xf32>
    %47 = vector.multi_reduction <add>, %46, %cst_18 [1] : vector<128x32xf32> to vector<128xf32>
    %48 = vector.shape_cast %47 : vector<128xf32> to vector<128x1xf32>
    %49 = arith.mulf %46, %46 : vector<128x32xf32>
    %cst_19 = arith.constant dense<0.000000e+00> : vector<128xf32>
    %50 = vector.multi_reduction <add>, %49, %cst_19 [1] : vector<128x32xf32> to vector<128xf32>
    %51 = vector.shape_cast %50 : vector<128xf32> to vector<128x1xf32>
    %cst_20 = arith.constant 3.125000e-02 : f32
    %52 = vector.broadcast %cst_20 : f32 to vector<128x1xf32>
    %53 = arith.mulf %48, %52 : vector<128x1xf32>
    %cst_21 = arith.constant 3.125000e-02 : f32
    %54 = vector.broadcast %cst_21 : f32 to vector<128x1xf32>
    %55 = arith.mulf %51, %54 : vector<128x1xf32>
    %56 = arith.mulf %53, %53 : vector<128x1xf32>
    %57 = arith.subf %55, %56 : vector<128x1xf32>
    %58 = vector.broadcast %53 : vector<128x1xf32> to vector<128x32xf32>
    %59 = arith.subf %46, %58 : vector<128x32xf32>
    %cst_22 = arith.constant 9.99999974E-6 : f32
    %60 = vector.broadcast %cst_22 : f32 to vector<128x1xf32>
    %61 = arith.addf %57, %60 : vector<128x1xf32>
    %62 = math.rsqrt %61 : vector<128x1xf32>
    %63 = vector.broadcast %62 : vector<128x1xf32> to vector<128x32xf32>
    %64 = arith.mulf %59, %63 : vector<128x32xf32>
    %c0_23 = arith.constant 0 : index
    %c0_24 = arith.constant 0 : index
    %65 = vector.load %arg7[%c0_23, %c0_24] : memref<1x32xf32, #tpu.memory_space<vmem>>, vector<1x32xf32>
    %66 = vector.broadcast %65 : vector<1x32xf32> to vector<128x32xf32>
    %67 = arith.mulf %64, %66 : vector<128x32xf32>
    %c0_25 = arith.constant 0 : index
    %c0_26 = arith.constant 0 : index
    %68 = vector.load %arg8[%c0_25, %c0_26] : memref<1x32xf32, #tpu.memory_space<vmem>>, vector<1x32xf32>
    %69 = vector.broadcast %68 : vector<1x32xf32> to vector<128x32xf32>
    %70 = arith.addf %67, %69 : vector<128x32xf32>
    %71 = vector.shape_cast %70 : vector<128x32xf32> to vector<2x64x32xf32>
    %72 = tpu.transpose %71, [0, 2, 1] : vector<2x64x32xf32> -> vector<2x32x64xf32>
    %c0_27 = arith.constant 0 : index
    %c0_28 = arith.constant 0 : index
    %c0_29 = arith.constant 0 : index
    %73 = vector.load %arg9[%c0_27, %c0_28, %c0_29] : memref<2x32x64xf32, #tpu.memory_space<vmem>>, vector<2x32x64xf32>
    tpu.vector_store %arg9[%c0_27, %c0_28, %c0_29], %72 {strides = array<i32>} : memref<2x32x64xf32, #tpu.memory_space<vmem>>, vector<2x32x64xf32>,
    return
  }
  func.func @transform_0(%arg0: i32) -> (i32, i32, i32) {
    %c0_i32 = arith.constant 0 : i32
    %c0_i32_0 = arith.constant 0 : i32
    %c0_i32_1 = arith.constant 0 : i32
    return %arg0, %c0_i32, %c0_i32_0 : i32, i32, i32
  }
  func.func @transform_1(%arg0: i32) -> (i32, i32) {
    %c0_i32 = arith.constant 0 : i32
    %c0_i32_0 = arith.constant 0 : i32
    %c0_i32_1 = arith.constant 0 : i32
    return %c0_i32, %c0_i32_0 : i32, i32
  }
  func.func @transform_2(%arg0: i32) -> (i32, i32) {
    %c0_i32 = arith.constant 0 : i32
    %c0_i32_0 = arith.constant 0 : i32
    %c0_i32_1 = arith.constant 0 : i32
    return %c0_i32, %c0_i32_0 : i32, i32
  }
  func.func @transform_3(%arg0: i32) -> (i32, i32) {
    %c0_i32 = arith.constant 0 : i32
    %c0_i32_0 = arith.constant 0 : i32
    %c0_i32_1 = arith.constant 0 : i32
    return %c0_i32, %c0_i32_0 : i32, i32
  }
  func.func @transform_4(%arg0: i32) -> (i32, i32) {
    %c0_i32 = arith.constant 0 : i32
    %c0_i32_0 = arith.constant 0 : i32
    %c0_i32_1 = arith.constant 0 : i32
    return %c0_i32, %c0_i32_0 : i32, i32
  }
  func.func @transform_5(%arg0: i32) -> (i32, i32) {
    %c0_i32 = arith.constant 0 : i32
    %c0_i32_0 = arith.constant 0 : i32
    %c0_i32_1 = arith.constant 0 : i32
    return %c0_i32, %c0_i32_0 : i32, i32
  }
  func.func @transform_6(%arg0: i32) -> (i32, i32) {
    %c0_i32 = arith.constant 0 : i32
    %c0_i32_0 = arith.constant 0 : i32
    %c0_i32_1 = arith.constant 0 : i32
    return %c0_i32, %c0_i32_0 : i32, i32
  }
  func.func @transform_7(%arg0: i32) -> (i32, i32) {
    %c0_i32 = arith.constant 0 : i32
    %c0_i32_0 = arith.constant 0 : i32
    %c0_i32_1 = arith.constant 0 : i32
    return %c0_i32, %c0_i32_0 : i32, i32
  }
  func.func @transform_8(%arg0: i32) -> (i32, i32, i32) {
    %c0_i32 = arith.constant 0 : i32
    %c0_i32_0 = arith.constant 0 : i32
    %c0_i32_1 = arith.constant 0 : i32
    return %arg0, %c0_i32, %c0_i32_0 : i32, i32, i32
  }
}

</mosaic_0001>

<bundles_post_ra>
// kernel: tpu_custom_call.1
= control target key start
LH: loop header
LB: loop body
LE: loop exit
PB: predicated region body
PF: predicated region fallthrough
CT: control target
= control target key end

     0   :  { %13 = vsyncpa [#allocation3], 0  ;;  %s6733_s0 = inlined_call_operand.vmem [shape: f32[2,32,64], index: 0, kind: input, shape index: {}]   ;;  %s6734_s1 = inlined_call_operand.vmem [shape: f32[64,32], index: 1, kind: input, shape index: {}]   ;;  %s6735_s2 = inlined_call_operand.vmem [shape: f32[32,96], index: 2, kind: input, shape index: {}]   ;;  %s6736_s3 = inlined_call_operand.vmem [shape: f32[1,96], index: 3, kind: input, shape index: {}]   ;;  %s6737_s4 = inlined_call_operand.hbm [shape: f32[32,32], index: 4, kind: input, shape index: {}]   ;;  %s6738_s5 = inlined_call_operand.vmem [shape: f32[1,32], index: 5, kind: input, shape index: {}]   ;;  %s6739_s6 = inlined_call_operand.vmem [shape: f32[1,32], index: 6, kind: input, shape index: {}]   ;;  %s6740_s7 = inlined_call_operand.vmem [shape: f32[1,32], index: 7, kind: input, shape index: {}]   ;;  %s6741_s8 = inlined_call_operand.hbm [shape: f32[2,32,64], index: 8, kind: output, shape index: {}]  }
   0x1   :  { %14 = vsyncpa [#allocation4], 0  ;;  %s5441_s27 = smov [#allocation2]   ;;  %s5393_s9 = scalar_lea.hbm %s6737_s4, 512 }
   0x2   :  { %s28_s28 = sshll.u32 %s5441_s27, 4  ;;  %p5394_p0 = scmp.ne.s32.totalorder %s6737_s4, %s5393_s9  ;;  %s29_s28 = int_to_ptr.vmem [resolvable:$true] %s28_s28 }
   0x3   :  { %p5397_p1 = scmp.lt.u32.totalorder %s5393_s9, %s6737_s4 }
   0x5   :  { %p5399_p2 = pnand %p5397_p1, %p5394_p0 }
   0x7   :  { %5402 = shalt.err (!%p5399_p2)
}
   0x8   :  { %s5403_s14 = scalar_lea.vmem %s29_s28, 512  ;;  %p5408_p4 = scmp.lt.s32.totalorder %s29_s28, %s29_s28 }
   0x9   :  { %p5404_p3 = scmp.ne.s32.totalorder %s29_s28, %s5403_s14  ;;  %p5409_p5 = scmp.lt.s32.totalorder %s5403_s14, %s5403_s14 }
   0xb   :  { %p5410_p6 = por %p5409_p5, %p5408_p4 }
   0xd   :  { %p5411_p7 = pnand %p5410_p6, %p5404_p3 }
   0xf   :  { %5414 = shalt.err (!%p5411_p7)
}
  0x10   :  { %s5442_s15 = smov 128   ;;  %s5443_s16 = smov 8  }
  0x11   :  { %34 = dma.hbm_to_vmem [thread:$0]  %s6737_s4, 512, %s29_s28, [#allocation3], %s5442_s15, %s5442_s15, %s5443_s16  }
  0x12   :  { %5437 = dma.done.wait [#allocation3], 512  }
  0x13   :  { %5438 = vsyncadd [#allocation3], 4294966784  ;;  %v44_v0 = vld [vmem:[%s6733_s0] sm:$0xff]  ;;  %v45_v2 = vld [vmem:[%s6733_s0 + $0x8] sm:$0xff]  ;;  %vm151_vm0 = vcmask 261120   ;;  %vm665_vm1 = vcmask 64512  }
  0x14   :  { %52 = vxpose.xlu0.b32.start [1/4] (short) (narrow) %v44_v0, 64  ;;  %v48_v1 = vld [vmem:[%s6733_s0 + $0x20] sm:$0xff]  ;;  %v49_v4 = vld [vmem:[%s6733_s0 + $0x28] sm:$0xff]  ;;  %v142_v6 = vld [vmem:[%s6735_s2 + $0x10] sm:$0xff]  ;;  %vm1762_vm2 = vcmask 523264  }
  0x15   :  { %84 = vxpose.xlu1.b32.start [1/4] (short) (narrow) %v48_v1, 64  ;;  %v140_v3 = vld [vmem:[%s6735_s2] sm:$0xff]  ;;  %v141_v5 = vld [vmem:[%s6735_s2 + $0x8] sm:$0xff]  ;;  %v143_v8 = vld [vmem:[%s6735_s2 + $0x18] sm:$0xff] }
  0x16   :  { %v5082_v7 = vpack.c.bf16 %v141_v5, %v140_v3  ;;  %v5086_v9 = vpack.c.bf16 %v143_v8, %v142_v6  ;;  %v46_v10 = vld [vmem:[%s6733_s0 + $0x10] sm:$0xff]  ;;  %v47_v12 = vld [vmem:[%s6733_s0 + $0x18] sm:$0xff]  ;;  %v116_v14 = vld [vmem:[%s6734_s1] sm:$0xff] }
  0x17   :  { %v50_v11 = vld [vmem:[%s6733_s0 + $0x30] sm:$0xff]  ;;  %v51_v13 = vld [vmem:[%s6733_s0 + $0x38] sm:$0xff]  ;;  %v117_v18 = vld [vmem:[%s6734_s1 + $0x8] sm:$0xff] }
  0x18   :  { %53 = vxpose.xlu0.b32.cont [2/4] (short) (narrow) %v45_v2, 64  ;;  %5083 = vmatprep.subr.bf16.mxu0 %v5082_v7  ;;  %v118_v22 = vld [vmem:[%s6734_s1 + $0x10] sm:$0xff]  ;;  %v119_v25 = vld [vmem:[%s6734_s1 + $0x18] sm:$0xff]  ;;  %v120_v29 = vld [vmem:[%s6734_s1 + $0x20] sm:$0xff] }
  0x19   :  { %85 = vxpose.xlu1.b32.cont [2/4] (short) (narrow) %v49_v4, 64  ;;  %5085 = vmatpush3.bf16.msra.mxu0 %v5082_v7  ;;  %v121_v33 = vld [vmem:[%s6734_s1 + $0x28] sm:$0xff]  ;;  %v122_v36 = vld [vmem:[%s6734_s1 + $0x30] sm:$0xff]  ;;  %v123_v40 = vld [vmem:[%s6734_s1 + $0x38] sm:$0xff] }
  0x1a   :  { %5087 = vmatprep.subr.bf16.mxu0 %v5086_v9  ;;  %v4438_v54 = vld [vmem:[%s6736_s3] ss:$0 sm:$0xff] }
  0x1c   :  { %54 = vxpose.xlu0.b32.cont [3/4] (short) (narrow) %v46_v10, 64 }
  0x1d   :  { %86 = vxpose.xlu1.b32.cont [3/4] (short) (narrow) %v50_v11, 64  ;;  %5089 = vmatpush3.bf16.msra.mxu0 %v5086_v9 }
  0x20   :  { %55 = vxpose.xlu0.b32.end [4/4] (short) (narrow) %v47_v12, 64 }
  0x21   :  { %87 = vxpose.xlu1.b32.end [4/4] (short) (narrow) %v51_v13, 64 }
  0x94   :  { %v68_v15 = vpop.trf.xlu0 }
  0x95   :  { %v5544_v16 = vadd.f32 %v116_v14, %v68_v15  ;;  %v100_v17 = vpop.trf.xlu1 }
  0x96   :  { %v5593_v42 = vadd.f32 %v116_v14, %v100_v17 }
  0x97   :  { %6791 = vst [vmem:[#allocation8_spill] sm:$0xff] %v5544_v16  ;;  %4802 = vmatprep.mubr.msk.f32.mxu0 %vm151_vm0, %v5544_v16 }
  0x98   :  { %v69_v19 = vpop.trf.xlu0  ;;  %6798 = vst [vmem:[#allocation15_spill] sm:$0xff] %v5593_v42 }
  0x99   :  { %v5551_v20 = vadd.f32 %v117_v18, %v69_v19  ;;  %v101_v21 = vpop.trf.xlu1 }
  0x9a   :  { %v5599_v45 = vadd.f32 %v117_v18, %v101_v21 }
  0x9b   :  { %6792 = vst [vmem:[#allocation9_spill] sm:$0xff] %v5551_v20  ;;  %4803 = vmatmul.mubr.msk.f32.vlgmr.msra.gmra.mrb[0].mxu0 %vm151_vm0, %v5551_v20 }
  0x9c   :  { %v70_v23 = vpop.trf.xlu0  ;;  %6800 = vst [vmem:[#allocation17_spill] sm:$0xff] %v5599_v45 }
  0x9d   :  { %v5558_v24 = vadd.f32 %v118_v22, %v70_v23  ;;  %v102_v26 = vpop.trf.xlu1 }
  0x9e   :  { %v5603_v46 = vadd.f32 %v118_v22, %v102_v26 }
  0x9f   :  { %6793 = vst [vmem:[#allocation10_spill] sm:$0xff] %v5558_v24  ;;  %4805 = vmatprep.mubr.msk.f32.mxu0 %vm151_vm0, %v5558_v24 }
  0xa0   :  { %v71_v27 = vpop.trf.xlu0  ;;  %6801 = vst [vmem:[#allocation18_spill] sm:$0xff] %v5603_v46 }
  0xa1   :  { %v5565_v28 = vadd.f32 %v119_v25, %v71_v27  ;;  %v103_v31 = vpop.trf.xlu1 }
  0xa2   :  { %v5607_v48 = vadd.f32 %v119_v25, %v103_v31 }
  0xa3   :  { %6794 = vst [vmem:[#allocation11_spill] sm:$0xff] %v5565_v28  ;;  %4806 = vmatmul.mubr.msk.f32.gmra.mrb[2].mxu0 %vm151_vm0, %v5565_v28 }
  0xa4   :  { %v72_v30 = vpop.trf.xlu0  ;;  %6802 = vst [vmem:[#allocation19_spill] sm:$0xff] %v5607_v48 }
  0xa5   :  { %v5572_v32 = vadd.f32 %v120_v29, %v72_v30  ;;  %v104_v37 = vpop.trf.xlu1 }
  0xa6   :  { %v5611_v49 = vadd.f32 %v120_v29, %v104_v37 }
  0xa7   :  { %6795 = vst [vmem:[#allocation12_spill] sm:$0xff] %v5572_v32  ;;  %4808 = vmatprep.mubr.msk.f32.mxu0 %vm151_vm0, %v5572_v32 }
  0xa8   :  { %v73_v34 = vpop.trf.xlu0  ;;  %6803 = vst [vmem:[#allocation20_spill] sm:$0xff] %v5611_v49 }
  0xa9   :  { %v5579_v35 = vadd.f32 %v121_v33, %v73_v34  ;;  %v105_v43 = vpop.trf.xlu1 }
  0xaa   :  { %v5615_v50 = vadd.f32 %v121_v33, %v105_v43 }
  0xab   :  { %6796 = vst [vmem:[#allocation13_spill] sm:$0xff] %v5579_v35  ;;  %4809 = vmatmul.mubr.msk.f32.gmra.mrb[4].mxu0 %vm151_vm0, %v5579_v35 }
  0xac   :  { %v74_v38 = vpop.trf.xlu0  ;;  %6804 = vst [vmem:[#allocation21_spill] sm:$0xff] %v5615_v50 }
  0xad   :  { %v5586_v39 = vadd.f32 %v122_v36, %v74_v38  ;;  %v106_v47 = vpop.trf.xlu1 }
  0xae   :  { %v5619_v51 = vadd.f32 %v122_v36, %v106_v47 }
  0xaf   :  { %6797 = vst [vmem:[#allocation14_spill] sm:$0xff] %v5586_v39  ;;  %4811 = vmatprep.mubr.msk.f32.mxu0 %vm151_vm0, %v5586_v39 }
  0xb0   :  { %v75_v41 = vpop.trf.xlu0  ;;  %6805 = vst [vmem:[#allocation22_spill] sm:$0xff] %v5619_v51 }
  0xb1   :  { %v5595_v44 = vadd.f32 %v123_v40, %v75_v41  ;;  %v107_v52 = vpop.trf.xlu1 }
  0xb2   :  { %v5623_v53 = vadd.f32 %v123_v40, %v107_v52 }
  0xb3   :  { %6799 = vst [vmem:[#allocation16_spill] sm:$0xff] %v5595_v44  ;;  %4812 = vmatmul.mubr.msk.f32.gmra.mrb[6].mxu0 %vm151_vm0, %v5595_v44 }
  0xb4   :  { %4814 = vmatprep.mubr.msk.f32.mxu0 %vm151_vm0, %v5593_v42  ;;  %6806 = vst [vmem:[#allocation23_spill] sm:$0xff] %v5623_v53 }
  0xb7   :  { %4815 = vmatmul.mubr.msk.f32.gmra.mrb[8].mxu0 %vm151_vm0, %v5599_v45 }
  0xb8   :  { %4817 = vmatprep.mubr.msk.f32.mxu0 %vm151_vm0, %v5603_v46 }
  0xbb   :  { %4818 = vmatmul.mubr.msk.f32.gmra.mrb[10].mxu0 %vm151_vm0, %v5607_v48 }
  0xbc   :  { %4820 = vmatprep.mubr.msk.f32.mxu0 %vm151_vm0, %v5611_v49 }
  0xbf   :  { %4821 = vmatmul.mubr.msk.f32.gmra.mrb[12].mxu0 %vm151_vm0, %v5615_v50 }
  0xc0   :  { %4823 = vmatprep.mubr.msk.f32.mxu0 %vm151_vm0, %v5619_v51 }
  0xc3   :  { %4824 = vmatmul.mubr.msk.f32.gmra.mrb[14].mxu0 %vm151_vm0, %v5623_v53 }
 0x16e   :  { %v4804_v55 = vpop.f32.mrb[0].mxu0 }
 0x16f   :  { %v266_v56 = vpop.f32.mrb[1].mxu0  ;;  %v272_v58 = vadd.f32 %v4804_v55, %v4438_v54 }
 0x170   :  { %v267_v57 = vadd.f32 %v4438_v54, %v266_v56 }
 0x172   :  { %345 = vxpose.xlu0.b32.start [1/8] (short) (narrow) %v267_v57, 96 }
 0x176   :  { %346 = vxpose.xlu0.b32.cont [2/8] (short) (narrow) %v272_v58, 96  ;;  %v4807_v59 = vpop.f32.mrb[2].mxu0 }
 0x177   :  { %v276_v60 = vpop.f32.mrb[3].mxu0  ;;  %v282_v62 = vadd.f32 %v4807_v59, %v4438_v54 }
 0x178   :  { %v277_v61 = vadd.f32 %v4438_v54, %v276_v60 }
 0x17a   :  { %347 = vxpose.xlu0.b32.cont [3/8] (short) (narrow) %v277_v61, 96 }
 0x17e   :  { %348 = vxpose.xlu0.b32.cont [4/8] (short) (narrow) %v282_v62, 96  ;;  %v4810_v63 = vpop.f32.mrb[4].mxu0 }
 0x17f   :  { %v286_v0 = vpop.f32.mrb[5].mxu0  ;;  %v292_v2 = vadd.f32 %v4810_v63, %v4438_v54 }
 0x180   :  { %v287_v1 = vadd.f32 %v4438_v54, %v286_v0 }
 0x182   :  { %349 = vxpose.xlu0.b32.cont [5/8] (short) (narrow) %v287_v1, 96 }
 0x186   :  { %350 = vxpose.xlu0.b32.cont [6/8] (short) (narrow) %v292_v2, 96  ;;  %v4813_v3 = vpop.f32.mrb[6].mxu0 }
 0x187   :  { %v296_v4 = vpop.f32.mrb[7].mxu0  ;;  %v302_v8 = vadd.f32 %v4813_v3, %v4438_v54 }
 0x188   :  { %v297_v5 = vadd.f32 %v4438_v54, %v296_v4 }
 0x18a   :  { %351 = vxpose.xlu0.b32.cont [7/8] (short) (narrow) %v297_v5, 96  ;;  %v4816_v6 = vpop.f32.mrb[8].mxu0 }
 0x18b   :  { %v306_v7 = vpop.f32.mrb[9].mxu0  ;;  %v312_v10 = vadd.f32 %v4816_v6, %v4438_v54 }
 0x18c   :  { %v307_v9 = vadd.f32 %v4438_v54, %v306_v7 }
 0x18e   :  { %352 = vxpose.xlu0.b32.end [8/8] (short) (narrow) %v302_v8, 96  ;;  %377 = vxpose.xlu1.b32.start [1/8] (short) (narrow) %v307_v9, 96  ;;  %v4819_v11 = vpop.f32.mrb[10].mxu0 }
 0x18f   :  { %v316_v12 = vpop.f32.mrb[11].mxu0  ;;  %v322_v17 = vadd.f32 %v4819_v11, %v4438_v54 }
 0x190   :  { %v317_v13 = vadd.f32 %v4438_v54, %v316_v12 }
 0x192   :  { %378 = vxpose.xlu1.b32.cont [2/8] (short) (narrow) %v312_v10, 96  ;;  %v4822_v14 = vpop.f32.mrb[12].mxu0 }
 0x193   :  { %v326_v15 = vpop.f32.mrb[13].mxu0  ;;  %v332_v22 = vadd.f32 %v4822_v14, %v4438_v54 }
 0x194   :  { %v327_v21 = vadd.f32 %v4438_v54, %v326_v15 }
 0x196   :  { %379 = vxpose.xlu1.b32.cont [3/8] (short) (narrow) %v317_v13, 96  ;;  %v4825_v18 = vpop.f32.mrb[14].mxu0 }
 0x197   :  { %v336_v19 = vpop.f32.mrb[15].mxu0  ;;  %v342_v25 = vadd.f32 %v4825_v18, %v4438_v54 }
 0x198   :  { %v337_v23 = vadd.f32 %v4438_v54, %v336_v19 }
 0x19a   :  { %380 = vxpose.xlu1.b32.cont [4/8] (short) (narrow) %v322_v17, 96 }
 0x19e   :  { %381 = vxpose.xlu1.b32.cont [5/8] (short) (narrow) %v327_v21, 96 }
 0x1a2   :  { %382 = vxpose.xlu1.b32.cont [6/8] (short) (narrow) %v332_v22, 96 }
 0x1a6   :  { %383 = vxpose.xlu1.b32.cont [7/8] (short) (narrow) %v337_v23, 96 }
 0x1aa   :  { %384 = vxpose.xlu1.b32.end [8/8] (short) (narrow) %v342_v25, 96 }
 0x1f2   :  { %v361_v26 = vpop.trf.xlu0 }
 0x1f3   :  { %409 = vxpose.xlu1.b32.start.end [1/1] (short) (narrow) %v361_v26, 64 }
 0x1f6   :  { %v362_v27 = vpop.trf.xlu0 }
 0x1f7   :  { %441 = vxpose.xlu0.b32.start.end [1/1] (short) (narrow) %v362_v27, 64 }
 0x1fa   :  { %v363_v29 = vpop.trf.xlu0 }
 0x1fe   :  { %v364_v30 = vpop.trf.xlu0 }
 0x202   :  { %v365_v31 = vpop.trf.xlu0 }
 0x203   :  { %4826 = vmatprep.subr.mxu0 %v365_v31  ;;  %5098 = vmatprep.subr.mxu1 %v365_v31 }
 0x204   :  { %4827 = vmatpush3.msra.mxu0 %v365_v31  ;;  %5099 = vmatpush3.msra.mxu1 %v365_v31 }
 0x206   :  { %v366_v33 = vpop.trf.xlu0 }
 0x207   :  { %4840 = vmatprep.subr.mxu1 %v366_v33 }
 0x20a   :  { %v367_v34 = vpop.trf.xlu0 }
 0x20e   :  { %v368_v36 = vpop.trf.xlu0  ;;  %v393_v37 = vpop.trf.xlu1 }
 0x20f   :  { %4868 = vmatprep.subr.mxu0 %v368_v36 }
 0x210   :  { %505 = vxpose.xlu1.b32.start.end [1/1] (short) (narrow) %v364_v30, 64 }
 0x212   :  { %v394_v38 = vpop.trf.xlu1  ;;  %v5640_v56 = vpop.trf.xlu0 }
 0x214   :  { %473 = vxpose.xlu0.b32.start.end [1/1] (short) (narrow) %v363_v29, 64 }
 0x216   :  { %v395_v40 = vpop.trf.xlu1  ;;  %v5644_v58 = vpop.trf.xlu0 }
 0x21a   :  { %v396_v41 = vpop.trf.xlu1  ;;  %v5648_v60 = vpop.trf.xlu0 }
 0x21b   :  { %6810 = vst [vmem:[#allocation27_spill] sm:$0xff] %v5648_v60 }
 0x21e   :  { %v5632_v43 = vpop.trf.xlu1  ;;  %v5652_v62 = vpop.trf.xlu0 }
 0x21f   :  { %6812 = vst [vmem:[#allocation29_spill] sm:$0xff] %v5652_v62 }
 0x222   :  { %v398_v47 = vpop.trf.xlu1 }
 0x226   :  { %v5634_v52 = vpop.trf.xlu1 }
 0x22a   :  { %v5636_v54 = vpop.trf.xlu1 }
 0x22d   :  { %569 = vxpose.xlu1.b32.start.end [1/1] (short) (narrow) %v394_v38, 64 }
 0x22e   :  { %v5638_v55 = vpop.trf.xlu1 }
 0x22f   :  { %6807 = vst [vmem:[#allocation24_spill] sm:$0xff] %v5638_v55 }
 0x231   :  { %537 = vxpose.xlu0.b32.start.end [1/1] (short) (narrow) %v393_v37, 64 }
 0x232   :  { %v5642_v57 = vpop.trf.xlu1 }
 0x233   :  { %6808 = vst [vmem:[#allocation25_spill] sm:$0xff] %v5642_v57 }
 0x236   :  { %v5646_v59 = vpop.trf.xlu1 }
 0x237   :  { %6809 = vst [vmem:[#allocation26_spill] sm:$0xff] %v5646_v59 }
 0x23a   :  { %v5650_v61 = vpop.trf.xlu1 }
 0x23b   :  { %6811 = vst [vmem:[#allocation28_spill] sm:$0xff] %v5650_v61 }
 0x24a   :  { %633 = vxpose.xlu1.b32.start.end [1/1] (short) (narrow) %v396_v41, 64 }
 0x24e   :  { %601 = vxpose.xlu0.b32.start.end [1/1] (short) (narrow) %v395_v40, 64 }
 0x273   :  { %v425_v63 = vpop.trf.xlu1 }
 0x274   :  { %4828 = vmatprep.mubr.msk.f32.mxu0 %vm665_vm1, %v425_v63 }
 0x277   :  { %v426_v0 = vpop.trf.xlu1  ;;  %v457_v1 = vpop.trf.xlu0 }
 0x278   :  { %4829 = vmatmul.mubr.msk.f32.vlgmr.msra.gmra.mrb[16].mxu0 %vm665_vm1, %v426_v0 }
 0x279   :  { %4869 = vmatpush3.msra.mxu0 %v368_v36 }
 0x27a   :  { %4896 = vmatprep.subr.mxu0 %v398_v47 }
 0x27b   :  { %v427_v2 = vpop.trf.xlu1  ;;  %v458_v3 = vpop.trf.xlu0 }
 0x27c   :  { %4831 = vmatprep.mubr.msk.f32.mxu0 %vm665_vm1, %v427_v2 }
 0x27f   :  { %v428_v4 = vpop.trf.xlu1  ;;  %v459_v5 = vpop.trf.xlu0 }
 0x280   :  { %4832 = vmatmul.mubr.msk.f32.gmra.mrb[18].mxu0 %vm665_vm1, %v428_v4 }
 0x283   :  { %v429_v6 = vpop.trf.xlu1  ;;  %v460_v7 = vpop.trf.xlu0 }
 0x284   :  { %4834 = vmatprep.mubr.msk.f32.mxu0 %vm665_vm1, %v429_v6 }
 0x287   :  { %v430_v8 = vpop.trf.xlu1  ;;  %v461_v9 = vpop.trf.xlu0 }
 0x288   :  { %4835 = vmatmul.mubr.msk.f32.gmra.mrb[20].mxu0 %vm665_vm1, %v430_v8 }
 0x28b   :  { %v431_v10 = vpop.trf.xlu1  ;;  %v462_v11 = vpop.trf.xlu0 }
 0x28c   :  { %4837 = vmatprep.mubr.msk.f32.mxu1 %vm665_vm1, %v431_v10 }
 0x28f   :  { %v432_v12 = vpop.trf.xlu1  ;;  %v463_v13 = vpop.trf.xlu0 }
 0x290   :  { %4838 = vmatmul.mubr.msk.f32.vlgmr.msra.gmra.mrb[0].mxu1 %vm665_vm1, %v432_v12 }
 0x291   :  { %4841 = vmatpush3.msra.mxu1 %v366_v33  ;;  %4842 = vmatprep.mubr.msk.f32.mxu1 %vm665_vm1, %v457_v1 }
 0x292   :  { %4854 = vmatprep.subr.mxu1 %v367_v34 }
 0x293   :  { %v521_v14 = vpop.trf.xlu1  ;;  %v464_v15 = vpop.trf.xlu0 }
 0x294   :  { %4843 = vmatmul.mubr.msk.f32.vlgmr.msra.gmra.mrb[2].mxu1 %vm665_vm1, %v458_v3  ;;  %4870 = vmatprep.mubr.msk.f32.mxu0 %vm665_vm1, %v521_v14 }
 0x295   :  { %4855 = vmatpush3.msra.mxu1 %v367_v34  ;;  %4845 = vmatprep.mubr.msk.f32.mxu1 %vm665_vm1, %v459_v5 }
 0x296   :  { %4882 = vmatprep.subr.mxu1 %v5632_v43 }
 0x297   :  { %v522_v17 = vpop.trf.xlu1  ;;  %v489_v18 = vpop.trf.xlu0 }
 0x298   :  { %4846 = vmatmul.mubr.msk.f32.gmra.mrb[4].mxu1 %vm665_vm1, %v460_v7  ;;  %4871 = vmatmul.mubr.msk.f32.vlgmr.msra.gmra.mrb[22].mxu0 %vm665_vm1, %v522_v17 }
 0x299   :  { %4897 = vmatpush3.msra.mxu0 %v398_v47  ;;  %4848 = vmatprep.mubr.msk.f32.mxu1 %vm665_vm1, %v461_v9 }
 0x29a   :  { %4924 = vmatprep.subr.mxu0 %v5636_v54 }
 0x29b   :  { %v523_v19 = vpop.trf.xlu1  ;;  %v490_v21 = vpop.trf.xlu0 }
 0x29c   :  { %4849 = vmatmul.mubr.msk.f32.gmra.mrb[6].mxu1 %vm665_vm1, %v462_v11  ;;  %4873 = vmatprep.mubr.msk.f32.mxu0 %vm665_vm1, %v523_v19 }
 0x29d   :  { %4851 = vmatprep.mubr.msk.f32.mxu1 %vm665_vm1, %v463_v13 }
 0x29f   :  { %v524_v22 = vpop.trf.xlu1  ;;  %v491_v23 = vpop.trf.xlu0 }
 0x2a0   :  { %4852 = vmatmul.mubr.msk.f32.gmra.mrb[8].mxu1 %vm665_vm1, %v464_v15  ;;  %4874 = vmatmul.mubr.msk.f32.gmra.mrb[24].mxu0 %vm665_vm1, %v524_v22 }
 0x2a1   :  { %4856 = vmatprep.mubr.msk.f32.mxu1 %vm665_vm1, %v489_v18 }
 0x2a3   :  { %v525_v25 = vpop.trf.xlu1  ;;  %v492_v26 = vpop.trf.xlu0 }
 0x2a4   :  { %4857 = vmatmul.mubr.msk.f32.vlgmr.msra.gmra.mrb[10].mxu1 %vm665_vm1, %v490_v21  ;;  %4876 = vmatprep.mubr.msk.f32.mxu0 %vm665_vm1, %v525_v25 }
 0x2a5   :  { %4883 = vmatpush3.msra.mxu1 %v5632_v43  ;;  %4859 = vmatprep.mubr.msk.f32.mxu1 %vm665_vm1, %v491_v23 }
 0x2a6   :  { %4910 = vmatprep.subr.mxu1 %v5634_v52 }
 0x2a7   :  { %v526_v27 = vpop.trf.xlu1  ;;  %v493_v29 = vpop.trf.xlu0 }
 0x2a8   :  { %4877 = vmatmul.mubr.msk.f32.gmra.mrb[26].mxu0 %vm665_vm1, %v526_v27  ;;  %4860 = vmatmul.mubr.msk.f32.gmra.mrb[12].mxu1 %vm665_vm1, %v492_v26 }
 0x2a9   :  { %4862 = vmatprep.mubr.msk.f32.mxu1 %vm665_vm1, %v493_v29 }
 0x2ab   :  { %v527_v30 = vpop.trf.xlu1  ;;  %v494_v31 = vpop.trf.xlu0 }
 0x2ac   :  { %4879 = vmatprep.mubr.msk.f32.mxu0 %vm665_vm1, %v527_v30  ;;  %4863 = vmatmul.mubr.msk.f32.gmra.mrb[14].mxu1 %vm665_vm1, %v494_v31 }
 0x2af   :  { %v528_v33 = vpop.trf.xlu1  ;;  %v495_v34 = vpop.trf.xlu0 }
 0x2b0   :  { %4880 = vmatmul.mubr.msk.f32.gmra.mrb[28].mxu0 %vm665_vm1, %v528_v33  ;;  %4865 = vmatprep.mubr.msk.f32.mxu1 %vm665_vm1, %v495_v34 }
 0x2b3   :  { %v585_v36 = vpop.trf.xlu1  ;;  %v496_v37 = vpop.trf.xlu0 }
 0x2b4   :  { %4898 = vmatprep.mubr.msk.f32.mxu0 %vm665_vm1, %v585_v36  ;;  %4866 = vmatmul.mubr.msk.f32.gmra.mrb[16].mxu1 %vm665_vm1, %v496_v37 }
 0x2b7   :  { %v586_v38 = vpop.trf.xlu1  ;;  %v553_v40 = vpop.trf.xlu0 }
 0x2b8   :  { %4899 = vmatmul.mubr.msk.f32.vlgmr.msra.gmra.mrb[30].mxu0 %vm665_vm1, %v586_v38  ;;  %4884 = vmatprep.mubr.msk.f32.mxu1 %vm665_vm1, %v553_v40 }
 0x2b9   :  { %4925 = vmatpush3.msra.mxu0 %v5636_v54 }
 0x2ba   :  { %4952 = vmatprep.subr.msk.mxu0 %vm1762_vm2, %v5644_v58 }
 0x2bb   :  { %v587_v41 = vpop.trf.xlu1  ;;  %v554_v43 = vpop.trf.xlu0 }
 0x2bc   :  { %4885 = vmatmul.mubr.msk.f32.vlgmr.msra.gmra.mrb[18].mxu1 %vm665_vm1, %v554_v43  ;;  %4901 = vmatprep.mubr.msk.f32.mxu0 %vm665_vm1, %v587_v41 }
 0x2bd   :  { %4911 = vmatpush3.msra.mxu1 %v5634_v52 }
 0x2be   :  { %4938 = vmatprep.subr.msk.mxu1 %vm1762_vm2, %v5640_v56 }
 0x2bf   :  { %v588_v47 = vpop.trf.xlu1  ;;  %v555_v63 = vpop.trf.xlu0 }
 0x2c0   :  { %4902 = vmatmul.mubr.msk.f32.gmra.mrb[32].mxu0 %vm665_vm1, %v588_v47  ;;  %4887 = vmatprep.mubr.msk.f32.mxu1 %vm665_vm1, %v555_v63 }
 0x2c3   :  { %v589_v54 = vpop.trf.xlu1  ;;  %v556_v0 = vpop.trf.xlu0 }
 0x2c4   :  { %4904 = vmatprep.mubr.msk.f32.mxu0 %vm665_vm1, %v589_v54  ;;  %4888 = vmatmul.mubr.msk.f32.gmra.mrb[20].mxu1 %vm665_vm1, %v556_v0 }
 0x2c7   :  { %v590_v1 = vpop.trf.xlu1  ;;  %v557_v2 = vpop.trf.xlu0 }
 0x2c8   :  { %4905 = vmatmul.mubr.msk.f32.gmra.mrb[34].mxu0 %vm665_vm1, %v590_v1  ;;  %4890 = vmatprep.mubr.msk.f32.mxu1 %vm665_vm1, %v557_v2 }
 0x2cb   :  { %v591_v52 = vpop.trf.xlu1  ;;  %v558_v3 = vpop.trf.xlu0 }
 0x2cc   :  { %4907 = vmatprep.mubr.msk.f32.mxu0 %vm665_vm1, %v591_v52  ;;  %4891 = vmatmul.mubr.msk.f32.gmra.mrb[22].mxu1 %vm665_vm1, %v558_v3 }
 0x2cf   :  { %v592_v4 = vpop.trf.xlu1  ;;  %v559_v5 = vpop.trf.xlu0 }
 0x2d0   :  { %4908 = vmatmul.mubr.msk.f32.gmra.mrb[36].mxu0 %vm665_vm1, %v592_v4  ;;  %4893 = vmatprep.mubr.msk.f32.mxu1 %vm665_vm1, %v559_v5 }
 0x2d3   :  { %v649_v6 = vpop.trf.xlu1  ;;  %v560_v7 = vpop.trf.xlu0 }
 0x2d4   :  { %4926 = vmatprep.mubr.msk.f32.mxu0 %vm665_vm1, %v649_v6  ;;  %4894 = vmatmul.mubr.msk.f32.gmra.mrb[24].mxu1 %vm665_vm1, %v560_v7 }
 0x2d7   :  { %v650_v8 = vpop.trf.xlu1  ;;  %v617_v9 = vpop.trf.xlu0 }
 0x2d8   :  { %4927 = vmatmul.mubr.msk.f32.vlgmr.msra.gmra.mrb[38].mxu0 %vm665_vm1, %v650_v8  ;;  %4912 = vmatprep.mubr.msk.f32.mxu1 %vm665_vm1, %v617_v9 }
 0x2d9   :  { %4953 = vmatpush3.xpose.msk.msra.mxu0 %vm1762_vm2, %v5644_v58 }
 0x2da   :  { %4980 = vmatprep.subr.msk.mxu0 %vm1762_vm2, %v5652_v62 }
 0x2db   :  { %v618_v10 = vpop.trf.xlu0  ;;  %v651_v11 = vpop.trf.xlu1 }
 0x2dc   :  { %4913 = vmatmul.mubr.msk.f32.vlgmr.msra.gmra.mrb[26].mxu1 %vm665_vm1, %v618_v10  ;;  %4929 = vmatprep.mubr.msk.f32.mxu0 %vm665_vm1, %v651_v11 }
 0x2dd   :  { %4939 = vmatpush3.xpose.msk.msra.mxu1 %vm1762_vm2, %v5640_v56 }
 0x2de   :  { %4966 = vmatprep.subr.msk.mxu1 %vm1762_vm2, %v5648_v60 }
 0x2df   :  { %v652_v12 = vpop.trf.xlu1  ;;  %v619_v13 = vpop.trf.xlu0 }
 0x2e0   :  { %4930 = vmatmul.mubr.msk.f32.gmra.mrb[40].mxu0 %vm665_vm1, %v652_v12  ;;  %4915 = vmatprep.mubr.msk.f32.mxu1 %vm665_vm1, %v619_v13 }
 0x2e3   :  { %v653_v58 = vpop.trf.xlu1  ;;  %v620_v14 = vpop.trf.xlu0 }
 0x2e4   :  { %4932 = vmatprep.mubr.msk.f32.mxu0 %vm665_vm1, %v653_v58  ;;  %4916 = vmatmul.mubr.msk.f32.gmra.mrb[28].mxu1 %vm665_vm1, %v620_v14 }
 0x2e7   :  { %v654_v15 = vpop.trf.xlu1  ;;  %v621_v17 = vpop.trf.xlu0 }
 0x2e8   :  { %4933 = vmatmul.mubr.msk.f32.gmra.mrb[42].mxu0 %vm665_vm1, %v654_v15  ;;  %4918 = vmatprep.mubr.msk.f32.mxu1 %vm665_vm1, %v621_v17 }
 0x2eb   :  { %v655_v56 = vpop.trf.xlu1  ;;  %v622_v18 = vpop.trf.xlu0 }
 0x2ec   :  { %4935 = vmatprep.mubr.msk.f32.mxu0 %vm665_vm1, %v655_v56  ;;  %4919 = vmatmul.mubr.msk.f32.gmra.mrb[30].mxu1 %vm665_vm1, %v622_v18 }
 0x2ef   :  { %v656_v19 = vpop.trf.xlu1  ;;  %v623_v21 = vpop.trf.xlu0 }
 0x2f0   :  { %4936 = vmatmul.mubr.msk.f32.gmra.mrb[44].mxu0 %vm665_vm1, %v656_v19  ;;  %4921 = vmatprep.mubr.msk.f32.mxu1 %vm665_vm1, %v623_v21 }
 0x2f3   :  { %v624_v22 = vpop.trf.xlu0 }
 0x2f4   :  { %4922 = vmatmul.mubr.msk.f32.gmra.mrb[32].mxu1 %vm665_vm1, %v624_v22 }
 0x34b   :  { %v4830_v23 = vpop.f32.mrb[16].mxu0 }
 0x34c   :  { %v5736_v25 = vmul.f32 0.35355338, %v4830_v23  ;;  %v756_v26 = vpop.f32.mrb[17].mxu0 }
 0x34d   :  { %v5738_v27 = vmul.f32 0.35355338, %v756_v26 }
 0x34e   :  { %v1766_v29 = vsel %vm1762_vm2, %v5736_v25, -inf }
 0x34f   :  { %1767 = vmax.xlane.f32.xlu1 %v1766_v29  ;;  %v1763_v30 = vsel %vm1762_vm2, %v5738_v27, -inf }
 0x350   :  { %1764 = vmax.xlane.f32.xlu0 %v1763_v30 }
 0x353   :  { %v4833_v31 = vpop.f32.mrb[18].mxu0 }
 0x354   :  { %v5744_v33 = vmul.f32 0.35355338, %v4833_v31  ;;  %v766_v34 = vpop.f32.mrb[19].mxu0 }
 0x355   :  { %v5746_v36 = vmul.f32 0.35355338, %v766_v34 }
 0x356   :  { %v1772_v37 = vsel %vm1762_vm2, %v5744_v33, -inf }
 0x357   :  { %1773 = vmax.xlane.f32.xlu1 %v1772_v37  ;;  %v1769_v38 = vsel %vm1762_vm2, %v5746_v36, -inf }
 0x358   :  { %1770 = vmax.xlane.f32.xlu0 %v1769_v38 }
 0x35b   :  { %v4836_v40 = vpop.f32.mrb[20].mxu0 }
 0x35c   :  { %v5752_v41 = vmul.f32 0.35355338, %v4836_v40  ;;  %v776_v43 = vpop.f32.mrb[21].mxu0 }
 0x35d   :  { %v5754_v47 = vmul.f32 0.35355338, %v776_v43 }
 0x35e   :  { %v1778_v63 = vsel %vm1762_vm2, %v5752_v41, -inf }
 0x35f   :  { %1779 = vmax.xlane.f32.xlu1 %v1778_v63  ;;  %v1775_v54 = vsel %vm1762_vm2, %v5754_v47, -inf }
 0x360   :  { %1776 = vmax.xlane.f32.xlu0 %v1775_v54 }
 0x363   :  { %v4839_v0 = vpop.f32.mrb[0].mxu1 }
 0x364   :  { %v786_v1 = vpop.f32.mrb[1].mxu1  ;;  %v5764_v9 = vmul.f32 0.35355338, %v4839_v0 }
 0x365   :  { %v5768_v11 = vmul.f32 0.35355338, %v786_v1 }
 0x366   :  { %v1784_v14 = vsel %vm1762_vm2, %v5764_v9, -inf }
 0x367   :  { %v4844_v2 = vpop.f32.mrb[2].mxu1  ;;  %v1781_v17 = vsel %vm1762_vm2, %v5768_v11, -inf }
 0x368   :  { %v885_v52 = vpop.f32.mrb[3].mxu1  ;;  %v5778_v21 = vmul.f32 0.35355338, %v4844_v2 }
 0x369   :  { %v5796_v1 = vmul.f32 0.35355338, %v885_v52 }
 0x36a   :  { %v1790_v31 = vsel %vm1762_vm2, %v5778_v21, -inf }
 0x36b   :  { %v4872_v3 = vpop.f32.mrb[22].mxu0  ;;  %v4847_v4 = vpop.f32.mrb[4].mxu1  ;;  %v1787_v52 = vsel %vm1762_vm2, %v5796_v1, -inf }
 0x36c   :  { %v5760_v5 = vmul.f32 0.35355338, %v4872_v3  ;;  %v1143_v6 = vpop.f32.mrb[23].mxu0  ;;  %v895_v7 = vpop.f32.mrb[5].mxu1 }
 0x36d   :  { %v5762_v8 = vmul.f32 0.35355338, %v1143_v6  ;;  %v5794_v0 = vmul.f32 0.35355338, %v895_v7 }
 0x36e   :  { %v1838_v10 = vsel %vm1762_vm2, %v5760_v5, -inf }
 0x36f   :  { %1839 = vmax.xlane.f32.xlu1 %v1838_v10  ;;  %v1835_v12 = vsel %vm1762_vm2, %v5762_v8, -inf  ;;  %v4850_v13 = vpop.f32.mrb[6].mxu1  ;;  %v5804_v10 = vmul.f32 0.35355338, %v4847_v4  ;;  %v1793_v7 = vsel %vm1762_vm2, %v5794_v0, -inf }
 0x370   :  { %1836 = vmax.xlane.f32.xlu0 %v1835_v12  ;;  %v905_v58 = vpop.f32.mrb[7].mxu1 }
 0x371   :  { %v1796_v4 = vsel %vm1762_vm2, %v5804_v10, -inf }
 0x373   :  { %1785 = vmax.xlane.f32.xlu1 %v1784_v14  ;;  %v4875_v15 = vpop.f32.mrb[24].mxu0  ;;  %v4853_v56 = vpop.f32.mrb[8].mxu1  ;;  %v5810_v14 = vmul.f32 0.35355338, %v905_v58 }
 0x374   :  { %v5776_v18 = vmul.f32 0.35355338, %v4875_v15  ;;  %1782 = vmax.xlane.f32.xlu0 %v1781_v17  ;;  %v1153_v19 = vpop.f32.mrb[25].mxu0  ;;  %v915_v22 = vpop.f32.mrb[9].mxu1  ;;  %v5814_v17 = vmul.f32 0.35355338, %v4850_v13 }
 0x375   :  { %v5780_v23 = vmul.f32 0.35355338, %v1153_v19 }
 0x376   :  { %v1844_v26 = vsel %vm1762_vm2, %v5776_v18, -inf  ;;  %v1802_v13 = vsel %vm1762_vm2, %v5814_v17, -inf }
 0x377   :  { %1845 = vmax.xlane.f32.xlu1 %v1844_v26  ;;  %v1841_v29 = vsel %vm1762_vm2, %v5780_v23, -inf  ;;  %v4858_v30 = vpop.f32.mrb[10].mxu1 }
 0x378   :  { %1842 = vmax.xlane.f32.xlu0 %v1841_v29  ;;  %v1014_v34 = vpop.f32.mrb[11].mxu1  ;;  %v1799_v29 = vsel %vm1762_vm2, %v5810_v14, -inf  ;;  %v5850_v53 = vmul.f32 0.35355338, %v4858_v30 }
 0x37a   :  { %v1814_v30 = vsel %vm1762_vm2, %v5850_v53, -inf }
 0x37b   :  { %v4878_v37 = vpop.f32.mrb[26].mxu0  ;;  %1791 = vmax.xlane.f32.xlu1 %v1790_v31  ;;  %v5788_v38 = vpop.f32.mrb[12].mxu1 }
 0x37c   :  { %v5790_v40 = vmul.f32 0.35355338, %v4878_v37  ;;  %v1163_v43 = vpop.f32.mrb[27].mxu0  ;;  %v1024_v63 = vpop.f32.mrb[13].mxu1  ;;  %v5869_v48 = vmul.f32 0.35355338, %v5788_v38 }
 0x37d   :  { %v5792_v54 = vmul.f32 0.35355338, %v1163_v43 }
 0x37e   :  { %v1850_v2 = vsel %vm1762_vm2, %v5790_v40, -inf  ;;  %v1820_v38 = vsel %vm1762_vm2, %v5869_v48, -inf }
 0x37f   :  { %1851 = vmax.xlane.f32.xlu1 %v1850_v2  ;;  %v1847_v3 = vsel %vm1762_vm2, %v5792_v54, -inf  ;;  %v5802_v6 = vpop.f32.mrb[14].mxu1  ;;  %v5830_v2 = vmul.f32 0.35355338, %v915_v22 }
 0x380   :  { %1848 = vmax.xlane.f32.xlu0 %v1847_v3  ;;  %v5806_v12 = vpop.f32.mrb[15].mxu1  ;;  %v5889_v44 = vmul.f32 0.35355338, %v5802_v6 }
 0x381   :  { %v5886_v39 = vmul.f32 0.35355338, %v5806_v12 }
 0x382   :  { %v1826_v6 = vsel %vm1762_vm2, %v5889_v44, -inf }
 0x383   :  { %1788 = vmax.xlane.f32.xlu1 %v1787_v52  ;;  %v4881_v15 = vpop.f32.mrb[28].mxu0 }
 0x384   :  { %1794 = vmax.xlane.f32.xlu0 %v1793_v7  ;;  %v1173_v19 = vpop.f32.mrb[29].mxu0  ;;  %v5824_v31 = vmul.f32 0.35355338, %v4881_v15  ;;  %v5832_v7 = vmul.f32 0.35355338, %v4853_v56 }
 0x385   :  { %v5818_v26 = vmul.f32 0.35355338, %v1173_v19  ;;  %v1805_v19 = vsel %vm1762_vm2, %v5830_v2, -inf }
 0x386   :  { %v1856_v52 = vsel %vm1762_vm2, %v5824_v31, -inf  ;;  %v1808_v56 = vsel %vm1762_vm2, %v5832_v7, -inf }
 0x387   :  { %1797 = vmax.xlane.f32.xlu1 %v1796_v4  ;;  %v5822_v58 = vpop.f32.mrb[16].mxu1  ;;  %v1853_v43 = vsel %vm1762_vm2, %v5818_v26, -inf }
 0x388   :  { %1800 = vmax.xlane.f32.xlu0 %v1799_v29  ;;  %v1044_v37 = vpop.f32.mrb[17].mxu1  ;;  %v5900_v12 = vmul.f32 0.35355338, %v5822_v58 }
 0x389   :  { %v5895_v32 = vmul.f32 0.35355338, %v1044_v37 }
 0x38b   :  { %1803 = vmax.xlane.f32.xlu1 %v1802_v13  ;;  %v4900_v3 = vpop.f32.mrb[30].mxu0  ;;  %v1829_v24 = vsel %vm1762_vm2, %v5895_v32, -inf }
 0x38c   :  { %1854 = vmax.xlane.f32.xlu0 %v1853_v43  ;;  %v1401_v15 = vpop.f32.mrb[31].mxu0  ;;  %v5842_v51 = vmul.f32 0.35355338, %v4900_v3  ;;  %v5848_v43 = vmul.f32 0.35355338, %v1014_v34 }
 0x38d   :  { %v5836_v4 = vmul.f32 0.35355338, %v1401_v15 }
 0x38f   :  { %1857 = vmax.xlane.f32.xlu1 %v1856_v52  ;;  %v5840_v29 = vpop.f32.mrb[18].mxu1  ;;  %v1883_v13 = vsel %vm1762_vm2, %v5836_v4, -inf  ;;  %v1886_v52 = vsel %vm1762_vm2, %v5842_v51, -inf }
 0x390   :  { %1806 = vmax.xlane.f32.xlu0 %v1805_v19  ;;  %v1272_v22 = vpop.f32.mrb[19].mxu1  ;;  %v1811_v19 = vsel %vm1762_vm2, %v5848_v43, -inf  ;;  %v5917_v20 = vmul.f32 0.35355338, %v5840_v29 }
 0x391   :  { %v5914_v16 = vmul.f32 0.35355338, %v1272_v22 }
 0x392   :  { %v1862_v22 = vsel %vm1762_vm2, %v5917_v20, -inf }
 0x393   :  { %1809 = vmax.xlane.f32.xlu1 %v1808_v56  ;;  %v4903_v15 = vpop.f32.mrb[32].mxu0  ;;  %v1859_v59 = vsel %vm1762_vm2, %v5914_v16, -inf }
 0x394   :  { %1884 = vmax.xlane.f32.xlu0 %v1883_v13  ;;  %v1411_v3 = vpop.f32.mrb[33].mxu0  ;;  %v5860_v46 = vmul.f32 0.35355338, %v4903_v15  ;;  %v5866_v13 = vmul.f32 0.35355338, %v1024_v63 }
 0x395   :  { %v5854_v49 = vmul.f32 0.35355338, %v1411_v3 }
 0x396   :  { %v1892_v15 = vsel %vm1762_vm2, %v5860_v46, -inf  ;;  %v1817_v42 = vsel %vm1762_vm2, %v5866_v13, -inf }
 0x397   :  { %1887 = vmax.xlane.f32.xlu1 %v1886_v52  ;;  %v5858_v50 = vpop.f32.mrb[20].mxu1  ;;  %v1889_v56 = vsel %vm1762_vm2, %v5854_v49, -inf }
 0x398   :  { %1812 = vmax.xlane.f32.xlu0 %v1811_v19  ;;  %v1282_v34 = vpop.f32.mrb[21].mxu1  ;;  %v5934_v62 = vmul.f32 0.35355338, %v5858_v50 }
 0x39a   :  { %6816 = vst [vmem:[#allocation33_spill] sm:$0xff] %v5934_v62 }
 0x39b   :  { %1815 = vmax.xlane.f32.xlu1 %v1814_v30  ;;  %v4906_v3 = vpop.f32.mrb[34].mxu0 }
 0x39c   :  { %1890 = vmax.xlane.f32.xlu0 %v1889_v56  ;;  %v1421_v52 = vpop.f32.mrb[35].mxu0  ;;  %v5879_v63 = vmul.f32 0.35355338, %v4906_v3 }
 0x39d   :  { %v5873_v19 = vmul.f32 0.35355338, %v1421_v52 }
 0x39e   :  { %v1898_v3 = vsel %vm1762_vm2, %v5879_v63, -inf }
 0x39f   :  { %1893 = vmax.xlane.f32.xlu1 %v1892_v15  ;;  %v5877_v45 = vpop.f32.mrb[22].mxu1  ;;  %v1895_v56 = vsel %vm1762_vm2, %v5873_v19, -inf  ;;  %v1823_v15 = vsel %vm1762_vm2, %v5886_v39, -inf }
 0x3a0   :  { %1818 = vmax.xlane.f32.xlu0 %v1817_v42  ;;  %v1292_v30 = vpop.f32.mrb[23].mxu1 }
 0x3a3   :  { %1821 = vmax.xlane.f32.xlu1 %v1820_v38  ;;  %v4909_v52 = vpop.f32.mrb[36].mxu0 }
 0x3a4   :  { %1896 = vmax.xlane.f32.xlu0 %v1895_v56  ;;  %v1431_v42 = vpop.f32.mrb[37].mxu0  ;;  %v5908_v37 = vmul.f32 0.35355338, %v4909_v52 }
 0x3a5   :  { %v5904_v56 = vmul.f32 0.35355338, %v1431_v42 }
 0x3a6   :  { %v1904_v52 = vsel %vm1762_vm2, %v5908_v37, -inf }
 0x3a7   :  { %1899 = vmax.xlane.f32.xlu1 %v1898_v3  ;;  %v5897_v35 = vpop.f32.mrb[24].mxu1  ;;  %v1832_v3 = vsel %vm1762_vm2, %v5900_v12, -inf }
 0x3a8   :  { %1824 = vmax.xlane.f32.xlu0 %v1823_v15  ;;  %v1302_v38 = vpop.f32.mrb[25].mxu1  ;;  %v1901_v15 = vsel %vm1762_vm2, %v5904_v56, -inf }
 0x3ab   :  { %1827 = vmax.xlane.f32.xlu1 %v1826_v6  ;;  %v4928_v28 = vpop.f32.mrb[38].mxu0 }
 0x3ac   :  { %1830 = vmax.xlane.f32.xlu0 %v1829_v24  ;;  %v1659_v58 = vpop.f32.mrb[39].mxu0  ;;  %v5925_v57 = vmul.f32 0.35355338, %v4928_v28 }
 0x3ad   :  { %v5921_v24 = vmul.f32 0.35355338, %v1659_v58 }
 0x3ae   :  { %6814 = vst [vmem:[#allocation31_spill] sm:$0xff] %v5925_v57  ;;  %v1934_v28 = vsel %vm1762_vm2, %v5925_v57, -inf  ;;  %v5951_v57 = vmul.f32 0.35355338, %v5877_v45 }
 0x3af   :  { %1833 = vmax.xlane.f32.xlu1 %v1832_v3  ;;  %v4914_v42 = vpop.f32.mrb[26].mxu1  ;;  %6813 = vst [vmem:[#allocation30_spill] sm:$0xff] %v5921_v24  ;;  %v1931_v3 = vsel %vm1762_vm2, %v5921_v24, -inf }
 0x3b0   :  { %1902 = vmax.xlane.f32.xlu0 %v1901_v15  ;;  %v1530_v6 = vpop.f32.mrb[27].mxu1  ;;  %v5931_v15 = vmul.f32 0.35355338, %v1282_v34  ;;  %v1868_v34 = vsel %vm1762_vm2, %v5934_v62, -inf  ;;  %6820 = vst [vmem:[#allocation37_spill] sm:$0xff] %v5951_v57 }
 0x3b2   :  { %6815 = vst [vmem:[#allocation32_spill] sm:$0xff] %v5931_v15  ;;  %v1865_v55 = vsel %vm1762_vm2, %v5931_v15, -inf }
 0x3b3   :  { %1905 = vmax.xlane.f32.xlu1 %v1904_v52  ;;  %v4931_v61 = vpop.f32.mrb[40].mxu0 }
 0x3b4   :  { %1860 = vmax.xlane.f32.xlu0 %v1859_v59  ;;  %v1669_v29 = vpop.f32.mrb[41].mxu0  ;;  %v5942_v24 = vmul.f32 0.35355338, %v4931_v61 }
 0x3b5   :  { %v5938_v59 = vmul.f32 0.35355338, %v1669_v29 }
 0x3b6   :  { %6818 = vst [vmem:[#allocation35_spill] sm:$0xff] %v5942_v24  ;;  %v1940_v61 = vsel %vm1762_vm2, %v5942_v24, -inf  ;;  %v5968_v24 = vmul.f32 0.35355338, %v5897_v35 }
 0x3b7   :  { %1863 = vmax.xlane.f32.xlu1 %v1862_v22  ;;  %v4917_v58 = vpop.f32.mrb[28].mxu1  ;;  %6817 = vst [vmem:[#allocation34_spill] sm:$0xff] %v5938_v59  ;;  %v1937_v22 = vsel %vm1762_vm2, %v5938_v59, -inf }
 0x3b8   :  { %1932 = vmax.xlane.f32.xlu0 %v1931_v3  ;;  %v1540_v52 = vpop.f32.mrb[29].mxu1  ;;  %v5948_v3 = vmul.f32 0.35355338, %v1292_v30  ;;  %v1874_v30 = vsel %vm1762_vm2, %v5951_v57, -inf }
 0x3ba   :  { %6819 = vst [vmem:[#allocation36_spill] sm:$0xff] %v5948_v3  ;;  %v1871_v62 = vsel %vm1762_vm2, %v5948_v3, -inf }
 0x3bb   :  { %1935 = vmax.xlane.f32.xlu1 %v1934_v28  ;;  %v4934_v60 = vpop.f32.mrb[42].mxu0 }
 0x3bc   :  { %1866 = vmax.xlane.f32.xlu0 %v1865_v55  ;;  %v1679_v50 = vpop.f32.mrb[43].mxu0  ;;  %v5959_v59 = vmul.f32 0.35355338, %v4934_v60 }
 0x3bd   :  { %v5955_v55 = vmul.f32 0.35355338, %v1679_v50 }
 0x3be   :  { %v1946_v60 = vsel %vm1762_vm2, %v5959_v59, -inf }
 0x3bf   :  { %1869 = vmax.xlane.f32.xlu1 %v1868_v34  ;;  %v4920_v29 = vpop.f32.mrb[30].mxu1  ;;  %v1943_v34 = vsel %vm1762_vm2, %v5955_v55, -inf }
 0x3c0   :  { %1938 = vmax.xlane.f32.xlu0 %v1937_v22  ;;  %v1550_v28 = vpop.f32.mrb[31].mxu1  ;;  %v5965_v22 = vmul.f32 0.35355338, %v1302_v38  ;;  %v1880_v38 = vsel %vm1762_vm2, %v5968_v24, -inf }
 0x3c2   :  { %v1877_v57 = vsel %vm1762_vm2, %v5965_v22, -inf }
 0x3c3   :  { %1941 = vmax.xlane.f32.xlu1 %v1940_v61  ;;  %v4937_v15 = vpop.f32.mrb[44].mxu0 }
 0x3c4   :  { %1872 = vmax.xlane.f32.xlu0 %v1871_v62  ;;  %v1689_v45 = vpop.f32.mrb[45].mxu0  ;;  %v5976_v3 = vmul.f32 0.35355338, %v4937_v15 }
 0x3c5   :  { %v5972_v62 = vmul.f32 0.35355338, %v1689_v45 }
 0x3c6   :  { %6822 = vst [vmem:[#allocation39_spill] sm:$0xff] %v5976_v3  ;;  %v1952_v45 = vsel %vm1762_vm2, %v5976_v3, -inf }
 0x3c7   :  { %1875 = vmax.xlane.f32.xlu1 %v1874_v30  ;;  %v4923_v50 = vpop.f32.mrb[32].mxu1  ;;  %6821 = vst [vmem:[#allocation38_spill] sm:$0xff] %v5972_v62  ;;  %v1949_v35 = vsel %vm1762_vm2, %v5972_v62, -inf  ;;  %v5982_v30 = vmul.f32 0.35355338, %v1530_v6 }
 0x3c8   :  { %1944 = vmax.xlane.f32.xlu0 %v1943_v34  ;;  %v1560_v61 = vpop.f32.mrb[33].mxu1  ;;  %v5984_v34 = vmul.f32 0.35355338, %v4914_v42 }
 0x3c9   :  { %v1907_v15 = vsel %vm1762_vm2, %v5982_v30, -inf }
 0x3ca   :  { %v1910_v6 = vsel %vm1762_vm2, %v5984_v34, -inf }
 0x3cb   :  { %1947 = vmax.xlane.f32.xlu1 %v1946_v60  ;;  %v5990_v60 = vmul.f32 0.35355338, %v1540_v52 }
 0x3cc   :  { %1878 = vmax.xlane.f32.xlu0 %v1877_v57  ;;  %v5992_v57 = vmul.f32 0.35355338, %v4917_v58 }
 0x3cd   :  { %v1913_v42 = vsel %vm1762_vm2, %v5990_v60, -inf }
 0x3ce   :  { %6823 = vst [vmem:[#allocation40_spill] sm:$0xff] %v5992_v57  ;;  %v1916_v52 = vsel %vm1762_vm2, %v5992_v57, -inf }
 0x3cf   :  { %1881 = vmax.xlane.f32.xlu1 %v1880_v38  ;;  %v5998_v38 = vmul.f32 0.35355338, %v1550_v28 }
 0x3d0   :  { %1950 = vmax.xlane.f32.xlu0 %v1949_v35  ;;  %v6000_v35 = vmul.f32 0.35355338, %v4920_v29 }
 0x3d1   :  { %v1919_v58 = vsel %vm1762_vm2, %v5998_v38, -inf }
 0x3d2   :  { %6824 = vst [vmem:[#allocation41_spill] sm:$0xff] %v6000_v35  ;;  %v1922_v28 = vsel %vm1762_vm2, %v6000_v35, -inf }
 0x3d3   :  { %1953 = vmax.xlane.f32.xlu1 %v1952_v45  ;;  %v6006_v45 = vmul.f32 0.35355338, %v1560_v61 }
 0x3d4   :  { %1908 = vmax.xlane.f32.xlu0 %v1907_v15  ;;  %v6008_v15 = vmul.f32 0.35355338, %v4923_v50 }
 0x3d5   :  { %6825 = vst [vmem:[#allocation42_spill] sm:$0xff] %v6006_v45 }
 0x3d6   :  { %v1928_v50 = vsel %vm1762_vm2, %v6008_v15, -inf }
 0x3d7   :  { %1911 = vmax.xlane.f32.xlu1 %v1910_v6 }
 0x3d8   :  { %1914 = vmax.xlane.f32.xlu0 %v1913_v42  ;;  %v1925_v42 = vsel %vm1762_vm2, %v6006_v45, -inf }
 0x3db   :  { %1917 = vmax.xlane.f32.xlu1 %v1916_v52 }
 0x3dc   :  { %v1768_v3 = vpop.xlane.xlu1 %1767  ;;  %1920 = vmax.xlane.f32.xlu0 %v1919_v58 }
 0x3dd   :  { %v1956_v29 = vsub.f32 %v5736_v25, %v1768_v3  ;;  %v1765_v6 = vpop.xlane.xlu0 %1764 }
 0x3de   :  { %v1955_v62 = vsub.f32 %v5738_v27, %v1765_v6 }
 0x3df   :  { %v2021_v57 = vmul.f32 1.442695, %v1956_v29  ;;  %1923 = vmax.xlane.f32.xlu1 %v1922_v28 }
 0x3e0   :  { %v2019_v61 = vmul.f32 1.442695, %v1955_v62  ;;  %1926 = vmax.xlane.f32.xlu0 %v1925_v42 }
 0x3e1   :  { %5105 = vpow2.f32 %v2021_v57 }
 0x3e2   :  { %5107 = vpow2.f32 %v2019_v61 }
 0x3e3   :  { %1929 = vmax.xlane.f32.xlu1 %v1928_v50 }
 0x3e4   :  { %v1774_v52 = vpop.xlane.xlu1 %1773 }
 0x3e5   :  { %v1958_v58 = vsub.f32 %v5744_v33, %v1774_v52  ;;  %v1771_v25 = vpop.xlane.xlu0 %1770 }
 0x3e6   :  { %v1957_v3 = vsub.f32 %v5746_v36, %v1771_v25 }
 0x3e7   :  { %v2025_v35 = vmul.f32 1.442695, %v1958_v58 }
 0x3e8   :  { %v2023_v45 = vmul.f32 1.442695, %v1957_v3 }
 0x3e9   :  { %5109 = vpow2.f32 %v2025_v35 }
 0x3ea   :  { %5111 = vpow2.f32 %v2023_v45 }
 0x3eb   :  { %v6020_v27 = vpop.eup %5105 }
 0x3ec   :  { %v6022_v62 = vpop.eup %5107  ;;  %v1780_v28 = vpop.xlane.xlu1 %1779  ;;  %v2150_v57 = vsel %vm1762_vm2, %v6020_v27, 0.0 }
 0x3ed   :  { %v1960_v29 = vsub.f32 %v5752_v41, %v1780_v28  ;;  %2151 = vadd.xlane.f32.xlu1 %v2150_v57  ;;  %v1777_v6 = vpop.xlane.xlu0 %1776  ;;  %v2147_v33 = vsel %vm1762_vm2, %v6022_v62, 0.0 }
 0x3ee   :  { %v1959_v36 = vsub.f32 %v5754_v47, %v1777_v6  ;;  %2148 = vadd.xlane.f32.xlu0 %v2147_v33 }
 0x3ef   :  { %v2029_v35 = vmul.f32 1.442695, %v1960_v29 }
 0x3f0   :  { %v2027_v45 = vmul.f32 1.442695, %v1959_v36 }
 0x3f1   :  { %5113 = vpow2.f32 %v2029_v35 }
 0x3f2   :  { %5115 = vpow2.f32 %v2027_v45 }
 0x3f3   :  { %v6030_v42 = vpop.eup %5109 }
 0x3f4   :  { %v6032_v61 = vpop.eup %5111  ;;  %v2156_v50 = vsel %vm1762_vm2, %v6030_v42, 0.0 }
 0x3f5   :  { %2157 = vadd.xlane.f32.xlu1 %v2156_v50  ;;  %v2153_v41 = vsel %vm1762_vm2, %v6032_v61, 0.0 }
 0x3f6   :  { %2154 = vadd.xlane.f32.xlu0 %v2153_v41 }
 0x3fb   :  { %v6038_v52 = vpop.eup %5113 }
 0x3fc   :  { %6826 = vst [vmem:[#allocation43_spill] sm:$0xff] %v6038_v52  ;;  %v6040_v47 = vpop.eup %5115  ;;  %v1840_v58 = vpop.xlane.xlu1 %1839  ;;  %v2162_v25 = vsel %vm1762_vm2, %v6038_v52, 0.0 }
 0x3fd   :  { %v1980_v3 = vsub.f32 %v5760_v5, %v1840_v58  ;;  %2163 = vadd.xlane.f32.xlu1 %v2162_v25  ;;  %v1837_v28 = vpop.xlane.xlu0 %1836  ;;  %v2159_v57 = vsel %vm1762_vm2, %v6040_v47, 0.0 }
 0x3fe   :  { %v1979_v29 = vsub.f32 %v5762_v8, %v1837_v28  ;;  %2160 = vadd.xlane.f32.xlu0 %v2159_v57 }
 0x3ff   :  { %v2069_v6 = vmul.f32 1.442695, %v1980_v3 }
 0x400   :  { %v2067_v33 = vmul.f32 1.442695, %v1979_v29  ;;  %v1786_v36 = vpop.xlane.xlu1 %1785 }
 0x401   :  { %5117 = vpow2.f32 %v2069_v6  ;;  %v1962_v35 = vsub.f32 %v5764_v9, %v1786_v36  ;;  %v1783_v45 = vpop.xlane.xlu0 %1782 }
 0x402   :  { %5119 = vpow2.f32 %v2067_v33  ;;  %v1961_v50 = vsub.f32 %v5768_v11, %v1783_v45 }
 0x403   :  { %v2033_v41 = vmul.f32 1.442695, %v1962_v35 }
 0x404   :  { %v2031_v5 = vmul.f32 1.442695, %v1961_v50  ;;  %v1846_v58 = vpop.xlane.xlu1 %1845 }
 0x405   :  { %5121 = vpow2.f32 %v2033_v41  ;;  %v1982_v25 = vsub.f32 %v5776_v18, %v1846_v58  ;;  %v1843_v52 = vpop.xlane.xlu0 %1842 }
 0x406   :  { %5123 = vpow2.f32 %v2031_v5  ;;  %v1981_v8 = vsub.f32 %v5780_v23, %v1843_v52 }
 0x407   :  { %v2073_v3 = vmul.f32 1.442695, %v1982_v25 }
 0x408   :  { %v2071_v28 = vmul.f32 1.442695, %v1981_v8  ;;  %v1792_v57 = vpop.xlane.xlu1 %1791 }
 0x409   :  { %5125 = vpow2.f32 %v2073_v3  ;;  %v1964_v9 = vsub.f32 %v5778_v21, %v1792_v57 }
 0x40a   :  { %5127 = vpow2.f32 %v2071_v28 }
 0x40b   :  { %v6053_v29 = vpop.eup %5117  ;;  %v2037_v11 = vmul.f32 1.442695, %v1964_v9 }
 0x40c   :  { %v6055_v6 = vpop.eup %5119  ;;  %v1852_v33 = vpop.xlane.xlu1 %1851  ;;  %v2222_v18 = vsel %vm1762_vm2, %v6053_v29, 0.0 }
 0x40d   :  { %5129 = vpow2.f32 %v2037_v11  ;;  %v1984_v36 = vsub.f32 %v5790_v40, %v1852_v33  ;;  %2223 = vadd.xlane.f32.xlu1 %v2222_v18  ;;  %v1849_v23 = vpop.xlane.xlu0 %1848  ;;  %v2219_v52 = vsel %vm1762_vm2, %v6055_v6, 0.0 }
 0x40e   :  { %2220 = vadd.xlane.f32.xlu0 %v2219_v52  ;;  %v1983_v45 = vsub.f32 %v5792_v54, %v1849_v23 }
 0x40f   :  { %v6062_v21 = vpop.eup %5121  ;;  %v2077_v35 = vmul.f32 1.442695, %v1984_v36 }
 0x410   :  { %v6065_v50 = vpop.eup %5123  ;;  %v1789_v41 = vpop.xlane.xlu1 %1788  ;;  %v2168_v5 = vsel %vm1762_vm2, %v6062_v21, 0.0  ;;  %v2075_v3 = vmul.f32 1.442695, %v1983_v45 }
 0x411   :  { %5131 = vpow2.f32 %v2077_v35  ;;  %v1963_v40 = vsub.f32 %v5796_v1, %v1789_v41  ;;  %2169 = vadd.xlane.f32.xlu1 %v2168_v5  ;;  %v1795_v58 = vpop.xlane.xlu0 %1794  ;;  %v2165_v25 = vsel %vm1762_vm2, %v6065_v50, 0.0 }
 0x412   :  { %2166 = vadd.xlane.f32.xlu0 %v2165_v25  ;;  %v1965_v54 = vsub.f32 %v5794_v0, %v1795_v58 }
 0x413   :  { %v6072_v8 = vpop.eup %5125  ;;  %v2035_v28 = vmul.f32 1.442695, %v1963_v40 }
 0x414   :  { %v6075_v57 = vpop.eup %5127  ;;  %v1798_v9 = vpop.xlane.xlu1 %1797  ;;  %v2228_v11 = vsel %vm1762_vm2, %v6072_v8, 0.0  ;;  %v2039_v23 = vmul.f32 1.442695, %v1965_v54 }
 0x415   :  { %5133 = vpow2.f32 %v2035_v28  ;;  %v1966_v1 = vsub.f32 %v5804_v10, %v1798_v9  ;;  %2229 = vadd.xlane.f32.xlu1 %v2228_v11  ;;  %v1801_v33 = vpop.xlane.xlu0 %1800  ;;  %v2225_v18 = vsel %vm1762_vm2, %v6075_v57, 0.0 }
 0x416   :  { %2226 = vadd.xlane.f32.xlu0 %v2225_v18  ;;  %5135 = vpow2.f32 %v2075_v3  ;;  %v1967_v52 = vsub.f32 %v5810_v14, %v1801_v33 }
 0x417   :  { %v6082_v36 = vpop.eup %5129  ;;  %v2041_v0 = vmul.f32 1.442695, %v1966_v1 }
 0x418   :  { %v1804_v35 = vpop.xlane.xlu1 %1803  ;;  %v2174_v45 = vsel %vm1762_vm2, %v6082_v36, 0.0  ;;  %v2043_v40 = vmul.f32 1.442695, %v1967_v52 }
 0x419   :  { %5137 = vpow2.f32 %v2041_v0  ;;  %v1968_v10 = vsub.f32 %v5814_v17, %v1804_v35  ;;  %2175 = vadd.xlane.f32.xlu1 %v2174_v45  ;;  %v1855_v41 = vpop.xlane.xlu0 %1854 }
 0x41a   :  { %5139 = vpow2.f32 %v2039_v23  ;;  %v1985_v25 = vsub.f32 %v5818_v26, %v1855_v41 }
 0x41b   :  { %v6088_v5 = vpop.eup %5131  ;;  %v2045_v58 = vmul.f32 1.442695, %v1968_v10 }
 0x41c   :  { %v1858_v3 = vpop.xlane.xlu1 %1857  ;;  %v2234_v14 = vsel %vm1762_vm2, %v6088_v5, 0.0  ;;  %v2079_v17 = vmul.f32 1.442695, %v1985_v25 }
 0x41d   :  { %5141 = vpow2.f32 %v2045_v58  ;;  %v1986_v28 = vsub.f32 %v5824_v31, %v1858_v3  ;;  %2235 = vadd.xlane.f32.xlu1 %v2234_v14  ;;  %v1807_v54 = vpop.xlane.xlu0 %1806 }
 0x41e   :  { %5143 = vpow2.f32 %v2043_v40  ;;  %v1969_v1 = vsub.f32 %v5830_v2, %v1807_v54 }
 0x41f   :  { %v6094_v9 = vpop.eup %5133  ;;  %v2081_v11 = vmul.f32 1.442695, %v1986_v28 }
 0x420   :  { %v1810_v33 = vpop.xlane.xlu1 %1809  ;;  %v2171_v26 = vsel %vm1762_vm2, %v6094_v9, 0.0  ;;  %v6099_v18 = vpop.eup %5135  ;;  %v2047_v52 = vmul.f32 1.442695, %v1969_v1 }
 0x421   :  { %5145 = vpow2.f32 %v2081_v11  ;;  %v1970_v23 = vsub.f32 %v5832_v7, %v1810_v33  ;;  %2172 = vadd.xlane.f32.xlu0 %v2171_v26  ;;  %v1885_v31 = vpop.xlane.xlu0 %1884  ;;  %v2231_v41 = vsel %vm1762_vm2, %v6099_v18, 0.0 }
 0x422   :  { %5147 = vpow2.f32 %v2079_v17  ;;  %v1995_v45 = vsub.f32 %v5836_v4, %v1885_v31 }
 0x423   :  { %v6102_v0 = vpop.eup %5137  ;;  %v2049_v35 = vmul.f32 1.442695, %v1970_v23 }
 0x424   :  { %v1888_v10 = vpop.xlane.xlu1 %1887  ;;  %v2180_v2 = vsel %vm1762_vm2, %v6102_v0, 0.0  ;;  %v6109_v40 = vpop.eup %5139  ;;  %v2099_v3 = vmul.f32 1.442695, %v1995_v45 }
 0x425   :  { %5149 = vpow2.f32 %v2049_v35  ;;  %v1996_v7 = vsub.f32 %v5842_v51, %v1888_v10  ;;  %2181 = vadd.xlane.f32.xlu1 %v2180_v2  ;;  %2232 = vadd.xlane.f32.xlu0 %v2231_v41  ;;  %v1813_v58 = vpop.xlane.xlu0 %1812  ;;  %v2177_v17 = vsel %vm1762_vm2, %v6109_v40, 0.0 }
 0x426   :  { %5151 = vpow2.f32 %v2047_v52  ;;  %v1971_v14 = vsub.f32 %v5848_v43, %v1813_v58 }
 0x427   :  { %v6112_v25 = vpop.eup %5141  ;;  %v2101_v4 = vmul.f32 1.442695, %v1996_v7 }
 0x428   :  { %v1816_v28 = vpop.xlane.xlu1 %1815  ;;  %v2186_v54 = vsel %vm1762_vm2, %v6112_v25, 0.0  ;;  %v6119_v11 = vpop.eup %5143  ;;  %v2051_v26 = vmul.f32 1.442695, %v1971_v14 }
 0x429   :  { %5153 = vpow2.f32 %v2101_v4  ;;  %v1972_v51 = vsub.f32 %v5850_v53, %v1816_v28  ;;  %2187 = vadd.xlane.f32.xlu1 %v2186_v54  ;;  %2178 = vadd.xlane.f32.xlu0 %v2177_v17  ;;  %v1891_v1 = vpop.xlane.xlu0 %1890  ;;  %v2183_v35 = vsel %vm1762_vm2, %v6119_v11, 0.0 }
 0x42a   :  { %5155 = vpow2.f32 %v2099_v3  ;;  %v1997_v23 = vsub.f32 %v5854_v49, %v1891_v1 }
 0x42b   :  { %v6122_v33 = vpop.eup %5145  ;;  %v2053_v43 = vmul.f32 1.442695, %v1972_v51 }
 0x42c   :  { %v1894_v31 = vpop.xlane.xlu1 %1893  ;;  %v2240_v52 = vsel %vm1762_vm2, %v6122_v33, 0.0  ;;  %v6129_v45 = vpop.eup %5147  ;;  %v2103_v41 = vmul.f32 1.442695, %v1997_v23 }
 0x42d   :  { %5157 = vpow2.f32 %v2053_v43  ;;  %v1998_v53 = vsub.f32 %v5860_v46, %v1894_v31  ;;  %2241 = vadd.xlane.f32.xlu1 %v2240_v52  ;;  %2184 = vadd.xlane.f32.xlu0 %v2183_v35  ;;  %v1819_v10 = vpop.xlane.xlu0 %1818  ;;  %v2237_v4 = vsel %vm1762_vm2, %v6129_v45, 0.0 }
 0x42e   :  { %5159 = vpow2.f32 %v2051_v26  ;;  %v1973_v7 = vsub.f32 %v5866_v13, %v1819_v10 }
 0x42f   :  { %v6132_v2 = vpop.eup %5149  ;;  %v2105_v49 = vmul.f32 1.442695, %v1998_v53 }
 0x430   :  { %v1822_v58 = vpop.xlane.xlu1 %1821  ;;  %v2192_v3 = vsel %vm1762_vm2, %v6132_v2, 0.0  ;;  %v6139_v14 = vpop.eup %5151  ;;  %v2055_v17 = vmul.f32 1.442695, %v1973_v7 }
 0x431   :  { %5161 = vpow2.f32 %v2105_v49  ;;  %v1974_v46 = vsub.f32 %v5869_v48, %v1822_v58  ;;  %2193 = vadd.xlane.f32.xlu1 %v2192_v3  ;;  %2238 = vadd.xlane.f32.xlu0 %v2237_v4  ;;  %v1897_v28 = vpop.xlane.xlu0 %1896  ;;  %v2189_v43 = vsel %vm1762_vm2, %v6139_v14, 0.0 }
 0x432   :  { %5163 = vpow2.f32 %v2103_v41  ;;  %v1999_v51 = vsub.f32 %v5873_v19, %v1897_v28 }
 0x433   :  { %v6142_v54 = vpop.eup %5153  ;;  %v2057_v13 = vmul.f32 1.442695, %v1974_v46 }
 0x434   :  { %v1900_v1 = vpop.xlane.xlu1 %1899  ;;  %v2270_v26 = vsel %vm1762_vm2, %v6142_v54, 0.0  ;;  %v6149_v23 = vpop.eup %5155  ;;  %v2107_v35 = vmul.f32 1.442695, %v1999_v51 }
 0x435   :  { %5165 = vpow2.f32 %v2057_v13  ;;  %v2000_v48 = vsub.f32 %v5879_v63, %v1900_v1  ;;  %2271 = vadd.xlane.f32.xlu1 %v2270_v26  ;;  %2190 = vadd.xlane.f32.xlu0 %v2189_v43  ;;  %v1825_v31 = vpop.xlane.xlu0 %1824  ;;  %v2267_v49 = vsel %vm1762_vm2, %v6149_v23, 0.0 }
 0x436   :  { %5167 = vpow2.f32 %v2055_v17  ;;  %v1975_v53 = vsub.f32 %v5886_v39, %v1825_v31 }
 0x437   :  { %v6152_v52 = vpop.eup %5157  ;;  %v2109_v19 = vmul.f32 1.442695, %v2000_v48 }
 0x438   :  { %v1828_v10 = vpop.xlane.xlu1 %1827  ;;  %v2198_v41 = vsel %vm1762_vm2, %v6152_v52, 0.0  ;;  %v6159_v7 = vpop.eup %5159  ;;  %v2059_v4 = vmul.f32 1.442695, %v1975_v53 }
 0x439   :  { %5169 = vpow2.f32 %v2109_v19  ;;  %v1976_v63 = vsub.f32 %v5889_v44, %v1828_v10  ;;  %2199 = vadd.xlane.f32.xlu1 %v2198_v41  ;;  %2268 = vadd.xlane.f32.xlu0 %v2267_v49  ;;  %v1831_v58 = vpop.xlane.xlu0 %1830  ;;  %v2195_v13 = vsel %vm1762_vm2, %v6159_v7, 0.0 }
 0x43a   :  { %5171 = vpow2.f32 %v2107_v35  ;;  %v1977_v46 = vsub.f32 %v5895_v32, %v1831_v58 }
 0x43b   :  { %v6162_v3 = vpop.eup %5161  ;;  %v2061_v39 = vmul.f32 1.442695, %v1976_v63 }
 0x43c   :  { %v1834_v28 = vpop.xlane.xlu1 %1833  ;;  %v2276_v17 = vsel %vm1762_vm2, %v6162_v3, 0.0  ;;  %v6169_v51 = vpop.eup %5163  ;;  %v2063_v43 = vmul.f32 1.442695, %v1977_v46 }
 0x43d   :  { %5173 = vpow2.f32 %v2061_v39  ;;  %v1978_v44 = vsub.f32 %v5900_v12, %v1834_v28  ;;  %2277 = vadd.xlane.f32.xlu1 %v2276_v17  ;;  %2196 = vadd.xlane.f32.xlu0 %v2195_v13  ;;  %v1903_v1 = vpop.xlane.xlu0 %1902  ;;  %v2273_v19 = vsel %vm1762_vm2, %v6169_v51, 0.0 }
 0x43e   :  { %5175 = vpow2.f32 %v2059_v4  ;;  %v2001_v48 = vsub.f32 %v5904_v56, %v1903_v1 }
 0x43f   :  { %v6172_v26 = vpop.eup %5165  ;;  %v2065_v32 = vmul.f32 1.442695, %v1978_v44  ;;  %v6827_v44 = vld [vmem:[#allocation30_spill] sm:$0xff] }
 0x440   :  { %v1906_v31 = vpop.xlane.xlu1 %1905  ;;  %v2204_v35 = vsel %vm1762_vm2, %v6172_v26, 0.0  ;;  %v6179_v53 = vpop.eup %5167  ;;  %v2111_v49 = vmul.f32 1.442695, %v2001_v48 }
 0x441   :  { %5177 = vpow2.f32 %v2065_v32  ;;  %v2002_v12 = vsub.f32 %v5908_v37, %v1906_v31  ;;  %2205 = vadd.xlane.f32.xlu1 %v2204_v35  ;;  %2274 = vadd.xlane.f32.xlu0 %v2273_v19  ;;  %v1861_v10 = vpop.xlane.xlu0 %1860  ;;  %v2201_v39 = vsel %vm1762_vm2, %v6179_v53, 0.0 }
 0x442   :  { %5179 = vpow2.f32 %v2063_v43  ;;  %v1987_v63 = vsub.f32 %v5914_v16, %v1861_v10 }
 0x443   :  { %v6182_v41 = vpop.eup %5169  ;;  %v2113_v56 = vmul.f32 1.442695, %v2002_v12 }
 0x444   :  { %v1864_v58 = vpop.xlane.xlu1 %1863  ;;  %v2282_v4 = vsel %vm1762_vm2, %v6182_v41, 0.0  ;;  %v6189_v46 = vpop.eup %5171  ;;  %v2083_v13 = vmul.f32 1.442695, %v1987_v63 }
 0x445   :  { %5181 = vpow2.f32 %v2113_v56  ;;  %v1988_v37 = vsub.f32 %v5917_v20, %v1864_v58  ;;  %2283 = vadd.xlane.f32.xlu1 %v2282_v4  ;;  %2202 = vadd.xlane.f32.xlu0 %v2201_v39  ;;  %v1933_v28 = vpop.xlane.xlu0 %1932  ;;  %v2279_v48 = vsel %vm1762_vm2, %v6189_v46, 0.0  ;;  %v6828_v20 = vld [vmem:[#allocation31_spill] sm:$0xff]  ;;  %v6829_v56 = vld [vmem:[#allocation32_spill] sm:$0xff] }
 0x446   :  { %5183 = vpow2.f32 %v2111_v49  ;;  %v2011_v1 = vsub.f32 %v6827_v44, %v1933_v28  ;;  %v6830_v28 = vld [vmem:[#allocation33_spill] sm:$0xff] }
 0x447   :  { %v6192_v17 = vpop.eup %5173  ;;  %v2085_v16 = vmul.f32 1.442695, %v1988_v37 }
 0x448   :  { %v1936_v43 = vpop.xlane.xlu1 %1935  ;;  %v2210_v32 = vsel %vm1762_vm2, %v6192_v17, 0.0  ;;  %v6199_v31 = vpop.eup %5175  ;;  %v2131_v10 = vmul.f32 1.442695, %v2011_v1 }
 0x449   :  { %5185 = vpow2.f32 %v2085_v16  ;;  %v2012_v35 = vsub.f32 %v6828_v20, %v1936_v43  ;;  %2211 = vadd.xlane.f32.xlu1 %v2210_v32  ;;  %2280 = vadd.xlane.f32.xlu0 %v2279_v48  ;;  %v1867_v19 = vpop.xlane.xlu0 %1866  ;;  %v2207_v39 = vsel %vm1762_vm2, %v6199_v31, 0.0  ;;  %v6832_v32 = vld [vmem:[#allocation34_spill] sm:$0xff] }
 0x44a   :  { %5187 = vpow2.f32 %v2083_v13  ;;  %v1989_v63 = vsub.f32 %v6829_v56, %v1867_v19  ;;  %v6833_v56 = vld [vmem:[#allocation35_spill] sm:$0xff] }
 0x44b   :  { %v6202_v12 = vpop.eup %5177  ;;  %v2133_v49 = vmul.f32 1.442695, %v2012_v35 }
 0x44c   :  { %v1870_v58 = vpop.xlane.xlu1 %1869  ;;  %v2216_v4 = vsel %vm1762_vm2, %v6202_v12, 0.0  ;;  %v6209_v37 = vpop.eup %5179  ;;  %v2087_v1 = vmul.f32 1.442695, %v1989_v63 }
 0x44d   :  { %5189 = vpow2.f32 %v2133_v49  ;;  %v1990_v16 = vsub.f32 %v6830_v28, %v1870_v58  ;;  %2217 = vadd.xlane.f32.xlu1 %v2216_v4  ;;  %2208 = vadd.xlane.f32.xlu0 %v2207_v39  ;;  %v1939_v44 = vpop.xlane.xlu0 %1938  ;;  %v2213_v19 = vsel %vm1762_vm2, %v6209_v37, 0.0  ;;  %v6835_v28 = vld [vmem:[#allocation36_spill] sm:$0xff] }
 0x44e   :  { %5191 = vpow2.f32 %v2131_v10  ;;  %v2013_v48 = vsub.f32 %v6832_v32, %v1939_v44 }
 0x44f   :  { %v6212_v13 = vpop.eup %5181  ;;  %v2089_v43 = vmul.f32 1.442695, %v1990_v16 }
 0x450   :  { %6831 = vst [vmem:[#allocation30_spill] sm:$0xff] %v6212_v13  ;;  %v1942_v20 = vpop.xlane.xlu1 %1941  ;;  %v2288_v35 = vsel %vm1762_vm2, %v6212_v13, 0.0  ;;  %v6219_v49 = vpop.eup %5183  ;;  %v2135_v63 = vmul.f32 1.442695, %v2013_v48 }
 0x451   :  { %5193 = vpow2.f32 %v2089_v43  ;;  %v2014_v58 = vsub.f32 %v6833_v56, %v1942_v20  ;;  %2289 = vadd.xlane.f32.xlu1 %v2288_v35  ;;  %2214 = vadd.xlane.f32.xlu0 %v2213_v19  ;;  %v1873_v4 = vpop.xlane.xlu0 %1872  ;;  %v2285_v13 = vsel %vm1762_vm2, %v6219_v49, 0.0  ;;  %v6836_v20 = vld [vmem:[#allocation37_spill] sm:$0xff] }
 0x452   :  { %5195 = vpow2.f32 %v2087_v1  ;;  %v1991_v16 = vsub.f32 %v6835_v28, %v1873_v4 }
 0x453   :  { %v6222_v10 = vpop.eup %5185  ;;  %v2137_v39 = vmul.f32 1.442695, %v2014_v58 }
 0x454   :  { %6834 = vst [vmem:[#allocation31_spill] sm:$0xff] %v6222_v10  ;;  %v1876_v44 = vpop.xlane.xlu1 %1875  ;;  %v2246_v32 = vsel %vm1762_vm2, %v6222_v10, 0.0  ;;  %v6229_v43 = vpop.eup %5187  ;;  %v2091_v48 = vmul.f32 1.442695, %v1991_v16 }
 0x455   :  { %5197 = vpow2.f32 %v2137_v39  ;;  %v1992_v35 = vsub.f32 %v6836_v20, %v1876_v44  ;;  %2247 = vadd.xlane.f32.xlu1 %v2246_v32  ;;  %2286 = vadd.xlane.f32.xlu0 %v2285_v13  ;;  %v1945_v19 = vpop.xlane.xlu0 %1944  ;;  %v2243_v10 = vsel %vm1762_vm2, %v6229_v43, 0.0 }
 0x456   :  { %5199 = vpow2.f32 %v2135_v63  ;;  %v2015_v58 = vsub.f32 %v5955_v55, %v1945_v19 }
 0x457   :  { %v6232_v1 = vpop.eup %5189  ;;  %v2093_v56 = vmul.f32 1.442695, %v1992_v35 }
 0x458   :  { %v1948_v4 = vpop.xlane.xlu1 %1947  ;;  %v2318_v28 = vsel %vm1762_vm2, %v6232_v1, 0.0  ;;  %v6239_v39 = vpop.eup %5191  ;;  %v2139_v16 = vmul.f32 1.442695, %v2015_v58 }
 0x459   :  { %5201 = vpow2.f32 %v2093_v56  ;;  %v2016_v13 = vsub.f32 %v5959_v59, %v1948_v4  ;;  %2319 = vadd.xlane.f32.xlu1 %v2318_v28  ;;  %2244 = vadd.xlane.f32.xlu0 %v2243_v10  ;;  %v1879_v44 = vpop.xlane.xlu0 %1878  ;;  %v2315_v19 = vsel %vm1762_vm2, %v6239_v39, 0.0 }
 0x45a   :  { %5203 = vpow2.f32 %v2091_v48  ;;  %v1993_v32 = vsub.f32 %v5965_v22, %v1879_v44 }
 0x45b   :  { %v6242_v63 = vpop.eup %5193  ;;  %v2141_v55 = vmul.f32 1.442695, %v2016_v13 }
 0x45c   :  { %6837 = vst [vmem:[#allocation32_spill] sm:$0xff] %v6242_v63  ;;  %v1882_v20 = vpop.xlane.xlu1 %1881  ;;  %v2252_v35 = vsel %vm1762_vm2, %v6242_v63, 0.0  ;;  %v6249_v56 = vpop.eup %5195  ;;  %v2095_v22 = vmul.f32 1.442695, %v1993_v32 }
 0x45d   :  { %5205 = vpow2.f32 %v2141_v55  ;;  %v1994_v59 = vsub.f32 %v5968_v24, %v1882_v20  ;;  %2253 = vadd.xlane.f32.xlu1 %v2252_v35  ;;  %2316 = vadd.xlane.f32.xlu0 %v2315_v19  ;;  %v6252_v10 = vpop.xlane.xlu0 %1950  ;;  %v2249_v13 = vsel %vm1762_vm2, %v6249_v56, 0.0 }
 0x45e   :  { %5207 = vpow2.f32 %v2139_v16 }
 0x45f   :  { %v6254_v48 = vpop.eup %5197  ;;  %v2097_v58 = vmul.f32 1.442695, %v1994_v59 }
 0x460   :  { %6838 = vst [vmem:[#allocation33_spill] sm:$0xff] %v6254_v48  ;;  %v1954_v4 = vpop.xlane.xlu1 %1953  ;;  %v2324_v28 = vsel %vm1762_vm2, %v6254_v48, 0.0  ;;  %v6260_v44 = vpop.eup %5199 }
 0x461   :  { %6839 = vst [vmem:[#allocation34_spill] sm:$0xff] %v6260_v44  ;;  %5209 = vpow2.f32 %v2097_v58  ;;  %2325 = vadd.xlane.f32.xlu1 %v2324_v28  ;;  %2250 = vadd.xlane.f32.xlu0 %v2249_v13  ;;  %v1909_v24 = vpop.xlane.xlu0 %1908  ;;  %v2321_v19 = vsel %vm1762_vm2, %v6260_v44, 0.0 }
 0x462   :  { %v2003_v55 = vsub.f32 %v5982_v30, %v1909_v24  ;;  %5211 = vpow2.f32 %v2095_v22 }
 0x463   :  { %v6263_v20 = vpop.eup %5201 }
 0x464   :  { %6840 = vst [vmem:[#allocation35_spill] sm:$0xff] %v6263_v20  ;;  %v2115_v16 = vmul.f32 1.442695, %v2003_v55  ;;  %v1912_v32 = vpop.xlane.xlu1 %1911  ;;  %v2258_v35 = vsel %vm1762_vm2, %v6263_v20, 0.0  ;;  %v6269_v59 = vpop.eup %5203 }
 0x465   :  { %6841 = vst [vmem:[#allocation36_spill] sm:$0xff] %v6269_v59  ;;  %v2004_v58 = vsub.f32 %v5984_v34, %v1912_v32  ;;  %2259 = vadd.xlane.f32.xlu1 %v2258_v35  ;;  %2322 = vadd.xlane.f32.xlu0 %v2321_v19  ;;  %v1915_v28 = vpop.xlane.xlu0 %1914  ;;  %v2255_v48 = vsel %vm1762_vm2, %v6269_v59, 0.0  ;;  %v6844_v34 = vld [vmem:[#allocation40_spill] sm:$0xff] }
 0x466   :  { %v2005_v30 = vsub.f32 %v5990_v60, %v1915_v28  ;;  %5213 = vpow2.f32 %v2115_v16 }
 0x467   :  { %v6273_v13 = vpop.eup %5205  ;;  %v2117_v22 = vmul.f32 1.442695, %v2004_v58 }
 0x468   :  { %6842 = vst [vmem:[#allocation37_spill] sm:$0xff] %v6273_v13  ;;  %v2119_v24 = vmul.f32 1.442695, %v2005_v30  ;;  %v1918_v55 = vpop.xlane.xlu1 %1917  ;;  %v2330_v20 = vsel %vm1762_vm2, %v6273_v13, 0.0  ;;  %v6279_v44 = vpop.eup %5207 }
 0x469   :  { %6843 = vst [vmem:[#allocation44_spill] sm:$0xff] %v6279_v44  ;;  %5215 = vpow2.f32 %v2117_v22  ;;  %v2006_v32 = vsub.f32 %v6844_v34, %v1918_v55  ;;  %2331 = vadd.xlane.f32.xlu1 %v2330_v20  ;;  %2256 = vadd.xlane.f32.xlu0 %v2255_v48  ;;  %v1921_v60 = vpop.xlane.xlu0 %1920  ;;  %v2327_v13 = vsel %vm1762_vm2, %v6279_v44, 0.0  ;;  %v6846_v20 = vld [vmem:[#allocation41_spill] sm:$0xff]  ;;  %v6847_v55 = vld [vmem:[#allocation38_spill] sm:$0xff] }
 0x46a   :  { %v2007_v35 = vsub.f32 %v5998_v38, %v1921_v60  ;;  %5217 = vpow2.f32 %v2119_v24  ;;  %v2017_v24 = vsub.f32 %v6847_v55, %v6252_v10  ;;  %v6848_v34 = vld [vmem:[#allocation42_spill] sm:$0xff]  ;;  %v6849_v60 = vld [vmem:[#allocation39_spill] sm:$0xff] }
 0x46b   :  { %v6283_v16 = vpop.eup %5209  ;;  %v2121_v19 = vmul.f32 1.442695, %v2006_v32 }
 0x46c   :  { %6845 = vst [vmem:[#allocation40_spill] sm:$0xff] %v6283_v16  ;;  %v2123_v58 = vmul.f32 1.442695, %v2007_v35  ;;  %v1924_v28 = vpop.xlane.xlu1 %1923  ;;  %v2264_v30 = vsel %vm1762_vm2, %v6283_v16, 0.0  ;;  %v6289_v22 = vpop.eup %5211  ;;  %v2018_v35 = vsub.f32 %v6849_v60, %v1954_v4 }
 0x46d   :  { %5219 = vpow2.f32 %v2121_v19  ;;  %v2008_v48 = vsub.f32 %v6846_v20, %v1924_v28  ;;  %2265 = vadd.xlane.f32.xlu1 %v2264_v30  ;;  %2328 = vadd.xlane.f32.xlu0 %v2327_v13  ;;  %v1927_v38 = vpop.xlane.xlu0 %1926  ;;  %v2261_v44 = vsel %vm1762_vm2, %v6289_v22, 0.0  ;;  %v2143_v28 = vmul.f32 1.442695, %v2017_v24 }
 0x46e   :  { %v2009_v32 = vsub.f32 %v6848_v34, %v1927_v38  ;;  %5221 = vpow2.f32 %v2123_v58  ;;  %v2145_v10 = vmul.f32 1.442695, %v2018_v35 }
 0x46f   :  { %v2125_v16 = vmul.f32 1.442695, %v2008_v48 }
 0x470   :  { %v2127_v59 = vmul.f32 1.442695, %v2009_v32  ;;  %v1930_v63 = vpop.xlane.xlu1 %1929  ;;  %v6298_v19 = vpop.eup %5213 }
 0x471   :  { %5223 = vpow2.f32 %v2125_v16  ;;  %v2010_v13 = vsub.f32 %v6008_v15, %v1930_v63  ;;  %2262 = vadd.xlane.f32.xlu0 %v2261_v44  ;;  %v2291_v58 = vsel %vm1762_vm2, %v6298_v19, 0.0 }
 0x472   :  { %5225 = vpow2.f32 %v2127_v59 }
 0x473   :  { %v6301_v30 = vpop.eup %5215  ;;  %v2129_v20 = vmul.f32 1.442695, %v2010_v13 }
 0x474   :  { %v2294_v4 = vsel %vm1762_vm2, %v6301_v30, 0.0  ;;  %v6307_v48 = vpop.eup %5217 }
 0x475   :  { %5227 = vpow2.f32 %v2129_v20  ;;  %2295 = vadd.xlane.f32.xlu1 %v2294_v4  ;;  %2292 = vadd.xlane.f32.xlu0 %v2291_v58  ;;  %v2297_v44 = vsel %vm1762_vm2, %v6307_v48, 0.0 }
 0x476   :  { %5229 = vpow2.f32 %v2143_v28 }
 0x477   :  { %v6309_v15 = vpop.eup %5219  ;;  %5231 = vpow2.f32 %v2145_v10 }
 0x478   :  { %v2300_v63 = vsel %vm1762_vm2, %v6309_v15, 0.0  ;;  %v6315_v59 = vpop.eup %5221 }
 0x479   :  { %2301 = vadd.xlane.f32.xlu1 %v2300_v63  ;;  %2298 = vadd.xlane.f32.xlu0 %v2297_v44  ;;  %v2303_v34 = vsel %vm1762_vm2, %v6315_v59, 0.0 }
 0x47a   :  { %v2152_v16 = vpop.xlane.xlu1 %2151 }
 0x47b   :  { %v6317_v38 = vpop.eup %5223  ;;  %5233 = vrcp.f32 %v2152_v16  ;;  %v2149_v55 = vpop.xlane.xlu0 %2148 }
 0x47c   :  { %5235 = vrcp.f32 %v2149_v55  ;;  %v2306_v24 = vsel %vm1762_vm2, %v6317_v38, 0.0  ;;  %v6323_v32 = vpop.eup %5225 }
 0x47d   :  { %6850 = vst [vmem:[#allocation41_spill] sm:$0xff] %v6323_v32  ;;  %2307 = vadd.xlane.f32.xlu1 %v2306_v24  ;;  %2304 = vadd.xlane.f32.xlu0 %v2303_v34  ;;  %v2309_v28 = vsel %vm1762_vm2, %v6323_v32, 0.0 }
 0x47f   :  { %v6325_v60 = vpop.eup %5227 }
 0x480   :  { %v6327_v35 = vpop.eup %5229  ;;  %v2312_v13 = vsel %vm1762_vm2, %v6325_v60, 0.0 }
 0x481   :  { %6851 = vst [vmem:[#allocation38_spill] sm:$0xff] %v6327_v35  ;;  %v6333_v10 = vpop.eup %5231  ;;  %2313 = vadd.xlane.f32.xlu1 %v2312_v13  ;;  %2310 = vadd.xlane.f32.xlu0 %v2309_v28  ;;  %v2333_v63 = vsel %vm1762_vm2, %v6327_v35, 0.0  ;;  %v6853_v13 = vld [vmem:[#allocation27_spill] sm:$0xff] }
 0x482   :  { %6852 = vst [vmem:[#allocation42_spill] sm:$0xff] %v6333_v10  ;;  %v2158_v20 = vpop.xlane.xlu1 %2157  ;;  %v2336_v58 = vsel %vm1762_vm2, %v6333_v10, 0.0 }
 0x483   :  { %5237 = vrcp.f32 %v2158_v20  ;;  %v2155_v4 = vpop.xlane.xlu0 %2154  ;;  %v6854_v20 = vld [vmem:[#allocation24_spill] sm:$0xff] }
 0x484   :  { %5239 = vrcp.f32 %v2155_v4 }
 0x485   :  { %v5234_v44 = vpop.eup %5233  ;;  %2337 = vadd.xlane.f32.xlu1 %v2336_v58  ;;  %2334 = vadd.xlane.f32.xlu0 %v2333_v63 }
 0x486   :  { %v5236_v16 = vpop.eup %5235  ;;  %v2404_v24 = vmul.f32 %v5234_v44, %v6020_v27 }
 0x487   :  { %v2403_v55 = vmul.f32 %v5236_v16, %v6022_v62 }
 0x489   :  { %4940 = vmatprep.mubr.msk.f32.mxu1 %vm1762_vm2, %v2403_v55  ;;  %v6855_v55 = vld [vmem:[#allocation43_spill] sm:$0xff] }
 0x48a   :  { %v2164_v34 = vpop.xlane.xlu1 %2163  ;;  %4941 = vmatmul.mubr.msk.f32.vlgmr.msra.gmra.mrb[34].mxu1 %vm1762_vm2, %v2404_v24 }
 0x48b   :  { %5241 = vrcp.f32 %v2164_v34  ;;  %4967 = vmatpush3.xpose.msk.msra.mxu1 %vm1762_vm2, %v6853_v13  ;;  %v2161_v28 = vpop.xlane.xlu0 %2160 }
 0x48c   :  { %4994 = vmatprep.subr.msk.mxu1 %vm1762_vm2, %v6854_v20  ;;  %5243 = vrcp.f32 %v2161_v28 }
 0x48d   :  { %v5238_v4 = vpop.eup %5237 }
 0x48e   :  { %v5240_v58 = vpop.eup %5239  ;;  %v2406_v27 = vmul.f32 %v5238_v4, %v6030_v42 }
 0x48f   :  { %v2405_v62 = vmul.f32 %v5240_v58, %v6032_v61 }
 0x491   :  { %4943 = vmatprep.mubr.msk.f32.mxu1 %vm1762_vm2, %v2405_v62 }
 0x492   :  { %4944 = vmatmul.mubr.msk.f32.gmra.mrb[36].mxu1 %vm1762_vm2, %v2406_v27 }
 0x495   :  { %v5242_v63 = vpop.eup %5241 }
 0x496   :  { %v5244_v44 = vpop.eup %5243  ;;  %v2408_v24 = vmul.f32 %v5242_v63, %v6855_v55 }
 0x497   :  { %v2407_v16 = vmul.f32 %v5244_v44, %v6040_v47 }
 0x499   :  { %4946 = vmatprep.mubr.msk.f32.mxu1 %vm1762_vm2, %v2407_v16 }
 0x49a   :  { %v2224_v34 = vpop.xlane.xlu1 %2223  ;;  %4947 = vmatmul.mubr.msk.f32.gmra.mrb[38].mxu1 %vm1762_vm2, %v2408_v24 }
 0x49b   :  { %v2221_v13 = vpop.xlane.xlu0 %2220 }
 0x49e   :  { %v2170_v28 = vpop.xlane.xlu1 %2169 }
 0x49f   :  { %5245 = vrcp.f32 %v2170_v28  ;;  %v2167_v61 = vpop.xlane.xlu0 %2166 }
 0x4a0   :  { %5247 = vrcp.f32 %v2167_v61 }
 0x4a2   :  { %v2230_v42 = vpop.xlane.xlu1 %2229 }
 0x4a3   :  { %v2227_v27 = vpop.xlane.xlu0 %2226 }
 0x4a6   :  { %v2176_v4 = vpop.xlane.xlu1 %2175 }
 0x4a7   :  { %5249 = vrcp.f32 %v2176_v4  ;;  %v6856_v4 = vld [vmem:[#allocation29_spill] sm:$0xff] }
 0x4a9   :  { %v5246_v58 = vpop.eup %5245 }
 0x4aa   :  { %v5248_v62 = vpop.eup %5247  ;;  %v2410_v47 = vmul.f32 %v5246_v58, %v6062_v21  ;;  %v2236_v63 = vpop.xlane.xlu1 %2235 }
 0x4ab   :  { %v2409_v35 = vmul.f32 %v5248_v62, %v6065_v50 }
 0x4ad   :  { %4949 = vmatprep.mubr.msk.f32.mxu1 %vm1762_vm2, %v2409_v35 }
 0x4ae   :  { %4950 = vmatmul.mubr.msk.f32.gmra.mrb[40].mxu1 %vm1762_vm2, %v2410_v47  ;;  %v2173_v44 = vpop.xlane.xlu0 %2172  ;;  %v6857_v47 = vld [vmem:[#allocation25_spill] sm:$0xff] }
 0x4af   :  { %5251 = vrcp.f32 %v2173_v44 }
 0x4b1   :  { %v5250_v61 = vpop.eup %5249 }
 0x4b2   :  { %v2182_v16 = vpop.xlane.xlu1 %2181  ;;  %v2233_v55 = vpop.xlane.xlu0 %2232  ;;  %v2412_v35 = vmul.f32 %v5250_v61, %v6082_v36 }
 0x4b3   :  { %5253 = vrcp.f32 %v2182_v16 }
 0x4b6   :  { %v2188_v24 = vpop.xlane.xlu1 %2187  ;;  %v2179_v28 = vpop.xlane.xlu0 %2178 }
 0x4b7   :  { %5255 = vrcp.f32 %v2179_v28 }
 0x4b8   :  { %5257 = vrcp.f32 %v2188_v24 }
 0x4b9   :  { %v5252_v10 = vpop.eup %5251 }
 0x4ba   :  { %v2242_v32 = vpop.xlane.xlu1 %2241  ;;  %v2185_v50 = vpop.xlane.xlu0 %2184  ;;  %v2411_v21 = vmul.f32 %v5252_v10, %v6094_v9 }
 0x4bb   :  { %5259 = vrcp.f32 %v2185_v50 }
 0x4bc   :  { %4954 = vmatprep.mubr.msk.f32.mxu0 %vm1762_vm2, %v2411_v21  ;;  %5261 = vrcp.f32 %v2221_v13 }
 0x4bd   :  { %4955 = vmatmul.mubr.msk.f32.vlgmr.msra.gmra.mrb[46].mxu0 %vm1762_vm2, %v2412_v35  ;;  %v5254_v44 = vpop.eup %5253 }
 0x4be   :  { %4981 = vmatpush3.xpose.msk.msra.mxu0 %vm1762_vm2, %v6856_v4  ;;  %v2194_v58 = vpop.xlane.xlu1 %2193  ;;  %v2239_v62 = vpop.xlane.xlu0 %2238  ;;  %v2414_v24 = vmul.f32 %v5254_v44, %v6102_v0 }
 0x4bf   :  { %5008 = vmatprep.subr.msk.mxu0 %vm1762_vm2, %v6857_v47  ;;  %5263 = vrcp.f32 %v2194_v58 }
 0x4c1   :  { %v5256_v16 = vpop.eup %5255 }
 0x4c2   :  { %v2272_v9 = vpop.xlane.xlu1 %2271  ;;  %v2191_v10 = vpop.xlane.xlu0 %2190  ;;  %v2413_v36 = vmul.f32 %v5256_v16, %v6109_v40 }
 0x4c3   :  { %5265 = vrcp.f32 %v2191_v10  ;;  %v5258_v28 = vpop.eup %5257 }
 0x4c4   :  { %4957 = vmatprep.mubr.msk.f32.mxu0 %vm1762_vm2, %v2413_v36  ;;  %5267 = vrcp.f32 %v2224_v34  ;;  %v2416_v13 = vmul.f32 %v5258_v28, %v6112_v25 }
 0x4c5   :  { %v5260_v61 = vpop.eup %5259  ;;  %4958 = vmatmul.mubr.msk.f32.gmra.mrb[48].mxu0 %vm1762_vm2, %v2414_v24  ;;  %5269 = vrcp.f32 %v2227_v27 }
 0x4c6   :  { %v2200_v50 = vpop.xlane.xlu1 %2199  ;;  %v2269_v21 = vpop.xlane.xlu0 %2268  ;;  %v2415_v35 = vmul.f32 %v5260_v61, %v6119_v11  ;;  %5271 = vrcp.f32 %v2230_v42 }
 0x4c7   :  { %5273 = vrcp.f32 %v2233_v55  ;;  %v5262_v4 = vpop.eup %5261 }
 0x4c8   :  { %4960 = vmatprep.mubr.msk.f32.mxu0 %vm1762_vm2, %v2415_v35  ;;  %5275 = vrcp.f32 %v2200_v50  ;;  %v2427_v27 = vmul.f32 %v5262_v4, %v6055_v6 }
 0x4c9   :  { %4961 = vmatmul.mubr.msk.f32.gmra.mrb[50].mxu0 %vm1762_vm2, %v2416_v13  ;;  %v5264_v58 = vpop.eup %5263  ;;  %v6859_v13 = vld [vmem:[#allocation26_spill] sm:$0xff] }
 0x4ca   :  { %v2278_v0 = vpop.xlane.xlu1 %2277  ;;  %v2197_v40 = vpop.xlane.xlu0 %2196  ;;  %v2418_v25 = vmul.f32 %v5264_v58, %v6132_v2 }
 0x4cb   :  { %5277 = vrcp.f32 %v2197_v40 }
 0x4cc   :  { %5279 = vrcp.f32 %v2236_v63 }
 0x4cd   :  { %v5266_v44 = vpop.eup %5265  ;;  %5281 = vrcp.f32 %v2239_v62 }
 0x4ce   :  { %v2206_v16 = vpop.xlane.xlu1 %2205  ;;  %v2275_v34 = vpop.xlane.xlu0 %2274  ;;  %v2417_v11 = vmul.f32 %v5266_v44, %v6139_v14  ;;  %5283 = vrcp.f32 %v2242_v32 }
 0x4cf   :  { %v5268_v42 = vpop.eup %5267  ;;  %5285 = vrcp.f32 %v2269_v21 }
 0x4d0   :  { %4963 = vmatprep.mubr.msk.f32.mxu0 %vm1762_vm2, %v2417_v11  ;;  %v5270_v55 = vpop.eup %5269  ;;  %5287 = vrcp.f32 %v2206_v16  ;;  %v2428_v63 = vmul.f32 %v5268_v42, %v6053_v29  ;;  %v6858_v29 = vld [vmem:[#allocation28_spill] sm:$0xff] }
 0x4d1   :  { %4964 = vmatmul.mubr.msk.f32.gmra.mrb[52].mxu0 %vm1762_vm2, %v2418_v25  ;;  %v5272_v24 = vpop.eup %5271  ;;  %v2429_v32 = vmul.f32 %v5270_v55, %v6075_v57 }
 0x4d2   :  { %v2284_v10 = vpop.xlane.xlu1 %2283  ;;  %v2203_v36 = vpop.xlane.xlu0 %2202  ;;  %4982 = vmatprep.mubr.msk.f32.mxu0 %vm1762_vm2, %v2427_v27  ;;  %v2430_v57 = vmul.f32 %v5272_v24, %v6072_v8 }
 0x4d3   :  { %v5274_v14 = vpop.eup %5273  ;;  %5289 = vrcp.f32 %v2203_v36 }
 0x4d4   :  { %v5276_v2 = vpop.eup %5275  ;;  %5291 = vrcp.f32 %v2272_v9  ;;  %v2431_v9 = vmul.f32 %v5274_v14, %v6099_v18 }
 0x4d5   :  { %v5278_v62 = vpop.eup %5277  ;;  %4983 = vmatmul.mubr.msk.f32.vlgmr.msra.gmra.mrb[54].mxu0 %vm1762_vm2, %v2428_v63  ;;  %v2420_v50 = vmul.f32 %v5276_v2, %v6152_v52  ;;  %5293 = vrcp.f32 %v2275_v34 }
 0x4d6   :  { %v2212_v6 = vpop.xlane.xlu1 %2211  ;;  %v2281_v28 = vpop.xlane.xlu0 %2280  ;;  %5009 = vmatpush3.xpose.msk.msra.mxu0 %vm1762_vm2, %v6857_v47  ;;  %4985 = vmatprep.mubr.msk.f32.mxu0 %vm1762_vm2, %v2429_v32  ;;  %v2419_v61 = vmul.f32 %v5278_v62, %v6159_v7  ;;  %5295 = vrcp.f32 %v2278_v0 }
 0x4d7   :  { %5036 = vmatprep.subr.msk.mxu0 %vm1762_vm2, %v6858_v29  ;;  %v5280_v21 = vpop.eup %5279  ;;  %5297 = vrcp.f32 %v2212_v6 }
 0x4d8   :  { %4968 = vmatprep.mubr.msk.f32.mxu1 %vm1762_vm2, %v2419_v61  ;;  %v5282_v35 = vpop.eup %5281  ;;  %5299 = vrcp.f32 %v2281_v28  ;;  %v2432_v18 = vmul.f32 %v5280_v21, %v6088_v5 }
 0x4d9   :  { %4969 = vmatmul.mubr.msk.f32.vlgmr.msra.gmra.mrb[42].mxu1 %vm1762_vm2, %v2420_v50  ;;  %4986 = vmatmul.mubr.msk.f32.gmra.mrb[56].mxu0 %vm1762_vm2, %v2430_v57  ;;  %v5284_v47 = vpop.eup %5283  ;;  %v2433_v40 = vmul.f32 %v5282_v35, %v6129_v45 }
 0x4da   :  { %v2218_v7 = vpop.xlane.xlu1 %2217  ;;  %v2209_v52 = vpop.xlane.xlu0 %2208  ;;  %4995 = vmatpush3.xpose.msk.msra.mxu1 %vm1762_vm2, %v6854_v20  ;;  %4988 = vmatprep.mubr.msk.f32.mxu0 %vm1762_vm2, %v2431_v9  ;;  %v2434_v34 = vmul.f32 %v5284_v47, %v6122_v33 }
 0x4db   :  { %v5286_v8 = vpop.eup %5285  ;;  %5022 = vmatprep.subr.msk.mxu1 %vm1762_vm2, %v6859_v13  ;;  %5301 = vrcp.f32 %v2209_v52 }
 0x4dc   :  { %v5288_v0 = vpop.eup %5287  ;;  %5303 = vrcp.f32 %v2284_v10  ;;  %v2443_v45 = vmul.f32 %v5286_v8, %v6149_v23 }
 0x4dd   :  { %v5290_v4 = vpop.eup %5289  ;;  %4989 = vmatmul.mubr.msk.f32.gmra.mrb[58].mxu0 %vm1762_vm2, %v2432_v18  ;;  %5305 = vrcp.f32 %v2218_v7  ;;  %v2422_v16 = vmul.f32 %v5288_v0, %v6172_v26  ;;  %v6861_v7 = vld [vmem:[#allocation31_spill] sm:$0xff] }
 0x4de   :  { %v2290_v58 = vpop.xlane.xlu1 %2289  ;;  %v2215_v44 = vpop.xlane.xlu0 %2214  ;;  %4991 = vmatprep.mubr.msk.f32.mxu0 %vm1762_vm2, %v2433_v40  ;;  %v2421_v20 = vmul.f32 %v5290_v4, %v6179_v53 }
 0x4df   :  { %5307 = vrcp.f32 %v2215_v44  ;;  %v5292_v5 = vpop.eup %5291 }
 0x4e0   :  { %4971 = vmatprep.mubr.msk.f32.mxu1 %vm1762_vm2, %v2421_v20  ;;  %v5294_v11 = vpop.eup %5293  ;;  %5309 = vrcp.f32 %v2290_v58  ;;  %v2444_v26 = vmul.f32 %v5292_v5, %v6142_v54  ;;  %v6863_v5 = vld [vmem:[#allocation34_spill] sm:$0xff] }
 0x4e1   :  { %4972 = vmatmul.mubr.msk.f32.gmra.mrb[44].mxu1 %vm1762_vm2, %v2422_v16  ;;  %4992 = vmatmul.mubr.msk.f32.gmra.mrb[60].mxu0 %vm1762_vm2, %v2434_v34  ;;  %v5296_v27 = vpop.eup %5295  ;;  %v2445_v55 = vmul.f32 %v5294_v11, %v6169_v51  ;;  %v6862_v16 = vld [vmem:[#allocation32_spill] sm:$0xff]  ;;  %v6864_v11 = vld [vmem:[#allocation33_spill] sm:$0xff] }
 0x4e2   :  { %v2248_v25 = vpop.xlane.xlu1 %2247  ;;  %v2287_v42 = vpop.xlane.xlu0 %2286  ;;  %5010 = vmatprep.mubr.msk.f32.mxu0 %vm1762_vm2, %v2443_v45  ;;  %v2446_v63 = vmul.f32 %v5296_v27, %v6162_v3 }
 0x4e3   :  { %v5298_v53 = vpop.eup %5297  ;;  %5311 = vrcp.f32 %v2287_v42 }
 0x4e4   :  { %v5300_v33 = vpop.eup %5299  ;;  %5313 = vrcp.f32 %v2248_v25  ;;  %v2424_v54 = vmul.f32 %v5298_v53, %v6192_v17 }
 0x4e5   :  { %v5302_v10 = vpop.eup %5301  ;;  %5011 = vmatmul.mubr.msk.f32.vlgmr.msra.gmra.mrb[62].mxu0 %vm1762_vm2, %v2444_v26  ;;  %v2447_v2 = vmul.f32 %v5300_v33, %v6189_v46  ;;  %v6865_v26 = vld [vmem:[#allocation36_spill] sm:$0xff] }
 0x4e6   :  { %v2320_v23 = vpop.xlane.xlu1 %2319  ;;  %v2245_v36 = vpop.xlane.xlu0 %2244  ;;  %5037 = vmatpush3.xpose.msk.msra.mxu0 %vm1762_vm2, %v6858_v29  ;;  %5013 = vmatprep.mubr.msk.f32.mxu0 %vm1762_vm2, %v2445_v55  ;;  %v2423_v24 = vmul.f32 %v5302_v10, %v6199_v31  ;;  %v6866_v55 = vld [vmem:[#allocation35_spill] sm:$0xff] }
 0x4e7   :  { %v5304_v14 = vpop.eup %5303  ;;  %5315 = vrcp.f32 %v2245_v36 }
 0x4e8   :  { %v5306_v51 = vpop.eup %5305  ;;  %4974 = vmatprep.mubr.msk.f32.mxu1 %vm1762_vm2, %v2423_v24  ;;  %5317 = vrcp.f32 %v2320_v23  ;;  %v2448_v17 = vmul.f32 %v5304_v14, %v6182_v41 }
 0x4e9   :  { %v5308_v32 = vpop.eup %5307  ;;  %4975 = vmatmul.mubr.msk.f32.gmra.mrb[46].mxu1 %vm1762_vm2, %v2424_v54  ;;  %5014 = vmatmul.mubr.msk.f32.gmra.mrb[64].mxu0 %vm1762_vm2, %v2446_v63  ;;  %v2426_v3 = vmul.f32 %v5306_v51, %v6202_v12  ;;  %v6867_v54 = vld [vmem:[#allocation44_spill] sm:$0xff] }
 0x4ea   :  { %v2254_v62 = vpop.xlane.xlu1 %2253  ;;  %v2317_v6 = vpop.xlane.xlu0 %2316  ;;  %5016 = vmatprep.mubr.msk.f32.mxu0 %vm1762_vm2, %v2447_v2  ;;  %v2425_v31 = vmul.f32 %v5308_v32, %v6209_v37  ;;  %v6860_v37 = vld [vmem:[#allocation30_spill] sm:$0xff]  ;;  %v6868_v2 = vld [vmem:[#allocation37_spill] sm:$0xff] }
 0x4eb   :  { %5319 = vrcp.f32 %v2317_v6  ;;  %v5310_v28 = vpop.eup %5309 }
 0x4ec   :  { %4977 = vmatprep.mubr.msk.f32.mxu1 %vm1762_vm2, %v2425_v31  ;;  %5321 = vrcp.f32 %v2254_v62  ;;  %v2450_v57 = vmul.f32 %v5310_v28, %v6860_v37 }
 0x4ed   :  { %v5312_v46 = vpop.eup %5311  ;;  %4978 = vmatmul.mubr.msk.f32.gmra.mrb[48].mxu1 %vm1762_vm2, %v2426_v3  ;;  %5017 = vmatmul.mubr.msk.f32.gmra.mrb[66].mxu0 %vm1762_vm2, %v2448_v17  ;;  %v6869_v17 = vld [vmem:[#allocation40_spill] sm:$0xff] }
 0x4ee   :  { %v2326_v61 = vpop.xlane.xlu1 %2325  ;;  %v2251_v50 = vpop.xlane.xlu0 %2250  ;;  %v2449_v29 = vmul.f32 %v5312_v46, %v6219_v49 }
 0x4ef   :  { %5323 = vrcp.f32 %v2251_v50  ;;  %v5314_v21 = vpop.eup %5313 }
 0x4f0   :  { %5019 = vmatprep.mubr.msk.f32.mxu0 %vm1762_vm2, %v2449_v29  ;;  %5325 = vrcp.f32 %v2326_v61  ;;  %v2436_v52 = vmul.f32 %v5314_v21, %v6861_v7 }
 0x4f1   :  { %v5316_v41 = vpop.eup %5315  ;;  %5020 = vmatmul.mubr.msk.f32.gmra.mrb[68].mxu0 %vm1762_vm2, %v2450_v57 }
 0x4f2   :  { %v2260_v12 = vpop.xlane.xlu1 %2259  ;;  %v2323_v9 = vpop.xlane.xlu0 %2322  ;;  %v2435_v35 = vmul.f32 %v5316_v41, %v6229_v43 }
 0x4f3   :  { %5327 = vrcp.f32 %v2323_v9  ;;  %v5318_v47 = vpop.eup %5317 }
 0x4f4   :  { %4996 = vmatprep.mubr.msk.f32.mxu1 %vm1762_vm2, %v2435_v35  ;;  %5329 = vrcp.f32 %v2260_v12  ;;  %v2460_v40 = vmul.f32 %v5318_v47, %v6232_v1 }
 0x4f5   :  { %v5320_v49 = vpop.eup %5319  ;;  %4997 = vmatmul.mubr.msk.f32.vlgmr.msra.gmra.mrb[50].mxu1 %vm1762_vm2, %v2436_v52 }
 0x4f6   :  { %v2332_v8 = vpop.xlane.xlu1 %2331  ;;  %v2257_v18 = vpop.xlane.xlu0 %2256  ;;  %5023 = vmatpush3.xpose.msk.msra.mxu1 %vm1762_vm2, %v6859_v13  ;;  %v2459_v0 = vmul.f32 %v5320_v49, %v6239_v39 }
 0x4f7   :  { %5331 = vrcp.f32 %v2257_v18  ;;  %v5322_v43 = vpop.eup %5321 }
 0x4f8   :  { %5038 = vmatprep.mubr.msk.f32.mxu0 %vm1762_vm2, %v2459_v0  ;;  %5333 = vrcp.f32 %v2332_v8  ;;  %v2438_v34 = vmul.f32 %v5322_v43, %v6862_v16  ;;  %v6872_v43 = vld [vmem:[#allocation38_spill] sm:$0xff] }
 0x4f9   :  { %v5324_v4 = vpop.eup %5323  ;;  %5039 = vmatmul.mubr.msk.f32.vlgmr.msra.gmra.mrb[70].mxu0 %vm1762_vm2, %v2460_v40  ;;  %v6871_v40 = vld [vmem:[#allocation42_spill] sm:$0xff] }
 0x4fa   :  { %v2329_v58 = vpop.xlane.xlu0 %2328  ;;  %v2266_v44 = vpop.xlane.xlu1 %2265  ;;  %v2437_v20 = vmul.f32 %v5324_v4, %v6249_v56 }
 0x4fb   :  { %5335 = vrcp.f32 %v2329_v58  ;;  %v5326_v13 = vpop.eup %5325 }
 0x4fc   :  { %4999 = vmatprep.mubr.msk.f32.mxu1 %vm1762_vm2, %v2437_v20  ;;  %5337 = vrcp.f32 %v2266_v44  ;;  %v2462_v25 = vmul.f32 %v5326_v13, %v6864_v11 }
 0x4fd   :  { %v5328_v39 = vpop.eup %5327  ;;  %5000 = vmatmul.mubr.msk.f32.gmra.mrb[52].mxu1 %vm1762_vm2, %v2438_v34 }
 0x4fe   :  { %v2263_v1 = vpop.xlane.xlu0 %2262  ;;  %v2461_v45 = vmul.f32 %v5328_v39, %v6863_v5  ;;  %v5330_v42 = vpop.eup %5329 }
 0x4ff   :  { %5339 = vrcp.f32 %v2263_v1  ;;  %v2440_v10 = vmul.f32 %v5330_v42, %v6866_v55 }
 0x500   :  { %5041 = vmatprep.mubr.msk.f32.mxu0 %vm1762_vm2, %v2461_v45 }
 0x501   :  { %v5332_v56 = vpop.eup %5331  ;;  %5042 = vmatmul.mubr.msk.f32.gmra.mrb[72].mxu0 %vm1762_vm2, %v2462_v25 }
 0x502   :  { %v2296_v27 = vpop.xlane.xlu1 %2295  ;;  %v2293_v53 = vpop.xlane.xlu0 %2292  ;;  %v2439_v33 = vmul.f32 %v5332_v56, %v6865_v26 }
 0x503   :  { %5341 = vrcp.f32 %v2296_v27  ;;  %v5334_v23 = vpop.eup %5333 }
 0x504   :  { %5343 = vrcp.f32 %v2293_v53  ;;  %5002 = vmatprep.mubr.msk.f32.mxu1 %vm1762_vm2, %v2439_v33  ;;  %v2464_v32 = vmul.f32 %v5334_v23, %v6868_v2 }
 0x505   :  { %v5336_v36 = vpop.eup %5335  ;;  %5003 = vmatmul.mubr.msk.f32.gmra.mrb[54].mxu1 %vm1762_vm2, %v2440_v10 }
 0x506   :  { %v2302_v24 = vpop.xlane.xlu1 %2301  ;;  %v2299_v14 = vpop.xlane.xlu0 %2298  ;;  %v2463_v63 = vmul.f32 %v5336_v36, %v6867_v54 }
 0x507   :  { %5345 = vrcp.f32 %v2302_v24  ;;  %v5338_v51 = vpop.eup %5337 }
 0x508   :  { %5347 = vrcp.f32 %v2299_v14  ;;  %5044 = vmatprep.mubr.msk.f32.mxu0 %vm1762_vm2, %v2463_v63  ;;  %v2442_v28 = vmul.f32 %v5338_v51, %v6869_v17 }
 0x509   :  { %v5340_v62 = vpop.eup %5339  ;;  %5045 = vmatmul.mubr.msk.f32.gmra.mrb[74].mxu0 %vm1762_vm2, %v2464_v32 }
 0x50a   :  { %v2308_v6 = vpop.xlane.xlu1 %2307  ;;  %v2305_v31 = vpop.xlane.xlu0 %2304  ;;  %v2441_v3 = vmul.f32 %v5340_v62, %v6289_v22 }
 0x50b   :  { %5349 = vrcp.f32 %v2308_v6 }
 0x50c   :  { %5351 = vrcp.f32 %v2305_v31  ;;  %5005 = vmatprep.mubr.msk.f32.mxu1 %vm1762_vm2, %v2441_v3 }
 0x50d   :  { %v5342_v46 = vpop.eup %5341  ;;  %5006 = vmatmul.mubr.msk.f32.gmra.mrb[56].mxu1 %vm1762_vm2, %v2442_v28 }
 0x50e   :  { %v5344_v61 = vpop.eup %5343  ;;  %v2452_v50 = vmul.f32 %v5342_v46, %v6301_v30  ;;  %v2314_v29 = vpop.xlane.xlu1 %2313 }
 0x50f   :  { %v2311_v37 = vpop.xlane.xlu0 %2310  ;;  %5353 = vrcp.f32 %v2314_v29  ;;  %v2451_v57 = vmul.f32 %v5344_v61, %v6298_v19 }
 0x510   :  { %5355 = vrcp.f32 %v2311_v37 }
 0x511   :  { %v5346_v21 = vpop.eup %5345  ;;  %5024 = vmatprep.mubr.msk.f32.mxu1 %vm1762_vm2, %v2451_v57 }
 0x512   :  { %v5348_v22 = vpop.eup %5347  ;;  %5025 = vmatmul.mubr.msk.f32.vlgmr.msra.gmra.mrb[58].mxu1 %vm1762_vm2, %v2452_v50  ;;  %v2338_v41 = vpop.xlane.xlu1 %2337  ;;  %v2454_v9 = vmul.f32 %v5346_v21, %v6309_v15 }
 0x513   :  { %v2335_v12 = vpop.xlane.xlu0 %2334  ;;  %5357 = vrcp.f32 %v2338_v41  ;;  %v2453_v35 = vmul.f32 %v5348_v22, %v6307_v48  ;;  %v6870_v48 = vld [vmem:[#allocation41_spill] sm:$0xff] }
 0x514   :  { %5359 = vrcp.f32 %v2335_v12 }
 0x515   :  { %v5350_v30 = vpop.eup %5349  ;;  %5027 = vmatprep.mubr.msk.f32.mxu1 %vm1762_vm2, %v2453_v35 }
 0x516   :  { %v5352_v7 = vpop.eup %5351  ;;  %5028 = vmatmul.mubr.msk.f32.gmra.mrb[60].mxu1 %vm1762_vm2, %v2454_v9  ;;  %v2456_v19 = vmul.f32 %v5350_v30, %v6317_v38 }
 0x517   :  { %v2455_v52 = vmul.f32 %v5352_v7, %v6315_v59 }
 0x519   :  { %v5354_v47 = vpop.eup %5353  ;;  %5030 = vmatprep.mubr.msk.f32.mxu1 %vm1762_vm2, %v2455_v52 }
 0x51a   :  { %v5356_v49 = vpop.eup %5355  ;;  %5031 = vmatmul.mubr.msk.f32.gmra.mrb[62].mxu1 %vm1762_vm2, %v2456_v19  ;;  %v2458_v15 = vmul.f32 %v5354_v47, %v6325_v60 }
 0x51b   :  { %v2457_v8 = vmul.f32 %v5356_v49, %v6870_v48 }
 0x51d   :  { %v5358_v18 = vpop.eup %5357  ;;  %5033 = vmatprep.mubr.msk.f32.mxu1 %vm1762_vm2, %v2457_v8 }
 0x51e   :  { %v5360_v0 = vpop.eup %5359  ;;  %5034 = vmatmul.mubr.msk.f32.gmra.mrb[64].mxu1 %vm1762_vm2, %v2458_v15  ;;  %v2466_v38 = vmul.f32 %v5358_v18, %v6871_v40 }
 0x51f   :  { %v2465_v59 = vmul.f32 %v5360_v0, %v6872_v43  ;;  %v3843_v43 = vld [vmem:[#allocation2] sm:$0xff] }
 0x521   :  { %5047 = vmatprep.mubr.msk.f32.mxu0 %vm1762_vm2, %v2465_v59  ;;  %v3844_v59 = vld [vmem:[#allocation2 + $0x8] sm:$0xff] }
 0x522   :  { %5048 = vmatmul.mubr.msk.f32.gmra.mrb[76].mxu0 %vm1762_vm2, %v2466_v38 }
 0x55d   :  { %v4942_v4 = vpop.f32.mrb[34].mxu1 }
 0x55e   :  { %v2560_v58 = vpop.f32.mrb[35].mxu1 }
 0x55f   :  { %3523 = vxpose.xlu0.b32.start [1/8] (short) (narrow) %v2560_v58, 8  ;;  %v5090_v58 = vpack.c.bf16 %v3844_v59, %v3843_v43  ;;  %v6877_v59 = vld [vmem:[#allocation13_spill] sm:$0xff] }
 0x561   :  { %5091 = vmatprep.subr.bf16.mxu1 %v5090_v58 }
 0x562   :  { %5093 = vmatpush3.bf16.msra.mxu1 %v5090_v58 }
 0x563   :  { %3524 = vxpose.xlu0.b32.cont [2/8] (short) (narrow) %v4942_v4, 8 }
 0x565   :  { %v4945_v60 = vpop.f32.mrb[36].mxu1 }
 0x566   :  { %v2570_v44 = vpop.f32.mrb[37].mxu1 }
 0x567   :  { %3525 = vxpose.xlu0.b32.cont [3/8] (short) (narrow) %v2570_v44, 8 }
 0x56b   :  { %3526 = vxpose.xlu0.b32.cont [4/8] (short) (narrow) %v4945_v60, 8 }
 0x56d   :  { %v4948_v20 = vpop.f32.mrb[38].mxu1 }
 0x56e   :  { %v2580_v16 = vpop.f32.mrb[39].mxu1 }
 0x56f   :  { %3527 = vxpose.xlu0.b32.cont [5/8] (short) (narrow) %v2580_v16, 8  ;;  %v3845_v16 = vld [vmem:[#allocation2 + $0x10] sm:$0xff] }
 0x573   :  { %3528 = vxpose.xlu0.b32.cont [6/8] (short) (narrow) %v4948_v20, 8 }
 0x581   :  { %v4951_v34 = vpop.f32.mrb[40].mxu1 }
 0x582   :  { %v2590_v13 = vpop.f32.mrb[41].mxu1 }
 0x583   :  { %3529 = vxpose.xlu0.b32.cont [7/8] (short) (narrow) %v2590_v13, 8 }
 0x587   :  { %3530 = vxpose.xlu0.b32.end [8/8] (short) (narrow) %v4951_v34, 8  ;;  %v3846_v34 = vld [vmem:[#allocation2 + $0x18] sm:$0xff] }
 0x588   :  { %v5094_v13 = vpack.c.bf16 %v3846_v34, %v3845_v16 }
 0x58a   :  { %5095 = vmatprep.subr.bf16.mxu1 %v5094_v13 }
 0x58b   :  { %5097 = vmatpush3.bf16.msra.mxu1 %v5094_v13 }
 0x590   :  { %v4956_v39 = vpop.f32.mrb[46].mxu0 }
 0x591   :  { %v2692_v1 = vpop.f32.mrb[47].mxu0 }
 0x592   :  { %3555 = vxpose.xlu1.b32.start [1/8] (short) (narrow) %v2692_v1, 8 }
 0x596   :  { %3556 = vxpose.xlu1.b32.cont [2/8] (short) (narrow) %v4956_v39, 8 }
 0x598   :  { %v4959_v5 = vpop.f32.mrb[48].mxu0 }
 0x599   :  { %v2702_v45 = vpop.f32.mrb[49].mxu0 }
 0x59a   :  { %3557 = vxpose.xlu1.b32.cont [3/8] (short) (narrow) %v2702_v45, 8 }
 0x59c   :  { %v4962_v11 = vpop.f32.mrb[50].mxu0 }
 0x59d   :  { %v2712_v25 = vpop.f32.mrb[51].mxu0 }
 0x59e   :  { %3558 = vxpose.xlu1.b32.cont [4/8] (short) (narrow) %v4959_v5, 8 }
 0x5a2   :  { %3559 = vxpose.xlu1.b32.cont [5/8] (short) (narrow) %v2712_v25, 8 }
 0x5a4   :  { %v4965_v42 = vpop.f32.mrb[52].mxu0 }
 0x5a5   :  { %v2722_v56 = vpop.f32.mrb[53].mxu0 }
 0x5a6   :  { %3560 = vxpose.xlu1.b32.cont [6/8] (short) (narrow) %v4962_v11, 8 }
 0x5a8   :  { %v4984_v27 = vpop.f32.mrb[54].mxu0 }
 0x5a9   :  { %v2956_v53 = vpop.f32.mrb[55].mxu0 }
 0x5aa   :  { %3561 = vxpose.xlu1.b32.cont [7/8] (short) (narrow) %v2722_v56, 8 }
 0x5ac   :  { %v4970_v26 = vpop.f32.mrb[42].mxu1  ;;  %v4987_v33 = vpop.f32.mrb[56].mxu0 }
 0x5ad   :  { %v2824_v55 = vpop.f32.mrb[43].mxu1  ;;  %v2966_v10 = vpop.f32.mrb[57].mxu0 }
 0x5ae   :  { %3562 = vxpose.xlu1.b32.end [8/8] (short) (narrow) %v4965_v42, 8  ;;  %3587 = vxpose.xlu0.b32.start [1/8] (short) (narrow) %v2824_v55, 8 }
 0x5b0   :  { %v4990_v23 = vpop.f32.mrb[58].mxu0 }
 0x5b1   :  { %v2976_v36 = vpop.f32.mrb[59].mxu0 }
 0x5b2   :  { %3619 = vxpose.xlu1.b32.start [1/8] (short) (narrow) %v2956_v53, 8  ;;  %3588 = vxpose.xlu0.b32.cont [2/8] (short) (narrow) %v4970_v26, 8 }
 0x5b4   :  { %v4973_v24 = vpop.f32.mrb[44].mxu1  ;;  %v4993_v14 = vpop.f32.mrb[60].mxu0 }
 0x5b5   :  { %v2834_v54 = vpop.f32.mrb[45].mxu1  ;;  %v2986_v63 = vpop.f32.mrb[61].mxu0 }
 0x5b6   :  { %3620 = vxpose.xlu1.b32.cont [2/8] (short) (narrow) %v4984_v27, 8  ;;  %3589 = vxpose.xlu0.b32.cont [3/8] (short) (narrow) %v2834_v54, 8 }
 0x5b8   :  { %v5012_v51 = vpop.f32.mrb[62].mxu0 }
 0x5b9   :  { %v3220_v2 = vpop.f32.mrb[63].mxu0 }
 0x5ba   :  { %3621 = vxpose.xlu1.b32.cont [3/8] (short) (narrow) %v2966_v10, 8  ;;  %3590 = vxpose.xlu0.b32.cont [4/8] (short) (narrow) %v4973_v24, 8 }
 0x5bc   :  { %v4976_v32 = vpop.f32.mrb[46].mxu1  ;;  %v5015_v62 = vpop.f32.mrb[64].mxu0 }
 0x5bd   :  { %v2844_v6 = vpop.f32.mrb[47].mxu1  ;;  %v3230_v31 = vpop.f32.mrb[65].mxu0 }
 0x5be   :  { %3622 = vxpose.xlu1.b32.cont [4/8] (short) (narrow) %v4987_v33, 8  ;;  %3591 = vxpose.xlu0.b32.cont [5/8] (short) (narrow) %v2844_v6, 8 }
 0x5c0   :  { %v4979_v3 = vpop.f32.mrb[48].mxu1  ;;  %v5018_v17 = vpop.f32.mrb[66].mxu0 }
 0x5c1   :  { %v2854_v28 = vpop.f32.mrb[49].mxu1  ;;  %v3240_v46 = vpop.f32.mrb[67].mxu0 }
 0x5c2   :  { %3623 = vxpose.xlu1.b32.cont [5/8] (short) (narrow) %v2976_v36, 8  ;;  %3592 = vxpose.xlu0.b32.cont [6/8] (short) (narrow) %v4976_v32, 8  ;;  %v6506_v32 = vld [vmem:[%s6738_s5] ss:$0 sm:$0xff] }
 0x5c4   :  { %v5021_v61 = vpop.f32.mrb[68].mxu0 }
 0x5c5   :  { %v3250_v50 = vpop.f32.mrb[69].mxu0 }
 0x5c6   :  { %3624 = vxpose.xlu1.b32.cont [6/8] (short) (narrow) %v4990_v23, 8  ;;  %3593 = vxpose.xlu0.b32.cont [7/8] (short) (narrow) %v2854_v28, 8 }
 0x5c8   :  { %v4998_v29 = vpop.f32.mrb[50].mxu1 }
 0x5c9   :  { %v3088_v37 = vpop.f32.mrb[51].mxu1 }
 0x5ca   :  { %3625 = vxpose.xlu1.b32.cont [7/8] (short) (narrow) %v2986_v63, 8  ;;  %3594 = vxpose.xlu0.b32.end [8/8] (short) (narrow) %v4979_v3, 8 }
 0x5cc   :  { %v5040_v57 = vpop.f32.mrb[70].mxu0 }
 0x5cd   :  { %v3484_v21 = vpop.f32.mrb[71].mxu0 }
 0x5ce   :  { %3626 = vxpose.xlu1.b32.end [8/8] (short) (narrow) %v4993_v14, 8  ;;  %3651 = vxpose.xlu0.b32.start [1/8] (short) (narrow) %v3088_v37, 8 }
 0x5d0   :  { %v5001_v22 = vpop.f32.mrb[52].mxu1 }
 0x5d1   :  { %v3098_v41 = vpop.f32.mrb[53].mxu1 }
 0x5d2   :  { %3683 = vxpose.xlu1.b32.start [1/8] (short) (narrow) %v3220_v2, 8  ;;  %3652 = vxpose.xlu0.b32.cont [2/8] (short) (narrow) %v4998_v29, 8 }
 0x5d4   :  { %v5043_v12 = vpop.f32.mrb[72].mxu0 }
 0x5d5   :  { %v3494_v9 = vpop.f32.mrb[73].mxu0 }
 0x5d6   :  { %3684 = vxpose.xlu1.b32.cont [2/8] (short) (narrow) %v5012_v51, 8  ;;  %3653 = vxpose.xlu0.b32.cont [3/8] (short) (narrow) %v3098_v41, 8 }
 0x5d8   :  { %v5004_v35 = vpop.f32.mrb[54].mxu1 }
 0x5d9   :  { %v3108_v30 = vpop.f32.mrb[55].mxu1 }
 0x5da   :  { %3685 = vxpose.xlu1.b32.cont [3/8] (short) (narrow) %v3230_v31, 8  ;;  %3654 = vxpose.xlu0.b32.cont [4/8] (short) (narrow) %v5001_v22, 8 }
 0x5dc   :  { %v5046_v7 = vpop.f32.mrb[74].mxu0 }
 0x5dd   :  { %v3504_v19 = vpop.f32.mrb[75].mxu0 }
 0x5de   :  { %3686 = vxpose.xlu1.b32.cont [4/8] (short) (narrow) %v5015_v62, 8  ;;  %3655 = vxpose.xlu0.b32.cont [5/8] (short) (narrow) %v3108_v30, 8 }
 0x5e0   :  { %v5007_v52 = vpop.f32.mrb[56].mxu1 }
 0x5e1   :  { %v3118_v47 = vpop.f32.mrb[57].mxu1 }
 0x5e2   :  { %3687 = vxpose.xlu1.b32.cont [5/8] (short) (narrow) %v3240_v46, 8  ;;  %3656 = vxpose.xlu0.b32.cont [6/8] (short) (narrow) %v5004_v35, 8  ;;  %v6874_v46 = vld [vmem:[#allocation8_spill] sm:$0xff]  ;;  %v6875_v35 = vld [vmem:[#allocation11_spill] sm:$0xff] }
 0x5e5   :  { %v5026_v49 = vpop.f32.mrb[58].mxu1 }
 0x5e6   :  { %v3352_v15 = vpop.f32.mrb[59].mxu1  ;;  %3688 = vxpose.xlu1.b32.cont [6/8] (short) (narrow) %v5018_v17, 8  ;;  %3657 = vxpose.xlu0.b32.cont [7/8] (short) (narrow) %v3118_v47, 8  ;;  %v6873_v17 = vld [vmem:[#allocation9_spill] sm:$0xff]  ;;  %v6876_v47 = vld [vmem:[#allocation10_spill] sm:$0xff] }
 0x5e9   :  { %v5029_v48 = vpop.f32.mrb[60].mxu1 }
 0x5ea   :  { %v3362_v8 = vpop.f32.mrb[61].mxu1  ;;  %3689 = vxpose.xlu1.b32.cont [7/8] (short) (narrow) %v3250_v50, 8  ;;  %3658 = vxpose.xlu0.b32.end [8/8] (short) (narrow) %v5007_v52, 8 }
 0x5eb   :  { %v3539_v44 = vpop.trf.xlu0 }
 0x5ed   :  { %v5032_v18 = vpop.f32.mrb[62].mxu1 }
 0x5ee   :  { %v3372_v0 = vpop.f32.mrb[63].mxu1  ;;  %3690 = vxpose.xlu1.b32.end [8/8] (short) (narrow) %v5021_v61, 8  ;;  %3715 = vxpose.xlu0.b32.start [1/8] (short) (narrow) %v3352_v15, 8 }
 0x5f1   :  { %v5035_v40 = vpop.f32.mrb[64].mxu1 }
 0x5f2   :  { %v3382_v38 = vpop.f32.mrb[65].mxu1  ;;  %3747 = vxpose.xlu1.b32.start [1/8] (short) (narrow) %v3484_v21, 8  ;;  %3716 = vxpose.xlu0.b32.cont [2/8] (short) (narrow) %v5026_v49, 8 }
 0x5f5   :  { %v5049_v4 = vpop.f32.mrb[76].mxu0 }
 0x5f6   :  { %v3514_v60 = vpop.f32.mrb[77].mxu0  ;;  %3748 = vxpose.xlu1.b32.cont [2/8] (short) (narrow) %v5040_v57, 8  ;;  %3717 = vxpose.xlu0.b32.cont [3/8] (short) (narrow) %v3362_v8, 8 }
 0x5fa   :  { %3749 = vxpose.xlu1.b32.cont [3/8] (short) (narrow) %v3494_v9, 8  ;;  %3718 = vxpose.xlu0.b32.cont [4/8] (short) (narrow) %v5029_v48, 8 }
 0x5fe   :  { %3750 = vxpose.xlu1.b32.cont [4/8] (short) (narrow) %v5043_v12, 8  ;;  %3719 = vxpose.xlu0.b32.cont [5/8] (short) (narrow) %v3372_v0, 8 }
 0x602   :  { %3751 = vxpose.xlu1.b32.cont [5/8] (short) (narrow) %v3504_v19, 8  ;;  %3720 = vxpose.xlu0.b32.cont [6/8] (short) (narrow) %v5032_v18, 8 }
 0x606   :  { %3752 = vxpose.xlu1.b32.cont [6/8] (short) (narrow) %v5046_v7, 8  ;;  %3721 = vxpose.xlu0.b32.cont [7/8] (short) (narrow) %v3382_v38, 8 }
 0x60a   :  { %3722 = vxpose.xlu0.b32.end [8/8] (short) (narrow) %v5035_v40, 8  ;;  %3753 = vxpose.xlu1.b32.cont [7/8] (short) (narrow) %v3514_v60, 8 }
 0x60e   :  { %3754 = vxpose.xlu1.b32.end [8/8] (short) (narrow) %v5049_v4, 8  ;;  %3779 = vxpose.xlu0.b32.start [1/4] (short) (narrow) %v3539_v44, 64  ;;  %v6878_v44 = vld [vmem:[#allocation12_spill] sm:$0xff] }
 0x612   :  { %v3571_v20 = vpop.trf.xlu1 }
 0x613   :  { %3780 = vxpose.xlu0.b32.cont [2/4] (short) (narrow) %v3571_v20, 64 }
 0x62e   :  { %v3603_v39 = vpop.trf.xlu0 }
 0x62f   :  { %3781 = vxpose.xlu0.b32.cont [3/4] (short) (narrow) %v3603_v39, 64 }
 0x632   :  { %v3635_v1 = vpop.trf.xlu1 }
 0x633   :  { %3782 = vxpose.xlu0.b32.end [4/4] (short) (narrow) %v3635_v1, 64 }
 0x64e   :  { %v3667_v5 = vpop.trf.xlu0 }
 0x64f   :  { %3811 = vxpose.xlu1.b32.start [1/4] (short) (narrow) %v3667_v5, 64 }
 0x652   :  { %v3699_v45 = vpop.trf.xlu1 }
 0x653   :  { %3812 = vxpose.xlu1.b32.cont [2/4] (short) (narrow) %v3699_v45, 64  ;;  %v6879_v45 = vld [vmem:[#allocation16_spill] sm:$0xff] }
 0x66e   :  { %v3731_v11 = vpop.trf.xlu0 }
 0x66f   :  { %3813 = vxpose.xlu1.b32.cont [3/4] (short) (narrow) %v3731_v11, 64 }
 0x672   :  { %v3763_v25 = vpop.trf.xlu1 }
 0x673   :  { %3814 = vxpose.xlu1.b32.end [4/4] (short) (narrow) %v3763_v25, 64 }
 0x6a7   :  { %v3795_v42 = vpop.trf.xlu0 }
 0x6a8   :  { %5058 = vmatprep.mubr.msk.f32.mxu1 %vm151_vm0, %v3795_v42 }
 0x6ab   :  { %v3796_v56 = vpop.trf.xlu0 }
 0x6ac   :  { %5059 = vmatmul.mubr.msk.f32.vlgmr.msra.gmra.mrb[66].mxu1 %vm151_vm0, %v3796_v56  ;;  %v6880_v56 = vld [vmem:[#allocation14_spill] sm:$0xff] }
 0x6af   :  { %v3797_v27 = vpop.trf.xlu0 }
 0x6b0   :  { %5061 = vmatprep.mubr.msk.f32.mxu1 %vm151_vm0, %v3797_v27 }
 0x6b3   :  { %v3798_v53 = vpop.trf.xlu0 }
 0x6b4   :  { %5062 = vmatmul.mubr.msk.f32.gmra.mrb[68].mxu1 %vm151_vm0, %v3798_v53 }
 0x6b7   :  { %v3799_v26 = vpop.trf.xlu0 }
 0x6b8   :  { %5064 = vmatprep.mubr.msk.f32.mxu1 %vm151_vm0, %v3799_v26 }
 0x6bb   :  { %v3800_v33 = vpop.trf.xlu0 }
 0x6bc   :  { %5065 = vmatmul.mubr.msk.f32.gmra.mrb[70].mxu1 %vm151_vm0, %v3800_v33 }
 0x6bf   :  { %v3801_v55 = vpop.trf.xlu0 }
 0x6c0   :  { %5067 = vmatprep.mubr.msk.f32.mxu1 %vm151_vm0, %v3801_v55 }
 0x6c3   :  { %v3802_v10 = vpop.trf.xlu0 }
 0x6c4   :  { %5068 = vmatmul.mubr.msk.f32.gmra.mrb[72].mxu1 %vm151_vm0, %v3802_v10 }
 0x6e7   :  { %v3827_v23 = vpop.trf.xlu1 }
 0x6e8   :  { %5070 = vmatprep.mubr.msk.f32.mxu1 %vm151_vm0, %v3827_v23 }
 0x6eb   :  { %v3828_v36 = vpop.trf.xlu1 }
 0x6ec   :  { %5071 = vmatmul.mubr.msk.f32.gmra.mrb[74].mxu1 %vm151_vm0, %v3828_v36 }
 0x6ef   :  { %v3829_v24 = vpop.trf.xlu1 }
 0x6f0   :  { %5073 = vmatprep.mubr.msk.f32.mxu1 %vm151_vm0, %v3829_v24 }
 0x6f3   :  { %v3830_v14 = vpop.trf.xlu1 }
 0x6f4   :  { %5074 = vmatmul.mubr.msk.f32.gmra.mrb[76].mxu1 %vm151_vm0, %v3830_v14 }
 0x6f7   :  { %v3831_v54 = vpop.trf.xlu1 }
 0x6f8   :  { %5076 = vmatprep.mubr.msk.f32.mxu1 %vm151_vm0, %v3831_v54 }
 0x6fb   :  { %v3832_v63 = vpop.trf.xlu1 }
 0x6fc   :  { %5077 = vmatmul.mubr.msk.f32.gmra.mrb[78].mxu1 %vm151_vm0, %v3832_v63  ;;  %v6881_v63 = vld [vmem:[#allocation17_spill] sm:$0xff] }
 0x6ff   :  { %v3833_v51 = vpop.trf.xlu1 }
 0x700   :  { %5079 = vmatprep.mubr.msk.f32.mxu1 %vm151_vm0, %v3833_v51 }
 0x703   :  { %v3834_v2 = vpop.trf.xlu1 }
 0x704   :  { %5080 = vmatmul.mubr.msk.f32.gmra.mrb[80].mxu1 %vm151_vm0, %v3834_v2  ;;  %v6882_v2 = vld [vmem:[#allocation15_spill] sm:$0xff] }
 0x77f   :  { %v5060_v62 = vpop.f32.mrb[66].mxu1 }
 0x780   :  { %v3974_v6 = vadd.f32 %v5060_v62, %v6506_v32  ;;  %v3968_v31 = vpop.f32.mrb[67].mxu1 }
 0x781   :  { %v3969_v3 = vadd.f32 %v6506_v32, %v3968_v31 }
 0x782   :  { %v6511_v28 = vadd.f32 %v3974_v6, %v6873_v17 }
 0x783   :  { %v6514_v61 = vadd.f32 %v3969_v3, %v6874_v46 }
 0x784   :  { %v4066_v50 = vsel %vm151_vm0, %v6511_v28, 0.0  ;;  %v4112_v21 = vmul.f32 %v6511_v28, %v6511_v28 }
 0x785   :  { %4067 = vadd.xlane.f32.xlu0 %v4066_v50  ;;  %v4063_v57 = vsel %vm151_vm0, %v6514_v61, 0.0  ;;  %v4111_v12 = vmul.f32 %v6514_v61, %v6514_v61 }
 0x786   :  { %v4130_v41 = vsel %vm151_vm0, %v4112_v21, 0.0  ;;  %v6883_v21 = vld [vmem:[#allocation19_spill] sm:$0xff] }
 0x787   :  { %v5063_v29 = vpop.f32.mrb[68].mxu1  ;;  %v4127_v52 = vsel %vm151_vm0, %v4111_v12, 0.0 }
 0x788   :  { %v3978_v37 = vpop.f32.mrb[69].mxu1  ;;  %v3984_v22 = vadd.f32 %v5063_v29, %v6506_v32 }
 0x789   :  { %4064 = vadd.xlane.f32.xlu0 %v4063_v57  ;;  %v3979_v7 = vadd.f32 %v6506_v32, %v3978_v37 }
 0x78a   :  { %v6527_v30 = vadd.f32 %v3984_v22, %v6875_v35  ;;  %v6884_v35 = vld [vmem:[#allocation18_spill] sm:$0xff] }
 0x78b   :  { %v6532_v49 = vadd.f32 %v3979_v7, %v6876_v47 }
 0x78c   :  { %v4072_v15 = vsel %vm151_vm0, %v6527_v30, 0.0  ;;  %v4114_v0 = vmul.f32 %v6527_v30, %v6527_v30 }
 0x78d   :  { %4131 = vadd.xlane.f32.xlu0 %v4130_v41  ;;  %v4069_v18 = vsel %vm151_vm0, %v6532_v49, 0.0  ;;  %v4113_v43 = vmul.f32 %v6532_v49, %v6532_v49 }
 0x78e   :  { %v4136_v38 = vsel %vm151_vm0, %v4114_v0, 0.0 }
 0x78f   :  { %v5066_v9 = vpop.f32.mrb[70].mxu1  ;;  %v4133_v60 = vsel %vm151_vm0, %v4113_v43, 0.0 }
 0x790   :  { %v3988_v19 = vpop.f32.mrb[71].mxu1  ;;  %v3994_v40 = vadd.f32 %v5066_v9, %v6506_v32 }
 0x791   :  { %4128 = vadd.xlane.f32.xlu0 %v4127_v52  ;;  %v3989_v58 = vadd.f32 %v6506_v32, %v3988_v19 }
 0x792   :  { %v6545_v4 = vadd.f32 %v3994_v40, %v6877_v59  ;;  %v6885_v40 = vld [vmem:[#allocation21_spill] sm:$0xff] }
 0x793   :  { %v6550_v20 = vadd.f32 %v3989_v58, %v6878_v44  ;;  %v6886_v58 = vld [vmem:[#allocation20_spill] sm:$0xff] }
 0x794   :  { %v4078_v16 = vsel %vm151_vm0, %v6545_v4, 0.0  ;;  %v4116_v13 = vmul.f32 %v6545_v4, %v6545_v4 }
 0x795   :  { %4073 = vadd.xlane.f32.xlu0 %v4072_v15  ;;  %v4075_v34 = vsel %vm151_vm0, %v6550_v20, 0.0  ;;  %v4115_v5 = vmul.f32 %v6550_v20, %v6550_v20 }
 0x796   :  { %v4142_v1 = vsel %vm151_vm0, %v4116_v13, 0.0 }
 0x797   :  { %v5069_v48 = vpop.f32.mrb[72].mxu1  ;;  %v4139_v42 = vsel %vm151_vm0, %v4115_v5, 0.0  ;;  %v6887_v5 = vld [vmem:[#allocation23_spill] sm:$0xff] }
 0x798   :  { %v3998_v8 = vpop.f32.mrb[73].mxu1  ;;  %v4004_v39 = vadd.f32 %v5069_v48, %v6506_v32 }
 0x799   :  { %4070 = vadd.xlane.f32.xlu0 %v4069_v18  ;;  %v3999_v25 = vadd.f32 %v6506_v32, %v3998_v8 }
 0x79a   :  { %v6563_v11 = vadd.f32 %v4004_v39, %v6879_v45 }
 0x79b   :  { %v6568_v27 = vadd.f32 %v3999_v25, %v6880_v56  ;;  %v6888_v56 = vld [vmem:[#allocation22_spill] sm:$0xff] }
 0x79c   :  { %v4084_v53 = vsel %vm151_vm0, %v6563_v11, 0.0  ;;  %v4118_v10 = vmul.f32 %v6563_v11, %v6563_v11 }
 0x79d   :  { %4137 = vadd.xlane.f32.xlu0 %v4136_v38  ;;  %v4081_v26 = vsel %vm151_vm0, %v6568_v27, 0.0  ;;  %v4117_v33 = vmul.f32 %v6568_v27, %v6568_v27 }
 0x79e   :  { %v4148_v14 = vsel %vm151_vm0, %v4118_v10, 0.0 }
 0x79f   :  { %v4145_v55 = vsel %vm151_vm0, %v4117_v33, 0.0 }
 0x7a1   :  { %4134 = vadd.xlane.f32.xlu0 %v4133_v60 }
 0x7a5   :  { %4079 = vadd.xlane.f32.xlu0 %v4078_v16 }
 0x7a9   :  { %4076 = vadd.xlane.f32.xlu0 %v4075_v34 }
 0x7ad   :  { %4143 = vadd.xlane.f32.xlu0 %v4142_v1 }
 0x7b1   :  { %4140 = vadd.xlane.f32.xlu0 %v4139_v42 }
 0x7b5   :  { %4085 = vadd.xlane.f32.xlu0 %v4084_v53 }
 0x7b9   :  { %4082 = vadd.xlane.f32.xlu0 %v4081_v26 }
 0x7bd   :  { %4146 = vadd.xlane.f32.xlu0 %v4145_v55 }
 0x7bf   :  { %v5072_v23 = vpop.f32.mrb[74].mxu1 }
 0x7c0   :  { %v4014_v36 = vadd.f32 %v5072_v23, %v6506_v32  ;;  %v4008_v24 = vpop.f32.mrb[75].mxu1 }
 0x7c1   :  { %v4009_v54 = vadd.f32 %v6506_v32, %v4008_v24  ;;  %4149 = vadd.xlane.f32.xlu0 %v4148_v14 }
 0x7c2   :  { %v6583_v51 = vadd.f32 %v4014_v36, %v6881_v63 }
 0x7c3   :  { %v6586_v62 = vadd.f32 %v4009_v54, %v6882_v2 }
 0x7c4   :  { %v4090_v6 = vsel %vm151_vm0, %v6583_v51, 0.0  ;;  %v4120_v46 = vmul.f32 %v6583_v51, %v6583_v51 }
 0x7c5   :  { %4091 = vadd.xlane.f32.xlu1 %v4090_v6  ;;  %v4087_v17 = vsel %vm151_vm0, %v6586_v62, 0.0  ;;  %v4119_v37 = vmul.f32 %v6586_v62, %v6586_v62 }
 0x7c6   :  { %v4154_v29 = vsel %vm151_vm0, %v4120_v46, 0.0 }
 0x7c7   :  { %v5075_v31 = vpop.f32.mrb[76].mxu1  ;;  %v4151_v9 = vsel %vm151_vm0, %v4119_v37, 0.0 }
 0x7c8   :  { %v4018_v3 = vpop.f32.mrb[77].mxu1  ;;  %v4024_v50 = vadd.f32 %v5075_v31, %v6506_v32 }
 0x7c9   :  { %4088 = vadd.xlane.f32.xlu1 %v4087_v17  ;;  %v4019_v41 = vadd.f32 %v6506_v32, %v4018_v3 }
 0x7ca   :  { %v6599_v22 = vadd.f32 %v4024_v50, %v6883_v21 }
 0x7cb   :  { %v6604_v7 = vadd.f32 %v4019_v41, %v6884_v35 }
 0x7cc   :  { %v4096_v19 = vsel %vm151_vm0, %v6599_v22, 0.0  ;;  %v4122_v48 = vmul.f32 %v6599_v22, %v6599_v22 }
 0x7cd   :  { %4155 = vadd.xlane.f32.xlu1 %v4154_v29  ;;  %v4093_v15 = vsel %vm151_vm0, %v6604_v7, 0.0  ;;  %v4121_v0 = vmul.f32 %v6604_v7, %v6604_v7 }
 0x7ce   :  { %v4160_v18 = vsel %vm151_vm0, %v4122_v48, 0.0 }
 0x7cf   :  { %v5078_v57 = vpop.f32.mrb[78].mxu1  ;;  %v4157_v59 = vsel %vm151_vm0, %v4121_v0, 0.0 }
 0x7d0   :  { %v4028_v12 = vpop.f32.mrb[79].mxu1  ;;  %v4034_v8 = vadd.f32 %v5078_v57, %v6506_v32 }
 0x7d1   :  { %4152 = vadd.xlane.f32.xlu1 %v4151_v9  ;;  %v4029_v43 = vadd.f32 %v6506_v32, %v4028_v12 }
 0x7d2   :  { %v6617_v38 = vadd.f32 %v4034_v8, %v6885_v40 }
 0x7d3   :  { %v6622_v60 = vadd.f32 %v4029_v43, %v6886_v58 }
 0x7d4   :  { %v4102_v44 = vsel %vm151_vm0, %v6617_v38, 0.0  ;;  %v4124_v34 = vmul.f32 %v6617_v38, %v6617_v38 }
 0x7d5   :  { %4097 = vadd.xlane.f32.xlu1 %v4096_v19  ;;  %v4099_v16 = vsel %vm151_vm0, %v6622_v60, 0.0  ;;  %v4123_v1 = vmul.f32 %v6622_v60, %v6622_v60 }
 0x7d6   :  { %v4166_v39 = vsel %vm151_vm0, %v4124_v34, 0.0 }
 0x7d7   :  { %v5081_v52 = vpop.f32.mrb[80].mxu1  ;;  %v4163_v42 = vsel %vm151_vm0, %v4123_v1, 0.0 }
 0x7d8   :  { %v4038_v47 = vpop.f32.mrb[81].mxu1  ;;  %v4044_v13 = vadd.f32 %v5081_v52, %v6506_v32 }
 0x7d9   :  { %4094 = vadd.xlane.f32.xlu1 %v4093_v15  ;;  %v4039_v25 = vadd.f32 %v6506_v32, %v4038_v47 }
 0x7da   :  { %v6635_v45 = vadd.f32 %v4044_v13, %v6887_v5 }
 0x7db   :  { %v6640_v53 = vadd.f32 %v4039_v25, %v6888_v56 }
 0x7dc   :  { %v4108_v26 = vsel %vm151_vm0, %v6635_v45, 0.0  ;;  %v4126_v32 = vmul.f32 %v6635_v45, %v6635_v45 }
 0x7dd   :  { %4161 = vadd.xlane.f32.xlu1 %v4160_v18  ;;  %v4105_v33 = vsel %vm151_vm0, %v6640_v53, 0.0  ;;  %v4125_v55 = vmul.f32 %v6640_v53, %v6640_v53 }
 0x7de   :  { %v4172_v23 = vsel %vm151_vm0, %v4126_v32, 0.0 }
 0x7df   :  { %v4169_v10 = vsel %vm151_vm0, %v4125_v55, 0.0 }
 0x7e1   :  { %4158 = vadd.xlane.f32.xlu1 %v4157_v59 }
 0x7e5   :  { %4103 = vadd.xlane.f32.xlu1 %v4102_v44 }
 0x7e9   :  { %4100 = vadd.xlane.f32.xlu1 %v4099_v16  ;;  %v6657_v16 = vld [vmem:[%s6739_s6] ss:$0 sm:$0xff]  ;;  %s5444_s6 = smov [#allocation5]  }
 0x7ed   :  { %4167 = vadd.xlane.f32.xlu1 %v4166_v39 }
 0x7f1   :  { %4164 = vadd.xlane.f32.xlu1 %v4163_v42 }
 0x7f5   :  { %4109 = vadd.xlane.f32.xlu1 %v4108_v26 }
 0x7f9   :  { %4106 = vadd.xlane.f32.xlu1 %v4105_v33 }
 0x7fd   :  { %4170 = vadd.xlane.f32.xlu1 %v4169_v10 }
 0x801   :  { %4173 = vadd.xlane.f32.xlu1 %v4172_v23 }
 0x812   :  { %v4068_v36 = vpop.xlane.xlu0 %4067 }
 0x813   :  { %v4176_v14 = vmul.f32 0.03125, %v4068_v36 }
 0x815   :  { %v4208_v63 = vmul.f32 %v4176_v14, %v4176_v14  ;;  %v4240_v15 = vsub.f32 %v6511_v28, %v4176_v14 }
 0x816   :  { %v4065_v24 = vpop.xlane.xlu0 %4064 }
 0x817   :  { %v4175_v2 = vmul.f32 0.03125, %v4065_v24 }
 0x819   :  { %v4207_v17 = vmul.f32 %v4175_v2, %v4175_v2  ;;  %v4239_v48 = vsub.f32 %v6514_v61, %v4175_v2  ;;  %v6663_v61 = vld [vmem:[%s6740_s7] ss:$0 sm:$0xff]  ;;  %s4426_s7 = sshll.u32 %s5444_s6, 4  ;;  %s4427_s7 = int_to_ptr.vmem [resolvable:$true] %s4426_s7 }
 0x81a   :  { %v4132_v54 = vpop.xlane.xlu0 %4131  ;;  %s5415_s2 = scalar_lea.vmem %s4427_s7, 1024  ;;  %p5420_p9 = scmp.lt.s32.totalorder %s4427_s7, %s4427_s7 }
 0x81b   :  { %v4192_v6 = vmul.f32 0.03125, %v4132_v54  ;;  %p5416_p8 = scmp.ne.s32.totalorder %s4427_s7, %s5415_s2  ;;  %p5421_p10 = scmp.lt.s32.totalorder %s5415_s2, %s5415_s2 }
 0x81d   :  { %v4224_v31 = vsub.f32 %v4192_v6, %v4208_v63  ;;  %p5422_p11 = por %p5421_p10, %p5420_p9 }
 0x81e   :  { %v4129_v3 = vpop.xlane.xlu0 %4128 }
 0x81f   :  { %v4256_v46 = vadd.f32 1e-05, %v4224_v31  ;;  %v4191_v50 = vmul.f32 0.03125, %v4129_v3  ;;  %p5423_p12 = pnand %p5422_p11, %p5416_p8 }
 0x821   :  { %v4223_v29 = vsub.f32 %v4191_v50, %v4207_v17  ;;  %5361 = vrsqrt.f32 %v4256_v46 }
 0x822   :  { %v4074_v37 = vpop.xlane.xlu0 %4073 }
 0x823   :  { %v4255_v57 = vadd.f32 1e-05, %v4223_v29  ;;  %v4178_v41 = vmul.f32 0.03125, %v4074_v37 }
 0x825   :  { %5363 = vrsqrt.f32 %v4255_v57  ;;  %v4210_v9 = vmul.f32 %v4178_v41, %v4178_v41  ;;  %v4242_v23 = vsub.f32 %v6527_v30, %v4178_v41 }
 0x826   :  { %v4071_v21 = vpop.xlane.xlu0 %4070 }
 0x827   :  { %v4177_v35 = vmul.f32 0.03125, %v4071_v21 }
 0x829   :  { %v4209_v0 = vmul.f32 %v4177_v35, %v4177_v35  ;;  %v4241_v36 = vsub.f32 %v6532_v49, %v4177_v35 }
 0x82a   :  { %v4138_v12 = vpop.xlane.xlu0 %4137 }
 0x82b   :  { %v4194_v19 = vmul.f32 0.03125, %v4138_v12  ;;  %v5362_v52 = vpop.eup %5361 }
 0x82c   :  { %v4288_v58 = vmul.f32 %v5362_v52, %v4240_v15 }
 0x82d   :  { %v4226_v47 = vsub.f32 %v4194_v19, %v4210_v9 }
 0x82e   :  { %v4135_v8 = vpop.xlane.xlu0 %4134  ;;  %v4311_v1 = vmul.f32 %v6657_v16, %v4288_v58 }
 0x82f   :  { %v5364_v18 = vpop.eup %5363  ;;  %v4258_v40 = vadd.f32 1e-05, %v4226_v47  ;;  %v4193_v43 = vmul.f32 0.03125, %v4135_v8 }
 0x830   :  { %v4287_v59 = vmul.f32 %v5364_v18, %v4239_v48  ;;  %v4334_v42 = vadd.f32 %v6663_v61, %v4311_v1 }
 0x831   :  { %v4225_v44 = vsub.f32 %v4193_v43, %v4209_v0  ;;  %5365 = vrsqrt.f32 %v4258_v40 }
 0x832   :  { %v4080_v34 = vpop.xlane.xlu0 %4079  ;;  %v4310_v13 = vmul.f32 %v6657_v16, %v4287_v59 }
 0x833   :  { %v4257_v28 = vadd.f32 1e-05, %v4225_v44  ;;  %v4180_v25 = vmul.f32 0.03125, %v4080_v34 }
 0x834   :  { %v4333_v39 = vadd.f32 %v6663_v61, %v4310_v13 }
 0x835   :  { %5367 = vrsqrt.f32 %v4257_v28  ;;  %v4212_v26 = vmul.f32 %v4180_v25, %v4180_v25  ;;  %v4244_v52 = vsub.f32 %v6545_v4, %v4180_v25 }
 0x836   :  { %4349 = vxpose.xlu0.b32.start [1/8] (short) (narrow) %v4333_v39, 32  ;;  %v4077_v5 = vpop.xlane.xlu0 %4076 }
 0x837   :  { %v4179_v33 = vmul.f32 0.03125, %v4077_v5 }
 0x839   :  { %v4211_v54 = vmul.f32 %v4179_v33, %v4179_v33  ;;  %v4243_v47 = vsub.f32 %v6550_v20, %v4179_v33 }
 0x83a   :  { %4350 = vxpose.xlu0.b32.cont [2/8] (short) (narrow) %v4334_v42, 32  ;;  %v4144_v56 = vpop.xlane.xlu0 %4143 }
 0x83b   :  { %v4196_v55 = vmul.f32 0.03125, %v4144_v56  ;;  %v5366_v10 = vpop.eup %5365 }
 0x83c   :  { %v4290_v31 = vmul.f32 %v5366_v10, %v4242_v23 }
 0x83d   :  { %v4228_v32 = vsub.f32 %v4196_v55, %v4212_v26 }
 0x83e   :  { %v4141_v24 = vpop.xlane.xlu0 %4140  ;;  %v4313_v37 = vmul.f32 %v6657_v16, %v4290_v31 }
 0x83f   :  { %v5368_v14 = vpop.eup %5367  ;;  %v4260_v63 = vadd.f32 1e-05, %v4228_v32  ;;  %v4195_v2 = vmul.f32 0.03125, %v4141_v24 }
 0x840   :  { %v4289_v6 = vmul.f32 %v5368_v14, %v4241_v36  ;;  %v4336_v57 = vadd.f32 %v6663_v61, %v4313_v37 }
 0x841   :  { %v4227_v3 = vsub.f32 %v4195_v2, %v4211_v54  ;;  %5369 = vrsqrt.f32 %v4260_v63 }
 0x842   :  { %v4086_v17 = vpop.xlane.xlu0 %4085  ;;  %v4312_v46 = vmul.f32 %v6657_v16, %v4289_v6 }
 0x843   :  { %v4259_v50 = vadd.f32 1e-05, %v4227_v3  ;;  %v4182_v41 = vmul.f32 0.03125, %v4086_v17 }
 0x844   :  { %v4335_v29 = vadd.f32 %v6663_v61, %v4312_v46 }
 0x845   :  { %5371 = vrsqrt.f32 %v4259_v50  ;;  %v4214_v8 = vmul.f32 %v4182_v41, %v4182_v41  ;;  %v4246_v10 = vsub.f32 %v6563_v11, %v4182_v41 }
 0x846   :  { %4351 = vxpose.xlu0.b32.cont [3/8] (short) (narrow) %v4335_v29, 32  ;;  %v4083_v30 = vpop.xlane.xlu0 %4082 }
 0x847   :  { %v4181_v49 = vmul.f32 0.03125, %v4083_v30 }
 0x849   :  { %v4213_v12 = vmul.f32 %v4181_v49, %v4181_v49  ;;  %v4245_v1 = vsub.f32 %v6568_v27, %v4181_v49 }
 0x84a   :  { %4352 = vxpose.xlu0.b32.cont [4/8] (short) (narrow) %v4336_v57, 32  ;;  %v4147_v21 = vpop.xlane.xlu0 %4146 }
 0x84b   :  { %v4197_v9 = vmul.f32 0.03125, %v4147_v21  ;;  %v5370_v35 = vpop.eup %5369 }
 0x84c   :  { %v4292_v43 = vmul.f32 %v5370_v35, %v4244_v52 }
 0x84d   :  { %v4229_v19 = vsub.f32 %v4197_v9, %v4213_v12 }
 0x84e   :  { %v4150_v15 = vpop.xlane.xlu0 %4149  ;;  %v4315_v28 = vmul.f32 %v6657_v16, %v4292_v43 }
 0x84f   :  { %v5372_v48 = vpop.eup %5371  ;;  %v4261_v18 = vadd.f32 1e-05, %v4229_v19  ;;  %v4198_v0 = vmul.f32 0.03125, %v4150_v15 }
 0x850   :  { %v4291_v40 = vmul.f32 %v5372_v48, %v4243_v47  ;;  %v4338_v39 = vadd.f32 %v6663_v61, %v4315_v28 }
 0x851   :  { %5373 = vrsqrt.f32 %v4261_v18  ;;  %v4230_v59 = vsub.f32 %v4198_v0, %v4214_v8 }
 0x852   :  { %v4092_v58 = vpop.xlane.xlu1 %4091  ;;  %v4314_v44 = vmul.f32 %v6657_v16, %v4291_v40 }
 0x853   :  { %v4262_v34 = vadd.f32 1e-05, %v4230_v59  ;;  %v4184_v20 = vmul.f32 0.03125, %v4092_v58 }
 0x854   :  { %v4337_v13 = vadd.f32 %v6663_v61, %v4314_v44 }
 0x855   :  { %5375 = vrsqrt.f32 %v4262_v34  ;;  %v4216_v42 = vmul.f32 %v4184_v20, %v4184_v20  ;;  %v4248_v21 = vsub.f32 %v6583_v51, %v4184_v20 }
 0x856   :  { %v4089_v4 = vpop.xlane.xlu1 %4088  ;;  %4353 = vxpose.xlu0.b32.cont [5/8] (short) (narrow) %v4337_v13, 32 }
 0x857   :  { %v4183_v56 = vmul.f32 0.03125, %v4089_v4 }
 0x859   :  { %v4215_v24 = vmul.f32 %v4183_v56, %v4183_v56  ;;  %v4247_v41 = vsub.f32 %v6586_v62, %v4183_v56 }
 0x85a   :  { %v4156_v5 = vpop.xlane.xlu1 %4155  ;;  %4354 = vxpose.xlu0.b32.cont [6/8] (short) (narrow) %v4338_v39, 32 }
 0x85b   :  { %v5374_v25 = vpop.eup %5373  ;;  %v4200_v26 = vmul.f32 0.03125, %v4156_v5 }
 0x85c   :  { %v4293_v33 = vmul.f32 %v5374_v25, %v4245_v1 }
 0x85d   :  { %v4232_v55 = vsub.f32 %v4200_v26, %v4216_v42 }
 0x85e   :  { %v4153_v32 = vpop.xlane.xlu1 %4152  ;;  %v4316_v23 = vmul.f32 %v6657_v16, %v4293_v33 }
 0x85f   :  { %v5376_v36 = vpop.eup %5375  ;;  %v4264_v14 = vadd.f32 1e-05, %v4232_v55  ;;  %v4199_v54 = vmul.f32 0.03125, %v4153_v32 }
 0x860   :  { %v4339_v63 = vadd.f32 %v6663_v61, %v4316_v23  ;;  %v4294_v27 = vmul.f32 %v5376_v36, %v4246_v10 }
 0x861   :  { %v4231_v2 = vsub.f32 %v4199_v54, %v4215_v24  ;;  %5377 = vrsqrt.f32 %v4264_v14 }
 0x862   :  { %v4098_v6 = vpop.xlane.xlu1 %4097  ;;  %4355 = vxpose.xlu0.b32.cont [7/8] (short) (narrow) %v4339_v63, 32  ;;  %v4317_v31 = vmul.f32 %v6657_v16, %v4294_v27 }
 0x863   :  { %v4263_v3 = vadd.f32 1e-05, %v4231_v2  ;;  %v4186_v46 = vmul.f32 0.03125, %v4098_v6 }
 0x864   :  { %v4340_v17 = vadd.f32 %v6663_v61, %v4317_v31 }
 0x865   :  { %5379 = vrsqrt.f32 %v4263_v3  ;;  %v4218_v29 = vmul.f32 %v4186_v46, %v4186_v46  ;;  %v4250_v20 = vsub.f32 %v6599_v22, %v4186_v46 }
 0x866   :  { %v4095_v11 = vpop.xlane.xlu1 %4094  ;;  %4356 = vxpose.xlu0.b32.end [8/8] (short) (narrow) %v4340_v17, 32 }
 0x867   :  { %v4185_v37 = vmul.f32 0.03125, %v4095_v11 }
 0x869   :  { %v4217_v35 = vmul.f32 %v4185_v37, %v4185_v37  ;;  %v4249_v39 = vsub.f32 %v6604_v7, %v4185_v37 }
 0x86a   :  { %v4162_v50 = vpop.xlane.xlu1 %4161 }
 0x86b   :  { %v4202_v30 = vmul.f32 0.03125, %v4162_v50  ;;  %v5378_v49 = vpop.eup %5377 }
 0x86c   :  { %v4296_v15 = vmul.f32 %v5378_v49, %v4248_v21 }
 0x86d   :  { %v4234_v57 = vsub.f32 %v4202_v30, %v4218_v29 }
 0x86e   :  { %v4159_v12 = vpop.xlane.xlu1 %4158  ;;  %v4319_v43 = vmul.f32 %v6657_v16, %v4296_v15 }
 0x86f   :  { %v5380_v9 = vpop.eup %5379  ;;  %v4266_v19 = vadd.f32 1e-05, %v4234_v57  ;;  %v4201_v52 = vmul.f32 0.03125, %v4159_v12 }
 0x870   :  { %v4295_v47 = vmul.f32 %v5380_v9, %v4247_v41  ;;  %v4342_v59 = vadd.f32 %v6663_v61, %v4319_v43 }
 0x871   :  { %v4233_v48 = vsub.f32 %v4201_v52, %v4217_v35  ;;  %5381 = vrsqrt.f32 %v4266_v19 }
 0x872   :  { %v4104_v8 = vpop.xlane.xlu1 %4103  ;;  %v4318_v18 = vmul.f32 %v6657_v16, %v4295_v47 }
 0x873   :  { %v4265_v0 = vadd.f32 1e-05, %v4233_v48  ;;  %v4188_v62 = vmul.f32 0.03125, %v4104_v8 }
 0x874   :  { %v4341_v40 = vadd.f32 %v6663_v61, %v4318_v18 }
 0x875   :  { %5383 = vrsqrt.f32 %v4265_v0  ;;  %v4220_v44 = vmul.f32 %v4188_v62, %v4188_v62  ;;  %v4252_v3 = vsub.f32 %v6617_v38, %v4188_v62 }
 0x876   :  { %4381 = vxpose.xlu1.b32.start [1/8] (short) (narrow) %v4341_v40, 32  ;;  %v4101_v51 = vpop.xlane.xlu1 %4100 }
 0x877   :  { %v4187_v34 = vmul.f32 0.03125, %v4101_v51 }
 0x879   :  { %v4219_v25 = vmul.f32 %v4187_v34, %v4187_v34  ;;  %v4251_v17 = vsub.f32 %v6622_v60, %v4187_v34 }
 0x87a   :  { %4382 = vxpose.xlu1.b32.cont [2/8] (short) (narrow) %v4342_v59, 32  ;;  %v4168_v58 = vpop.xlane.xlu1 %4167 }
 0x87b   :  { %v4204_v13 = vmul.f32 0.03125, %v4168_v58  ;;  %v5382_v28 = vpop.eup %5381 }
 0x87c   :  { %v4298_v33 = vmul.f32 %v5382_v28, %v4250_v20 }
 0x87d   :  { %v4236_v4 = vsub.f32 %v4204_v13, %v4220_v44 }
 0x87e   :  { %v4165_v1 = vpop.xlane.xlu1 %4164  ;;  %v4321_v24 = vmul.f32 %v6657_v16, %v4298_v33 }
 0x87f   :  { %v5384_v5 = vpop.eup %5383  ;;  %v4268_v42 = vadd.f32 1e-05, %v4236_v4  ;;  %v4203_v56 = vmul.f32 0.03125, %v4165_v1 }
 0x880   :  { %v4297_v26 = vmul.f32 %v5384_v5, %v4249_v39  ;;  %v4344_v14 = vadd.f32 %v6663_v61, %v4321_v24 }
 0x881   :  { %v4235_v55 = vsub.f32 %v4203_v56, %v4219_v25  ;;  %5385 = vrsqrt.f32 %v4268_v42 }
 0x882   :  { %v4110_v10 = vpop.xlane.xlu1 %4109  ;;  %v4320_v32 = vmul.f32 %v6657_v16, %v4297_v26 }
 0x883   :  { %v4267_v23 = vadd.f32 1e-05, %v4235_v55  ;;  %v4190_v63 = vmul.f32 0.03125, %v4110_v10 }
 0x884   :  { %v4343_v36 = vadd.f32 %v6663_v61, %v4320_v32 }
 0x885   :  { %5387 = vrsqrt.f32 %v4267_v23  ;;  %v4222_v50 = vmul.f32 %v4190_v63, %v4190_v63  ;;  %v4254_v52 = vsub.f32 %v6635_v45, %v4190_v63 }
 0x886   :  { %4383 = vxpose.xlu1.b32.cont [3/8] (short) (narrow) %v4343_v36, 32  ;;  %v4107_v22 = vpop.xlane.xlu1 %4106 }
 0x887   :  { %v4189_v7 = vmul.f32 0.03125, %v4107_v22 }
 0x889   :  { %v4221_v27 = vmul.f32 %v4189_v7, %v4189_v7  ;;  %v4253_v60 = vsub.f32 %v6640_v53, %v4189_v7 }
 0x88a   :  { %4384 = vxpose.xlu1.b32.cont [4/8] (short) (narrow) %v4344_v14, 32  ;;  %v4171_v54 = vpop.xlane.xlu1 %4170 }
 0x88b   :  { %v4205_v2 = vmul.f32 0.03125, %v4171_v54  ;;  %v5386_v6 = vpop.eup %5385 }
 0x88c   :  { %v4300_v49 = vmul.f32 %v5386_v6, %v4252_v3 }
 0x88d   :  { %v4237_v31 = vsub.f32 %v4205_v2, %v4221_v27 }
 0x88e   :  { %v4174_v11 = vpop.xlane.xlu1 %4173  ;;  %v4323_v9 = vmul.f32 %v6657_v16, %v4300_v49 }
 0x88f   :  { %v5388_v46 = vpop.eup %5387  ;;  %v4269_v29 = vadd.f32 1e-05, %v4237_v31  ;;  %v4206_v37 = vmul.f32 0.03125, %v4174_v11 }
 0x890   :  { %v4299_v30 = vmul.f32 %v5388_v46, %v4251_v17  ;;  %v4346_v38 = vadd.f32 %v6663_v61, %v4323_v9 }
 0x891   :  { %5389 = vrsqrt.f32 %v4269_v29  ;;  %v4238_v57 = vsub.f32 %v4206_v37, %v4222_v50 }
 0x892   :  { %v4322_v21 = vmul.f32 %v6657_v16, %v4299_v30 }
 0x893   :  { %v4270_v41 = vadd.f32 1e-05, %v4238_v57 }
 0x894   :  { %v4345_v12 = vadd.f32 %v6663_v61, %v4322_v21 }
 0x895   :  { %5391 = vrsqrt.f32 %v4270_v41 }
 0x896   :  { %4385 = vxpose.xlu1.b32.cont [5/8] (short) (narrow) %v4345_v12, 32 }
 0x89a   :  { %4386 = vxpose.xlu1.b32.cont [6/8] (short) (narrow) %v4346_v38, 32 }
 0x89b   :  { %v5390_v35 = vpop.eup %5389 }
 0x89c   :  { %v4301_v19 = vmul.f32 %v5390_v35, %v4253_v60 }
 0x89e   :  { %v4324_v47 = vmul.f32 %v6657_v16, %v4301_v19 }
 0x89f   :  { %v5392_v15 = vpop.eup %5391 }
 0x8a0   :  { %v4347_v48 = vadd.f32 %v6663_v61, %v4324_v47  ;;  %v4302_v8 = vmul.f32 %v5392_v15, %v4254_v52 }
 0x8a2   :  { %4387 = vxpose.xlu1.b32.cont [7/8] (short) (narrow) %v4347_v48, 32  ;;  %v4325_v18 = vmul.f32 %v6657_v16, %v4302_v8 }
 0x8a4   :  { %v4348_v0 = vadd.f32 %v6663_v61, %v4325_v18 }
 0x8a6   :  { %4388 = vxpose.xlu1.b32.end [8/8] (short) (narrow) %v4348_v0, 32 }
 0x8ca   :  { %v4365_v40 = vpop.trf.xlu0 }
 0x8cb   :  { %4413 = vst.msk [vmem:[#allocation5] sm:$0xff] %vm1762_vm2, %v4365_v40 }
 0x8ce   :  { %v4366_v53 = vpop.trf.xlu0 }
 0x8cf   :  { %4414 = vst.msk [vmem:[#allocation5 + $0x8] sm:$0xff] %vm1762_vm2, %v4366_v53 }
 0x8d2   :  { %v4367_v43 = vpop.trf.xlu0 }
 0x8d3   :  { %4415 = vst.msk [vmem:[#allocation5 + $0x10] sm:$0xff] %vm1762_vm2, %v4367_v43 }
 0x8d6   :  { %v4368_v45 = vpop.trf.xlu0 }
 0x8d7   :  { %4416 = vst.msk [vmem:[#allocation5 + $0x18] sm:$0xff] %vm1762_vm2, %v4368_v45 }
 0x90a   :  { %v4397_v51 = vpop.trf.xlu1 }
 0x90b   :  { %4417 = vst.msk [vmem:[#allocation5 + $0x20] sm:$0xff] %vm1762_vm2, %v4397_v51 }
 0x90e   :  { %v4398_v62 = vpop.trf.xlu1 }
 0x90f   :  { %4418 = vst.msk [vmem:[#allocation5 + $0x28] sm:$0xff] %vm1762_vm2, %v4398_v62 }
 0x912   :  { %v4399_v16 = vpop.trf.xlu1 }
 0x913   :  { %4419 = vst.msk [vmem:[#allocation5 + $0x30] sm:$0xff] %vm1762_vm2, %v4399_v16 }
 0x916   :  { %v4400_v61 = vpop.trf.xlu1 }
 0x917   :  { %4420 = vst.msk [vmem:[#allocation5 + $0x38] sm:$0xff] %vm1762_vm2, %v4400_v61 }
 0x918   :  { %5426 = shalt.err (!%p5423_p12)
}
 0x919   :  { %s5427_s22 = scalar_lea.hbm %s6741_s8, 1024 }
 0x91a   :  { %p5428_p13 = scmp.ne.s32.totalorder %s6741_s8, %s5427_s22  ;;  %p5431_p0 = scmp.lt.u32.totalorder %s5427_s22, %s6741_s8 }
 0x91c   :  { %p5433_p1 = pnand %p5431_p0, %p5428_p13 }
 0x91e   :  { %5436 = shalt.err (!%p5433_p1)
}
 0x91f   :  { %4432 = dma.vmem_to_hbm [thread:$0]  %s4427_s7, 1024, %s6741_s8, [#allocation4], %s5442_s15, %s5442_s15, %s5443_s16  }
 0x920   :  { %5439 = dma.done.wait [#allocation4], 1024  }
 0x921   :  { %5440 = vsyncadd [#allocation4], 4294966272 }
 0x922   :  { %4436 = vsyncpa [#allocation3], 1 }
 0x923   :  { %4437 = vsyncpa [#allocation4], 1 }

</bundles_post_ra>
